<compile_context>
chip_gen: v7x
topology: tpu7x:2x2x1
jax: 0.10.0
libtpu: 0.0.40
codegen_flags: <defaults>
</compile_context>

<pallas_src>
import numpy as np

import jax
import jax.numpy as jnp
from jax.experimental import pallas as pl
from jax.experimental.pallas import tpu as pltpu

_VMEM = pl.BlockSpec(memory_space=pltpu.MemorySpace.VMEM)


# ---------------------------------------------------------------------------
# Kernels
# ---------------------------------------------------------------------------
def conv_relu_pool_kernel(p_ref, w_ref, b_ref, o_ref):
    """Fused valid 5x5 conv + bias + ReLU + 2x2 max pool.

    p_ref : (TM, K)       shared s2d im2col patches (bf16), K = 36*Cin,
                          rows ordered (b, ph, pw) over pooled positions.
    w_ref : (4, K, Cout)  one scattered weight matrix per pool offset (bf16).
    b_ref : (1, Cout)     bias (f32).
    o_ref : (TM, Cout)    pooled activations (f32), NHWC row order.
    """
    p = p_ref[...]

    def y(g):  # raw conv output for pool offset g (f32 accumulation on MXU)
        return jnp.dot(p, w_ref[g], preferred_element_type=jnp.float32)

    m = jnp.maximum(jnp.maximum(y(0), y(1)), jnp.maximum(y(2), y(3)))
    # bias + ReLU hoisted out of the 4 branches (max/ReLU commute, bias shared)
    o_ref[...] = jnp.maximum(m + b_ref[...], 0.0)


def fc_stack_kernel(x_ref, w1_ref, b1_ref, w2_ref, b2_ref, w3_ref, b3_ref, o_ref):
    """fc1+ReLU -> fc2+ReLU -> fc3; weights bf16, f32 accumulation, 128 lanes."""
    h = jnp.dot(x_ref[...], w1_ref[...], preferred_element_type=jnp.float32)
    h = jnp.maximum(h + b1_ref[...], 0.0)
    h = jnp.dot(h.astype(jnp.bfloat16), w2_ref[...],
                preferred_element_type=jnp.float32)
    h = jnp.maximum(h + b2_ref[...], 0.0)
    o_ref[...] = (jnp.dot(h.astype(jnp.bfloat16), w3_ref[...],
                          preferred_element_type=jnp.float32) + b3_ref[...])


# ---------------------------------------------------------------------------
# Wrappers
# ---------------------------------------------------------------------------
def _round_up(x, m):
    return (x + m - 1) // m * m


def _pool_im2col_s2d(x):
    """x: (B, H, W, C) NHWC (H, W even).  Space-to-depth + 9 contiguous slices
    -> shared patch matrix (M, 36*C) for a valid 5x5 conv + MaxPool2d(2, 2),
    M = B*PH*PW, column index = ((qa*3+qb)*4 + (ra*2+rb))*C + c."""
    B, H, W, C = x.shape
    OH, OW = H - 4, W - 4
    PH, PW = OH // 2, OW // 2
    # s2d[b, u, v, (r*2+s)*C + c] = x[b, 2u+r, 2v+s, c]
    s2d = x.reshape(B, H // 2, 2, W // 2, 2, C).transpose(0, 1, 3, 2, 4, 5)
    s2d = s2d.reshape(B, H // 2, W // 2, 4 * C)
    taps = []
    for qa in range(3):
        for qb in range(3):
            t = s2d[:, qa:qa + PH, qb:qb + PW, :]          # (B, PH, PW, 4C)
            taps.append(t.reshape(B * PH * PW, 4 * C))
    return jnp.concatenate(taps, axis=-1), (PH, PW)        # (M, 36C)


def conv_relu_pool(x_nhwc, w_g, b):
    """Conv(5x5, valid) + ReLU + MaxPool2x2 as one pallas_call (MXU matmuls)."""
    patches, (PH, PW) = _pool_im2col_s2d(x_nhwc)
    patches = patches.astype(jnp.bfloat16)
    B = x_nhwc.shape[0]
    M = B * PH * PW
    K = patches.shape[1]
    cout = w_g.shape[2]

    # Grid over the pooled-pixel axis: up to 4 blocks (parallel -> both TCs on
    # v7x), 8-aligned tile, auto-pipelined patch DMA.
    n_blocks = max(1, min(4, M // 256))
    TM = _round_up(-(-M // n_blocks), 8)
    M_pad = _round_up(M, TM)
    if M_pad != M:
        patches = jnp.pad(patches, ((0, M_pad - M), (0, 0)))

    out = pl.pallas_call(
        conv_relu_pool_kernel,
        out_shape=jax.ShapeDtypeStruct((M_pad, cout), jnp.float32),
        grid=(M_pad // TM,),
        in_specs=[pl.BlockSpec((TM, K), lambda i: (i, 0)),
                  pl.BlockSpec((4, K, cout), lambda i: (0, 0, 0)),
                  pl.BlockSpec((1, cout), lambda i: (0, 0))],
        out_specs=pl.BlockSpec((TM, cout), lambda i: (i, 0)),
        compiler_params=pltpu.CompilerParams(
            dimension_semantics=("parallel",)),
    )(patches, w_g, b)
    return out[:M].reshape(B, PH, PW, cout)


def fc_stack(x_flat_bf16, p):
    """All three FC layers in one pallas_call; output padded to 128 lanes."""
    B = x_flat_bf16.shape[0]
    out = pl.pallas_call(
        fc_stack_kernel,
        out_shape=jax.ShapeDtypeStruct((B, 128), jnp.float32),
        in_specs=[_VMEM] * 7,
        out_specs=_VMEM,
    )(x_flat_bf16, p["fc1_w"], p["fc1_b"], p["fc2_w"], p["fc2_b"],
      p["fc3_w"], p["fc3_b"])
    return out[:, :15]


# ---------------------------------------------------------------------------
# Parameters (deterministic synthetic init, shapes from the PyTorch module)
# ---------------------------------------------------------------------------
def _scatter_pool_weights(w4):
    """(5, 5, Cin, Cout) conv weights -> (4, 36*Cin, Cout): one matrix per pool
    offset g=(di,dj), consuming the shared s2d patch matrix.  Row
    kk = ((qa*3+qb)*4 + (ra*2+rb))*Cin + c holds W[i, j, c, :] where
    i = 2*qa+ra-di, j = 2*qb+rb-dj when 0<=i,j<5, else zero."""
    kh, kw, cin, cout = w4.shape
    w4 = np.asarray(w4)
    out = np.zeros((4, 36 * cin, cout), np.float32)
    for di in range(2):
        for dj in range(2):
            g = di * 2 + dj
            for qa in range(3):
                for ra in range(2):
                    i = 2 * qa + ra - di
                    if not 0 <= i < kh:
                        continue
                    for qb in range(3):
                        for rb in range(2):
                            j = 2 * qb + rb - dj
                            if not 0 <= j < kw:
                                continue
                            k0 = ((qa * 3 + qb) * 4 + (ra * 2 + rb)) * cin
                            out[g, k0:k0 + cin, :] = w4[i, j]
    return jnp.asarray(out)


def init_params(key):
    ks = jax.random.split(key, 10)
    s = 0.02

    def pad_to(a, shape):
        return jnp.pad(a, [(0, t - d) for d, t in zip(a.shape, shape)])

    conv1_w4 = s * jax.random.normal(ks[0], (5, 5, 3, 6), jnp.float32)
    conv2_w4 = s * jax.random.normal(ks[2], (5, 5, 6, 16), jnp.float32)

    # fc1 weight generated in the PyTorch layout (rows ordered c, h, w over
    # (16, 13, 13)), then re-laid-out ONCE so it consumes the NHWC-flattened
    # activation (rows ordered h, w, c).  Removes any runtime transpose.
    fc1_w_torch = s * jax.random.normal(ks[4], (16 * 13 * 13, 120), jnp.float32)
    fc1_w_nhwc = (fc1_w_torch.reshape(16, 13, 13, 120)
                  .transpose(1, 2, 0, 3).reshape(16 * 13 * 13, 120))

    bf16 = jnp.bfloat16
    return {
        # Conv weights scattered per pool offset, stored bf16 (f32 accumulation
        # happens in the matmul); biases stay f32.
        "conv1_w": _scatter_pool_weights(conv1_w4).astype(bf16),     # (4,108,6)
        "conv1_b": s * jax.random.normal(ks[1], (1, 6), jnp.float32),
        "conv2_w": _scatter_pool_weights(conv2_w4).astype(bf16),     # (4,216,16)
        "conv2_b": s * jax.random.normal(ks[3], (1, 16), jnp.float32),
        # FC weights zero-padded to 128 output lanes (lane-dense stores),
        # streamed bf16; padded rows/cols are zero so the math is unchanged.
        "fc1_w": pad_to(fc1_w_nhwc, (16 * 13 * 13, 128)).astype(bf16),
        "fc1_b": pad_to(s * jax.random.normal(ks[5], (1, 120), jnp.float32), (1, 128)),
        "fc2_w": pad_to(s * jax.random.normal(ks[6], (120, 84), jnp.float32),
                        (128, 128)).astype(bf16),
        "fc2_b": pad_to(s * jax.random.normal(ks[7], (1, 84), jnp.float32), (1, 128)),
        "fc3_w": pad_to(s * jax.random.normal(ks[8], (84, 15), jnp.float32),
                        (128, 128)).astype(bf16),
        "fc3_b": pad_to(s * jax.random.normal(ks[9], (1, 15), jnp.float32), (1, 128)),
    }


# ---------------------------------------------------------------------------
# Forward pass (mirrors Net.forward)
# ---------------------------------------------------------------------------
@jax.jit
def net_forward(x_nchw, p):
    x = jnp.transpose(x_nchw, (0, 2, 3, 1))                 # NCHW -> NHWC (glue)
    x = conv_relu_pool(x, p["conv1_w"], p["conv1_b"])       # (B, 30, 30, 6)
    x = conv_relu_pool(x, p["conv2_w"], p["conv2_b"])       # (B, 13, 13, 16)
    x = x.reshape(x.shape[0], -1).astype(jnp.bfloat16)      # NHWC flatten (B, 2704)
    return fc_stack(x, p)                                   # (B, 15)


if __name__ == "__main__":
    key = jax.random.PRNGKey(0)
    k_x, k_p = jax.random.split(key)

    # fc1 expects 16*13*13 features -> input spatial size must be 64x64, 3 channels.
    x = jax.random.normal(k_x, (2, 3, 64, 64), jnp.float32)  # NCHW like PyTorch
    params = init_params(k_p)

    out = net_forward(x, params)
    out = jax.block_until_ready(out)
    assert out.shape == (2, 15) and out.dtype == jnp.float32
    print("KERNEL_OK")
</pallas_src>

<mosaic_0001>
module attributes {stable_mosaic.version = 11 : i64} {
  func.func @conv_relu_pool_kernel(%arg0: i32, %arg1: memref<456x108xbf16, #tpu.memory_space<vmem>>, %arg2: memref<4x108x6xbf16, #tpu.memory_space<vmem>>, %arg3: memref<1x6xf32, #tpu.memory_space<vmem>>, %arg4: memref<456x6xf32, #tpu.memory_space<vmem>>) attributes {dimension_semantics = [#tpu.dimension_semantics<parallel>], iteration_bounds = array<i64: 4>, scalar_prefetch = 0 : i64, scratch_operands = 0 : i64, tpu.core_type = #tpu.core_type<tc>, window_params = [{transform_indices = @transform_0, window_bounds = array<i64: 456, 108>}, {pipeline_mode = #tpu.pipeline_mode<synchronous>, transform_indices = @transform_1, window_bounds = array<i64: 4, 108, 6>}, {pipeline_mode = #tpu.pipeline_mode<synchronous>, transform_indices = @transform_2, window_bounds = array<i64: 1, 6>}, {transform_indices = @transform_3, window_bounds = array<i64: 456, 6>}]} {
    %c0 = arith.constant 0 : index
    %c0_0 = arith.constant 0 : index
    %0 = vector.load %arg1[%c0, %c0_0] : memref<456x108xbf16, #tpu.memory_space<vmem>>, vector<456x108xbf16>
    %c0_1 = arith.constant 0 : index
    %c0_2 = arith.constant 0 : index
    %c0_3 = arith.constant 0 : index
    %1 = vector.load %arg2[%c0_1, %c0_2, %c0_3] : memref<4x108x6xbf16, #tpu.memory_space<vmem>>, vector<1x108x6xbf16>
    %2 = vector.shape_cast %1 : vector<1x108x6xbf16> to vector<108x6xbf16>
    %cst = arith.constant dense<0.000000e+00> : vector<456x6xf32>
    %3 = tpu.matmul %0, %2, %cst {dimension_numbers = #tpu.dot_dimension_numbers<[1], [0], [0], [1], [0, 0, 1, 1], [], []>} : vector<456x108xbf16>, vector<108x6xbf16>, vector<456x6xf32> -> vector<456x6xf32>
    %c1 = arith.constant 1 : index
    %c0_4 = arith.constant 0 : index
    %c0_5 = arith.constant 0 : index
    %4 = vector.load %arg2[%c1, %c0_4, %c0_5] : memref<4x108x6xbf16, #tpu.memory_space<vmem>>, vector<1x108x6xbf16>
    %5 = vector.shape_cast %4 : vector<1x108x6xbf16> to vector<108x6xbf16>
    %cst_6 = arith.constant dense<0.000000e+00> : vector<456x6xf32>
    %6 = tpu.matmul %0, %5, %cst_6 {dimension_numbers = #tpu.dot_dimension_numbers<[1], [0], [0], [1], [0, 0, 1, 1], [], []>} : vector<456x108xbf16>, vector<108x6xbf16>, vector<456x6xf32> -> vector<456x6xf32>
    %7 = arith.maximumf %3, %6 : vector<456x6xf32>
    %c2 = arith.constant 2 : index
    %c0_7 = arith.constant 0 : index
    %c0_8 = arith.constant 0 : index
    %8 = vector.load %arg2[%c2, %c0_7, %c0_8] : memref<4x108x6xbf16, #tpu.memory_space<vmem>>, vector<1x108x6xbf16>
    %9 = vector.shape_cast %8 : vector<1x108x6xbf16> to vector<108x6xbf16>
    %cst_9 = arith.constant dense<0.000000e+00> : vector<456x6xf32>
    %10 = tpu.matmul %0, %9, %cst_9 {dimension_numbers = #tpu.dot_dimension_numbers<[1], [0], [0], [1], [0, 0, 1, 1], [], []>} : vector<456x108xbf16>, vector<108x6xbf16>, vector<456x6xf32> -> vector<456x6xf32>
    %c3 = arith.constant 3 : index
    %c0_10 = arith.constant 0 : index
    %c0_11 = arith.constant 0 : index
    %11 = vector.load %arg2[%c3, %c0_10, %c0_11] : memref<4x108x6xbf16, #tpu.memory_space<vmem>>, vector<1x108x6xbf16>
    %12 = vector.shape_cast %11 : vector<1x108x6xbf16> to vector<108x6xbf16>
    %cst_12 = arith.constant dense<0.000000e+00> : vector<456x6xf32>
    %13 = tpu.matmul %0, %12, %cst_12 {dimension_numbers = #tpu.dot_dimension_numbers<[1], [0], [0], [1], [0, 0, 1, 1], [], []>} : vector<456x108xbf16>, vector<108x6xbf16>, vector<456x6xf32> -> vector<456x6xf32>
    %14 = arith.maximumf %10, %13 : vector<456x6xf32>
    %15 = arith.maximumf %7, %14 : vector<456x6xf32>
    %c0_13 = arith.constant 0 : index
    %c0_14 = arith.constant 0 : index
    %16 = vector.load %arg3[%c0_13, %c0_14] : memref<1x6xf32, #tpu.memory_space<vmem>>, vector<1x6xf32>
    %17 = vector.broadcast %16 : vector<1x6xf32> to vector<456x6xf32>
    %18 = arith.addf %15, %17 : vector<456x6xf32>
    %cst_15 = arith.constant 0.000000e+00 : f32
    %19 = vector.broadcast %cst_15 : f32 to vector<456x6xf32>
    %20 = arith.maximumf %18, %19 : vector<456x6xf32>
    %c0_16 = arith.constant 0 : index
    %c0_17 = arith.constant 0 : index
    %21 = vector.load %arg4[%c0_16, %c0_17] : memref<456x6xf32, #tpu.memory_space<vmem>>, vector<456x6xf32>
    tpu.vector_store %arg4[%c0_16, %c0_17], %20 {strides = array<i32>} : memref<456x6xf32, #tpu.memory_space<vmem>>, vector<456x6xf32>,
    return
  }
  func.func @transform_0(%arg0: i32) -> (i32, i32) {
    %c0_i32 = arith.constant 0 : i32
    %c0_i32_0 = arith.constant 0 : i32
    return %arg0, %c0_i32 : i32, i32
  }
  func.func @transform_1(%arg0: i32) -> (i32, i32, i32) {
    %c0_i32 = arith.constant 0 : i32
    %c0_i32_0 = arith.constant 0 : i32
    %c0_i32_1 = arith.constant 0 : i32
    %c0_i32_2 = arith.constant 0 : i32
    return %c0_i32, %c0_i32_0, %c0_i32_1 : i32, i32, i32
  }
  func.func @transform_2(%arg0: i32) -> (i32, i32) {
    %c0_i32 = arith.constant 0 : i32
    %c0_i32_0 = arith.constant 0 : i32
    %c0_i32_1 = arith.constant 0 : i32
    return %c0_i32, %c0_i32_0 : i32, i32
  }
  func.func @transform_3(%arg0: i32) -> (i32, i32) {
    %c0_i32 = arith.constant 0 : i32
    %c0_i32_0 = arith.constant 0 : i32
    return %arg0, %c0_i32 : i32, i32
  }
}

module attributes {stable_mosaic.version = 11 : i64} {
  func.func @conv_relu_pool_kernel(%arg0: i32, %arg1: memref<344x216xbf16, #tpu.memory_space<vmem>>, %arg2: memref<4x216x16xbf16, #tpu.memory_space<vmem>>, %arg3: memref<1x16xf32, #tpu.memory_space<vmem>>, %arg4: memref<344x16xf32, #tpu.memory_space<vmem>>) attributes {dimension_semantics = [#tpu.dimension_semantics<parallel>], iteration_bounds = array<i64: 1>, scalar_prefetch = 0 : i64, scratch_operands = 0 : i64, tpu.core_type = #tpu.core_type<tc>, window_params = [{transform_indices = @transform_0, window_bounds = array<i64: 344, 216>}, {pipeline_mode = #tpu.pipeline_mode<synchronous>, transform_indices = @transform_1, window_bounds = array<i64: 4, 216, 16>}, {pipeline_mode = #tpu.pipeline_mode<synchronous>, transform_indices = @transform_2, window_bounds = array<i64: 1, 16>}, {transform_indices = @transform_3, window_bounds = array<i64: 344, 16>}]} {
    %c0 = arith.constant 0 : index
    %c0_0 = arith.constant 0 : index
    %0 = vector.load %arg1[%c0, %c0_0] : memref<344x216xbf16, #tpu.memory_space<vmem>>, vector<344x216xbf16>
    %c0_1 = arith.constant 0 : index
    %c0_2 = arith.constant 0 : index
    %c0_3 = arith.constant 0 : index
    %1 = vector.load %arg2[%c0_1, %c0_2, %c0_3] : memref<4x216x16xbf16, #tpu.memory_space<vmem>>, vector<1x216x16xbf16>
    %2 = vector.shape_cast %1 : vector<1x216x16xbf16> to vector<216x16xbf16>
    %cst = arith.constant dense<0.000000e+00> : vector<344x16xf32>
    %3 = tpu.matmul %0, %2, %cst {dimension_numbers = #tpu.dot_dimension_numbers<[1], [0], [0], [1], [0, 0, 1, 1], [], []>} : vector<344x216xbf16>, vector<216x16xbf16>, vector<344x16xf32> -> vector<344x16xf32>
    %c1 = arith.constant 1 : index
    %c0_4 = arith.constant 0 : index
    %c0_5 = arith.constant 0 : index
    %4 = vector.load %arg2[%c1, %c0_4, %c0_5] : memref<4x216x16xbf16, #tpu.memory_space<vmem>>, vector<1x216x16xbf16>
    %5 = vector.shape_cast %4 : vector<1x216x16xbf16> to vector<216x16xbf16>
    %cst_6 = arith.constant dense<0.000000e+00> : vector<344x16xf32>
    %6 = tpu.matmul %0, %5, %cst_6 {dimension_numbers = #tpu.dot_dimension_numbers<[1], [0], [0], [1], [0, 0, 1, 1], [], []>} : vector<344x216xbf16>, vector<216x16xbf16>, vector<344x16xf32> -> vector<344x16xf32>
    %7 = arith.maximumf %3, %6 : vector<344x16xf32>
    %c2 = arith.constant 2 : index
    %c0_7 = arith.constant 0 : index
    %c0_8 = arith.constant 0 : index
    %8 = vector.load %arg2[%c2, %c0_7, %c0_8] : memref<4x216x16xbf16, #tpu.memory_space<vmem>>, vector<1x216x16xbf16>
    %9 = vector.shape_cast %8 : vector<1x216x16xbf16> to vector<216x16xbf16>
    %cst_9 = arith.constant dense<0.000000e+00> : vector<344x16xf32>
    %10 = tpu.matmul %0, %9, %cst_9 {dimension_numbers = #tpu.dot_dimension_numbers<[1], [0], [0], [1], [0, 0, 1, 1], [], []>} : vector<344x216xbf16>, vector<216x16xbf16>, vector<344x16xf32> -> vector<344x16xf32>
    %c3 = arith.constant 3 : index
    %c0_10 = arith.constant 0 : index
    %c0_11 = arith.constant 0 : index
    %11 = vector.load %arg2[%c3, %c0_10, %c0_11] : memref<4x216x16xbf16, #tpu.memory_space<vmem>>, vector<1x216x16xbf16>
    %12 = vector.shape_cast %11 : vector<1x216x16xbf16> to vector<216x16xbf16>
    %cst_12 = arith.constant dense<0.000000e+00> : vector<344x16xf32>
    %13 = tpu.matmul %0, %12, %cst_12 {dimension_numbers = #tpu.dot_dimension_numbers<[1], [0], [0], [1], [0, 0, 1, 1], [], []>} : vector<344x216xbf16>, vector<216x16xbf16>, vector<344x16xf32> -> vector<344x16xf32>
    %14 = arith.maximumf %10, %13 : vector<344x16xf32>
    %15 = arith.maximumf %7, %14 : vector<344x16xf32>
    %c0_13 = arith.constant 0 : index
    %c0_14 = arith.constant 0 : index
    %16 = vector.load %arg3[%c0_13, %c0_14] : memref<1x16xf32, #tpu.memory_space<vmem>>, vector<1x16xf32>
    %17 = vector.broadcast %16 : vector<1x16xf32> to vector<344x16xf32>
    %18 = arith.addf %15, %17 : vector<344x16xf32>
    %cst_15 = arith.constant 0.000000e+00 : f32
    %19 = vector.broadcast %cst_15 : f32 to vector<344x16xf32>
    %20 = arith.maximumf %18, %19 : vector<344x16xf32>
    %c0_16 = arith.constant 0 : index
    %c0_17 = arith.constant 0 : index
    %21 = vector.load %arg4[%c0_16, %c0_17] : memref<344x16xf32, #tpu.memory_space<vmem>>, vector<344x16xf32>
    tpu.vector_store %arg4[%c0_16, %c0_17], %20 {strides = array<i32>} : memref<344x16xf32, #tpu.memory_space<vmem>>, vector<344x16xf32>,
    return
  }
  func.func @transform_0(%arg0: i32) -> (i32, i32) {
    %c0_i32 = arith.constant 0 : i32
    %c0_i32_0 = arith.constant 0 : i32
    return %arg0, %c0_i32 : i32, i32
  }
  func.func @transform_1(%arg0: i32) -> (i32, i32, i32) {
    %c0_i32 = arith.constant 0 : i32
    %c0_i32_0 = arith.constant 0 : i32
    %c0_i32_1 = arith.constant 0 : i32
    %c0_i32_2 = arith.constant 0 : i32
    return %c0_i32, %c0_i32_0, %c0_i32_1 : i32, i32, i32
  }
  func.func @transform_2(%arg0: i32) -> (i32, i32) {
    %c0_i32 = arith.constant 0 : i32
    %c0_i32_0 = arith.constant 0 : i32
    %c0_i32_1 = arith.constant 0 : i32
    return %c0_i32, %c0_i32_0 : i32, i32
  }
  func.func @transform_3(%arg0: i32) -> (i32, i32) {
    %c0_i32 = arith.constant 0 : i32
    %c0_i32_0 = arith.constant 0 : i32
    return %arg0, %c0_i32 : i32, i32
  }
}

module attributes {stable_mosaic.version = 11 : i64} {
  func.func @fc_stack_kernel(%arg0: memref<2x2704xbf16, #tpu.memory_space<vmem>>, %arg1: memref<2704x128xbf16, #tpu.memory_space<vmem>>, %arg2: memref<1x128xf32, #tpu.memory_space<vmem>>, %arg3: memref<128x128xbf16, #tpu.memory_space<vmem>>, %arg4: memref<1x128xf32, #tpu.memory_space<vmem>>, %arg5: memref<128x128xbf16, #tpu.memory_space<vmem>>, %arg6: memref<1x128xf32, #tpu.memory_space<vmem>>, %arg7: memref<2x128xf32, #tpu.memory_space<vmem>>) attributes {dimension_semantics = [], scalar_prefetch = 0 : i64, scratch_operands = 0 : i64, tpu.core_type = #tpu.core_type<tc>} {
    %c0 = arith.constant 0 : index
    %c0_0 = arith.constant 0 : index
    %0 = vector.load %arg0[%c0, %c0_0] : memref<2x2704xbf16, #tpu.memory_space<vmem>>, vector<2x2704xbf16>
    %c0_1 = arith.constant 0 : index
    %c0_2 = arith.constant 0 : index
    %1 = vector.load %arg1[%c0_1, %c0_2] : memref<2704x128xbf16, #tpu.memory_space<vmem>>, vector<2704x128xbf16>
    %cst = arith.constant dense<0.000000e+00> : vector<2x128xf32>
    %2 = tpu.matmul %0, %1, %cst {dimension_numbers = #tpu.dot_dimension_numbers<[1], [0], [0], [1], [0, 0, 1, 1], [], []>} : vector<2x2704xbf16>, vector<2704x128xbf16>, vector<2x128xf32> -> vector<2x128xf32>
    %c0_3 = arith.constant 0 : index
    %c0_4 = arith.constant 0 : index
    %3 = vector.load %arg2[%c0_3, %c0_4] : memref<1x128xf32, #tpu.memory_space<vmem>>, vector<1x128xf32>
    %4 = vector.broadcast %3 : vector<1x128xf32> to vector<2x128xf32>
    %5 = arith.addf %2, %4 : vector<2x128xf32>
    %cst_5 = arith.constant 0.000000e+00 : f32
    %6 = vector.broadcast %cst_5 : f32 to vector<2x128xf32>
    %7 = arith.maximumf %5, %6 : vector<2x128xf32>
    %8 = arith.truncf %7 : vector<2x128xf32> to vector<2x128xbf16>
    %c0_6 = arith.constant 0 : index
    %c0_7 = arith.constant 0 : index
    %9 = vector.load %arg3[%c0_6, %c0_7] : memref<128x128xbf16, #tpu.memory_space<vmem>>, vector<128x128xbf16>
    %cst_8 = arith.constant dense<0.000000e+00> : vector<2x128xf32>
    %10 = tpu.matmul %8, %9, %cst_8 {dimension_numbers = #tpu.dot_dimension_numbers<[1], [0], [0], [1], [0, 0, 1, 1], [], []>} : vector<2x128xbf16>, vector<128x128xbf16>, vector<2x128xf32> -> vector<2x128xf32>
    %c0_9 = arith.constant 0 : index
    %c0_10 = arith.constant 0 : index
    %11 = vector.load %arg4[%c0_9, %c0_10] : memref<1x128xf32, #tpu.memory_space<vmem>>, vector<1x128xf32>
    %12 = vector.broadcast %11 : vector<1x128xf32> to vector<2x128xf32>
    %13 = arith.addf %10, %12 : vector<2x128xf32>
    %cst_11 = arith.constant 0.000000e+00 : f32
    %14 = vector.broadcast %cst_11 : f32 to vector<2x128xf32>
    %15 = arith.maximumf %13, %14 : vector<2x128xf32>
    %16 = arith.truncf %15 : vector<2x128xf32> to vector<2x128xbf16>
    %c0_12 = arith.constant 0 : index
    %c0_13 = arith.constant 0 : index
    %17 = vector.load %arg5[%c0_12, %c0_13] : memref<128x128xbf16, #tpu.memory_space<vmem>>, vector<128x128xbf16>
    %cst_14 = arith.constant dense<0.000000e+00> : vector<2x128xf32>
    %18 = tpu.matmul %16, %17, %cst_14 {dimension_numbers = #tpu.dot_dimension_numbers<[1], [0], [0], [1], [0, 0, 1, 1], [], []>} : vector<2x128xbf16>, vector<128x128xbf16>, vector<2x128xf32> -> vector<2x128xf32>
    %c0_15 = arith.constant 0 : index
    %c0_16 = arith.constant 0 : index
    %19 = vector.load %arg6[%c0_15, %c0_16] : memref<1x128xf32, #tpu.memory_space<vmem>>, vector<1x128xf32>
    %20 = vector.broadcast %19 : vector<1x128xf32> to vector<2x128xf32>
    %21 = arith.addf %18, %20 : vector<2x128xf32>
    %c0_17 = arith.constant 0 : index
    %c0_18 = arith.constant 0 : index
    %22 = vector.load %arg7[%c0_17, %c0_18] : memref<2x128xf32, #tpu.memory_space<vmem>>, vector<2x128xf32>
    tpu.vector_store %arg7[%c0_17, %c0_18], %21 {strides = array<i32>} : memref<2x128xf32, #tpu.memory_space<vmem>>, vector<2x128xf32>,
    return
  }
}

</mosaic_0001>

<bundles_post_ra>
// kernel: net_forward.3
= control target key start
LH: loop header
LB: loop body
LE: loop exit
PB: predicated region body
PF: predicated region fallthrough
CT: control target
= control target key end

     0   :  { %s3148_s12 = smov 0   ;;  %s4531_s0 = inlined_call_operand.vmem [shape: bf16[1824,108], index: 0, kind: input, shape index: {}]   ;;  %s4532_s1 = inlined_call_operand.vmem [shape: bf16[4,108,6], index: 1, kind: input, shape index: {}]   ;;  %s4533_s2 = inlined_call_operand.vmem [shape: f32[1,6], index: 2, kind: input, shape index: {}]   ;;  %s4534_s3 = inlined_call_operand.vmem [shape: f32[1824,6], index: 3, kind: output, shape index: {}]  }
   0x1 LB: > { %s2161_s13 = sadd.s32 4294967295, %s3124_s12   ;;  %p2165_p0 = scmp.ge.s32.totalorder %s3124_s12, 1  ;;  %s3124_s12 = sphi %s3148_s12, %s13_s12  }
   0x2   : > { %p138_p1 = scmp.lt.s32.totalorder %s3124_s12, 5 }
   0x4   : > { %p139_p2 = pnand %p2165_p0, %p138_p1 }
   0x6   : > { %142 = sbr.rel (%p139_p2) target bundleno = 719 (0x2cf), region = 32 }
   0xd   : > { %v3060_v0 = vld [vmem:[%s4532_s1] sm:$0xff]   ;;  %v4600_v1 = vmov 0.0   ;;  %v3061_v2 = vld [vmem:[%s4532_s1 + $0x38] sm:$0xff]   ;;  %v3062_v3 = vld [vmem:[%s4532_s1 + $0x8] sm:$0xff]   ;;  %s162_s22 = smul.u32 57, %s2161_s13  ;;  %vm3127_vm0 = vmmov 0  }
   0xe   : > { %2530 = vmatprep.subr.bf16.mxu0 %v4600_v1  ;;  %2660 = vmatprep.subr.bf16.mxu1 %v4600_v1  ;;  %v3063_v4 = vld [vmem:[%s4532_s1 + $0x40] sm:$0xff]   ;;  %v3064_v5 = vld [vmem:[%s4532_s1 + $0x10] sm:$0xff]   ;;  %v3065_v6 = vld [vmem:[%s4532_s1 + $0x48] sm:$0xff]   ;;  %vm518_vm1 = vcmask 1045504   ;;  %vm430_vm2 = vcmask 883712   ;;  %vm2047_vm3 = vcmask 48128  }
   0xf   : > { %2531 = vmatpush3.bf16.msra.mxu0 %v3060_v0  ;;  %2661 = vmatpush3.bf16.msra.mxu1 %v3061_v2  ;;  %p163_p3 = scmp.lt.s32.totalorder %s162_s22, 227  ;;  %v3066_v7 = vld [vmem:[%s4532_s1 + $0x18] sm:$0xff]   ;;  %v3067_v8 = vld [vmem:[%s4532_s1 + $0x50] sm:$0xff]   ;;  %v3068_v9 = vld [vmem:[%s4532_s1 + $0x20] sm:$0xff]  }
  0x10   : > { %2532 = vmatprep.subr.bf16.mxu0 %v4600_v1  ;;  %2662 = vmatprep.subr.bf16.mxu1 %v4600_v1  ;;  %v3069_v10 = vld [vmem:[%s4532_s1 + $0x58] sm:$0xff]   ;;  %v3070_v11 = vld [vmem:[%s4532_s1 + $0x28] sm:$0xff]   ;;  %v3071_v12 = vld [vmem:[%s4532_s1 + $0x60] sm:$0xff]  }
  0x11   : > { %2544 = vmatprep.mubr.msk.bf16.mxu0 %vm3127_vm0, %v4600_v1  ;;  %2674 = vmatprep.mubr.msk.bf16.mxu1 %vm3127_vm0, %v4600_v1  ;;  %s4791_s22 = smov (!%p163_p3, %s162_s22), 227  ;;  %v3072_v13 = vld [vmem:[%s4532_s1 + $0x30] sm:$0x3f]   ;;  %v3073_v14 = vld [vmem:[%s4532_s1 + $0x68] sm:$0x3f]   ;;  %v3081_v20 = vld [vmem:[%s4532_s1 + $0x78] sm:$0xff]  }
  0x12   : > { %s2166_s29 = sshll.u32 %s4791_s22, 2  ;;  %v520_v15 = vsel %vm518_vm1, %v3072_v13, 0  ;;  %v843_v16 = vsel %vm518_vm1, %v3073_v14, 0  ;;  %v3075_v18 = vld [vmem:[%s4532_s1 + $0x70] sm:$0xff]   ;;  %v3076_v19 = vld [vmem:[%s4532_s1 + $0xa8] sm:$0xff]   ;;  %v3087_v23 = vld [vmem:[%s4532_s1 + $0x80] sm:$0xff]  }
  0x13   : > { %2533 = vmatpush3.bf16.msra.mxu0 %v3062_v3  ;;  %2663 = vmatpush3.bf16.msra.mxu1 %v3063_v4  ;;  %s3198_s7 = scalar_lea.vmem %s4531_s0, %s2166_s29  ;;  %v3082_v21 = vld [vmem:[%s4532_s1 + $0xb0] sm:$0xff]   ;;  %v3088_v24 = vld [vmem:[%s4532_s1 + $0xb8] sm:$0xff]   ;;  %v3093_v26 = vld [vmem:[%s4532_s1 + $0x88] sm:$0xff]   ;;  %s2167_s27 = sshll.u32 %s4791_s22, 3 }
  0x14   : > { %2534 = vmatprep.subr.bf16.mxu0 %v4600_v1  ;;  %2664 = vmatprep.subr.bf16.mxu1 %v4600_v1  ;;  %v3227_v17 = vld [vmem:[%s3198_s7] sm:$0xff]   ;;  %v3253_v22 = vld [vmem:[%s3198_s7 + $0x8] sm:$0xff]   ;;  %v3273_v25 = vld [vmem:[%s3198_s7 + $0x10] sm:$0xff]   ;;  %s4183_s29 = scalar_lea.vmem %s4534_s3, %s2167_s27 }
  0x15   : > { %v3094_v27 = vld [vmem:[%s4532_s1 + $0xc0] sm:$0xff]   ;;  %v3099_v28 = vld [vmem:[%s4532_s1 + $0x90] sm:$0xff]   ;;  %v3100_v29 = vld [vmem:[%s4532_s1 + $0xc8] sm:$0xff]  }
  0x16   : > { %v3300_v30 = vld [vmem:[%s3198_s7 + $0x18] sm:$0xff]   ;;  %v3313_v31 = vld [vmem:[%s3198_s7 + $0x20] sm:$0xff]   ;;  %v3106_v33 = vld [vmem:[%s4532_s1 + $0xd0] sm:$0xff]  }
  0x17   : > { %2535 = vmatpush3.bf16.msra.mxu0 %v3064_v5  ;;  %2665 = vmatpush3.bf16.msra.mxu1 %v3065_v6  ;;  %v3105_v32 = vld [vmem:[%s4532_s1 + $0x98] sm:$0xff]   ;;  %v3330_v34 = vld [vmem:[%s3198_s7 + $0x28] sm:$0xff]   ;;  %v3343_v35 = vld [vmem:[%s3198_s7 + $0x30] sm:$0xff]  }
  0x18   : > { %2536 = vmatprep.subr.bf16.mxu0 %v4600_v1  ;;  %2666 = vmatprep.subr.bf16.mxu1 %v4600_v1  ;;  %v3354_v36 = vld [vmem:[%s3198_s7 + $0x38] sm:$0xff]   ;;  %v3365_v37 = vld [vmem:[%s3198_s7 + $0x40] sm:$0xff]   ;;  %v3376_v38 = vld [vmem:[%s3198_s7 + $0x48] sm:$0xff]  }
  0x19   : > { %v3112_v39 = vld [vmem:[%s4532_s1 + $0xa0] sm:$0x3f]   ;;  %v3113_v40 = vld [vmem:[%s4532_s1 + $0xd8] sm:$0x3f]   ;;  %v3395_v43 = vld [vmem:[%s3198_s7 + $0x50] sm:$0xff]  }
  0x1a   : > { %v1223_v41 = vsel %vm518_vm1, %v3112_v39, 0  ;;  %v1546_v42 = vsel %vm518_vm1, %v3113_v40, 0  ;;  %v3406_v44 = vld [vmem:[%s3198_s7 + $0x58] sm:$0xff]   ;;  %v3417_v45 = vld [vmem:[%s3198_s7 + $0x60] sm:$0xff]   ;;  %v3428_v46 = vld [vmem:[%s3198_s7 + $0x68] sm:$0xff]  }
  0x1b   : > { %2537 = vmatpush3.bf16.msra.mxu0 %v3066_v7  ;;  %2667 = vmatpush3.bf16.msra.mxu1 %v3067_v8  ;;  %v3439_v47 = vld [vmem:[%s3198_s7 + $0x70] sm:$0xff]   ;;  %v3450_v48 = vld [vmem:[%s3198_s7 + $0x78] sm:$0xff]   ;;  %v3461_v49 = vld [vmem:[%s3198_s7 + $0x80] sm:$0xff]  }
  0x1c   : > { %2538 = vmatprep.subr.bf16.mxu0 %v4600_v1  ;;  %2668 = vmatprep.subr.bf16.mxu1 %v4600_v1  ;;  %v3472_v50 = vld [vmem:[%s3198_s7 + $0x88] sm:$0xff]   ;;  %v3483_v51 = vld [vmem:[%s3198_s7 + $0x90] sm:$0xff]   ;;  %v3494_v52 = vld [vmem:[%s3198_s7 + $0x98] sm:$0xff]  }
  0x1d   : > { %v3505_v53 = vld [vmem:[%s3198_s7 + $0xa0] sm:$0xff]   ;;  %v3516_v54 = vld [vmem:[%s3198_s7 + $0xa8] sm:$0xff]   ;;  %v3527_v55 = vld [vmem:[%s3198_s7 + $0xb0] sm:$0xff]  }
  0x1e   : > { %v3538_v56 = vld [vmem:[%s3198_s7 + $0xb8] sm:$0xff]   ;;  %v3549_v57 = vld [vmem:[%s3198_s7 + $0xc0] sm:$0xff]   ;;  %v3560_v58 = vld [vmem:[%s3198_s7 + $0xc8] sm:$0xff]  }
  0x1f   : > { %2539 = vmatpush3.bf16.msra.mxu0 %v3068_v9  ;;  %2669 = vmatpush3.bf16.msra.mxu1 %v3069_v10  ;;  %v3571_v59 = vld [vmem:[%s3198_s7 + $0xd0] sm:$0xff]   ;;  %v3586_v63 = vld [vmem:[%s3198_s7 + $0xd8] sm:$0xff]  }
  0x20   : > { %2540 = vmatprep.subr.bf16.mxu0 %v4600_v1  ;;  %2670 = vmatprep.subr.bf16.mxu1 %v4600_v1 }
  0x23   : > { %2541 = vmatpush3.bf16.msra.mxu0 %v3070_v11  ;;  %2671 = vmatpush3.bf16.msra.mxu1 %v3071_v12  ;;  %v3609_v11 = vld [vmem:[%s3198_s7 + $0xe0] ss:$0 sps:$4 sm:$0xff]  }
  0x24   : > { %2542 = vmatprep.subr.bf16.mxu0 %v4600_v1  ;;  %2672 = vmatprep.subr.bf16.mxu1 %v4600_v1 }
  0x27   : > { %2543 = vmatpush3.bf16.msra.mxu0 %v520_v15  ;;  %2673 = vmatpush3.bf16.msra.mxu1 %v843_v16 }
  0x28   : > { %2790 = vmatprep.subr.bf16.mxu0 %v4600_v1  ;;  %2920 = vmatprep.subr.bf16.mxu1 %v4600_v1 }
  0x2a   : > { %2545 = vmatmul.mubr.msk.bf16.vlgmr.msra.gmra.mrb[0].mxu0 %vm430_vm2, %v3227_v17  ;;  %2675 = vmatmul.mubr.msk.bf16.vlgmr.msra.gmra.mrb[0].mxu1 %vm430_vm2, %v3227_v17 }
  0x2b   : > { %2791 = vmatpush3.bf16.msra.mxu0 %v3075_v18  ;;  %2921 = vmatpush3.bf16.msra.mxu1 %v3076_v19 }
  0x2c   : > { %2548 = vmatprep.mubr.msk.bf16.mxu0 %vm3127_vm0, %v4600_v1  ;;  %2678 = vmatprep.mubr.msk.bf16.mxu1 %vm3127_vm0, %v4600_v1 }
  0x2d   : > { %2792 = vmatprep.subr.bf16.mxu0 %v4600_v1  ;;  %2922 = vmatprep.subr.bf16.mxu1 %v4600_v1 }
  0x2f   : > { %2793 = vmatpush3.bf16.msra.mxu0 %v3081_v20  ;;  %2923 = vmatpush3.bf16.msra.mxu1 %v3082_v21 }
  0x30   : > { %2794 = vmatprep.subr.bf16.mxu0 %v4600_v1  ;;  %2924 = vmatprep.subr.bf16.mxu1 %v4600_v1 }
  0x32   : > { %2549 = vmatmul.mubr.msk.bf16.gmra.mrb[4].mxu0 %vm430_vm2, %v3253_v22  ;;  %2679 = vmatmul.mubr.msk.bf16.gmra.mrb[4].mxu1 %vm430_vm2, %v3253_v22 }
  0x33   : > { %2552 = vmatprep.mubr.msk.bf16.mxu0 %vm3127_vm0, %v4600_v1  ;;  %2682 = vmatprep.mubr.msk.bf16.mxu1 %vm3127_vm0, %v4600_v1 }
  0x34   : > { %2795 = vmatpush3.bf16.msra.mxu0 %v3087_v23  ;;  %2925 = vmatpush3.bf16.msra.mxu1 %v3088_v24 }
  0x35   : > { %2796 = vmatprep.subr.bf16.mxu0 %v4600_v1  ;;  %2926 = vmatprep.subr.bf16.mxu1 %v4600_v1 }
  0x38   : > { %2797 = vmatpush3.bf16.msra.mxu0 %v3093_v26  ;;  %2927 = vmatpush3.bf16.msra.mxu1 %v3094_v27 }
  0x39   : > { %2798 = vmatprep.subr.bf16.mxu0 %v4600_v1  ;;  %2928 = vmatprep.subr.bf16.mxu1 %v4600_v1 }
  0x3a   : > { %2553 = vmatmul.mubr.msk.bf16.gmra.mrb[8].mxu0 %vm430_vm2, %v3273_v25  ;;  %2683 = vmatmul.mubr.msk.bf16.gmra.mrb[8].mxu1 %vm430_vm2, %v3273_v25 }
  0x3b   : > { %2556 = vmatprep.mubr.msk.bf16.mxu0 %vm3127_vm0, %v4600_v1  ;;  %2686 = vmatprep.mubr.msk.bf16.mxu1 %vm3127_vm0, %v4600_v1 }
  0x3c   : > { %2799 = vmatpush3.bf16.msra.mxu0 %v3099_v28  ;;  %2929 = vmatpush3.bf16.msra.mxu1 %v3100_v29 }
  0x3d   : > { %2800 = vmatprep.subr.bf16.mxu0 %v4600_v1  ;;  %2930 = vmatprep.subr.bf16.mxu1 %v4600_v1 }
  0x40   : > { %2801 = vmatpush3.bf16.msra.mxu0 %v3105_v32  ;;  %2931 = vmatpush3.bf16.msra.mxu1 %v3106_v33 }
  0x41   : > { %2802 = vmatprep.subr.bf16.mxu0 %v4600_v1  ;;  %2932 = vmatprep.subr.bf16.mxu1 %v4600_v1 }
  0x42   : > { %2557 = vmatmul.mubr.msk.bf16.gmra.mrb[12].mxu0 %vm430_vm2, %v3300_v30  ;;  %2687 = vmatmul.mubr.msk.bf16.gmra.mrb[12].mxu1 %vm430_vm2, %v3300_v30 }
  0x43   : > { %2560 = vmatprep.mubr.msk.bf16.mxu0 %vm3127_vm0, %v4600_v1  ;;  %2690 = vmatprep.mubr.msk.bf16.mxu1 %vm3127_vm0, %v4600_v1 }
  0x44   : > { %2803 = vmatpush3.bf16.msra.mxu0 %v1223_v41  ;;  %2933 = vmatpush3.bf16.msra.mxu1 %v1546_v42 }
  0x4a   : > { %2561 = vmatmul.mubr.msk.bf16.gmra.mrb[16].mxu0 %vm430_vm2, %v3313_v31  ;;  %2691 = vmatmul.mubr.msk.bf16.gmra.mrb[16].mxu1 %vm430_vm2, %v3313_v31 }
  0x4b   : > { %2564 = vmatprep.mubr.msk.bf16.mxu0 %vm3127_vm0, %v4600_v1  ;;  %2694 = vmatprep.mubr.msk.bf16.mxu1 %vm3127_vm0, %v4600_v1 }
  0x52   : > { %2565 = vmatmul.mubr.msk.bf16.gmra.mrb[20].mxu0 %vm430_vm2, %v3330_v34  ;;  %2695 = vmatmul.mubr.msk.bf16.gmra.mrb[20].mxu1 %vm430_vm2, %v3330_v34 }
  0x53   : > { %2568 = vmatprep.mubr.msk.bf16.mxu0 %vm3127_vm0, %v4600_v1  ;;  %2698 = vmatprep.mubr.msk.bf16.mxu1 %vm3127_vm0, %v4600_v1 }
  0x5a   : > { %2569 = vmatmul.mubr.msk.bf16.gmra.mrb[24].mxu0 %vm430_vm2, %v3343_v35  ;;  %2699 = vmatmul.mubr.msk.bf16.gmra.mrb[24].mxu1 %vm430_vm2, %v3343_v35 }
  0x5b   : > { %2572 = vmatprep.mubr.msk.bf16.mxu0 %vm3127_vm0, %v4600_v1  ;;  %2702 = vmatprep.mubr.msk.bf16.mxu1 %vm3127_vm0, %v4600_v1 }
  0x62   : > { %2573 = vmatmul.mubr.msk.bf16.gmra.mrb[28].mxu0 %vm430_vm2, %v3354_v36  ;;  %2703 = vmatmul.mubr.msk.bf16.gmra.mrb[28].mxu1 %vm430_vm2, %v3354_v36 }
  0x63   : > { %2576 = vmatprep.mubr.msk.bf16.mxu0 %vm3127_vm0, %v4600_v1  ;;  %2706 = vmatprep.mubr.msk.bf16.mxu1 %vm3127_vm0, %v4600_v1 }
  0x6a   : > { %2577 = vmatmul.mubr.msk.bf16.gmra.mrb[32].mxu0 %vm430_vm2, %v3365_v37  ;;  %2707 = vmatmul.mubr.msk.bf16.gmra.mrb[32].mxu1 %vm430_vm2, %v3365_v37 }
  0x6b   : > { %2580 = vmatprep.mubr.msk.bf16.mxu0 %vm3127_vm0, %v4600_v1  ;;  %2710 = vmatprep.mubr.msk.bf16.mxu1 %vm3127_vm0, %v4600_v1 }
  0x72   : > { %2581 = vmatmul.mubr.msk.bf16.gmra.mrb[36].mxu0 %vm430_vm2, %v3376_v38  ;;  %2711 = vmatmul.mubr.msk.bf16.gmra.mrb[36].mxu1 %vm430_vm2, %v3376_v38 }
  0x73   : > { %2584 = vmatprep.mubr.msk.bf16.mxu0 %vm3127_vm0, %v4600_v1  ;;  %2714 = vmatprep.mubr.msk.bf16.mxu1 %vm3127_vm0, %v4600_v1 }
  0x7a   : > { %2585 = vmatmul.mubr.msk.bf16.gmra.mrb[40].mxu0 %vm430_vm2, %v3395_v43  ;;  %2715 = vmatmul.mubr.msk.bf16.gmra.mrb[40].mxu1 %vm430_vm2, %v3395_v43 }
  0x7b   : > { %2588 = vmatprep.mubr.msk.bf16.mxu0 %vm3127_vm0, %v4600_v1  ;;  %2718 = vmatprep.mubr.msk.bf16.mxu1 %vm3127_vm0, %v4600_v1 }
  0x82   : > { %2589 = vmatmul.mubr.msk.bf16.gmra.mrb[44].mxu0 %vm430_vm2, %v3406_v44  ;;  %2719 = vmatmul.mubr.msk.bf16.gmra.mrb[44].mxu1 %vm430_vm2, %v3406_v44 }
  0x83   : > { %2592 = vmatprep.mubr.msk.bf16.mxu0 %vm3127_vm0, %v4600_v1  ;;  %2722 = vmatprep.mubr.msk.bf16.mxu1 %vm3127_vm0, %v4600_v1 }
  0x8a   : > { %2593 = vmatmul.mubr.msk.bf16.gmra.mrb[48].mxu0 %vm430_vm2, %v3417_v45  ;;  %2723 = vmatmul.mubr.msk.bf16.gmra.mrb[48].mxu1 %vm430_vm2, %v3417_v45 }
  0x8b   : > { %2596 = vmatprep.mubr.msk.bf16.mxu0 %vm3127_vm0, %v4600_v1  ;;  %2726 = vmatprep.mubr.msk.bf16.mxu1 %vm3127_vm0, %v4600_v1 }
  0x92   : > { %2597 = vmatmul.mubr.msk.bf16.gmra.mrb[52].mxu0 %vm430_vm2, %v3428_v46  ;;  %2727 = vmatmul.mubr.msk.bf16.gmra.mrb[52].mxu1 %vm430_vm2, %v3428_v46 }
  0x93   : > { %2600 = vmatprep.mubr.msk.bf16.mxu0 %vm3127_vm0, %v4600_v1  ;;  %2730 = vmatprep.mubr.msk.bf16.mxu1 %vm3127_vm0, %v4600_v1 }
  0x9a   : > { %2601 = vmatmul.mubr.msk.bf16.gmra.mrb[56].mxu0 %vm430_vm2, %v3439_v47  ;;  %2731 = vmatmul.mubr.msk.bf16.gmra.mrb[56].mxu1 %vm430_vm2, %v3439_v47 }
  0x9b   : > { %2604 = vmatprep.mubr.msk.bf16.mxu0 %vm3127_vm0, %v4600_v1  ;;  %2734 = vmatprep.mubr.msk.bf16.mxu1 %vm3127_vm0, %v4600_v1 }
  0xa2   : > { %2605 = vmatmul.mubr.msk.bf16.gmra.mrb[60].mxu0 %vm430_vm2, %v3450_v48  ;;  %2735 = vmatmul.mubr.msk.bf16.gmra.mrb[60].mxu1 %vm430_vm2, %v3450_v48 }
  0xa3   : > { %2608 = vmatprep.mubr.msk.bf16.mxu0 %vm3127_vm0, %v4600_v1  ;;  %2738 = vmatprep.mubr.msk.bf16.mxu1 %vm3127_vm0, %v4600_v1 }
  0xaa   : > { %2609 = vmatmul.mubr.msk.bf16.gmra.mrb[64].mxu0 %vm430_vm2, %v3461_v49  ;;  %2739 = vmatmul.mubr.msk.bf16.gmra.mrb[64].mxu1 %vm430_vm2, %v3461_v49 }
  0xab   : > { %2612 = vmatprep.mubr.msk.bf16.mxu0 %vm3127_vm0, %v4600_v1  ;;  %2742 = vmatprep.mubr.msk.bf16.mxu1 %vm3127_vm0, %v4600_v1 }
  0xb2   : > { %2613 = vmatmul.mubr.msk.bf16.gmra.mrb[68].mxu0 %vm430_vm2, %v3472_v50  ;;  %2743 = vmatmul.mubr.msk.bf16.gmra.mrb[68].mxu1 %vm430_vm2, %v3472_v50 }
  0xb3   : > { %2616 = vmatprep.mubr.msk.bf16.mxu0 %vm3127_vm0, %v4600_v1  ;;  %2746 = vmatprep.mubr.msk.bf16.mxu1 %vm3127_vm0, %v4600_v1 }
  0xba   : > { %2617 = vmatmul.mubr.msk.bf16.gmra.mrb[72].mxu0 %vm430_vm2, %v3483_v51  ;;  %2747 = vmatmul.mubr.msk.bf16.gmra.mrb[72].mxu1 %vm430_vm2, %v3483_v51 }
  0xbb   : > { %2620 = vmatprep.mubr.msk.bf16.mxu0 %vm3127_vm0, %v4600_v1  ;;  %2750 = vmatprep.mubr.msk.bf16.mxu1 %vm3127_vm0, %v4600_v1 }
  0xc2   : > { %2621 = vmatmul.mubr.msk.bf16.gmra.mrb[76].mxu0 %vm430_vm2, %v3494_v52  ;;  %2751 = vmatmul.mubr.msk.bf16.gmra.mrb[76].mxu1 %vm430_vm2, %v3494_v52 }
  0xc3   : > { %2624 = vmatprep.mubr.msk.bf16.mxu0 %vm3127_vm0, %v4600_v1  ;;  %2754 = vmatprep.mubr.msk.bf16.mxu1 %vm3127_vm0, %v4600_v1 }
  0xca   : > { %2625 = vmatmul.mubr.msk.bf16.gmra.mrb[80].mxu0 %vm430_vm2, %v3505_v53  ;;  %2755 = vmatmul.mubr.msk.bf16.gmra.mrb[80].mxu1 %vm430_vm2, %v3505_v53 }
  0xcb   : > { %2628 = vmatprep.mubr.msk.bf16.mxu0 %vm3127_vm0, %v4600_v1  ;;  %2758 = vmatprep.mubr.msk.bf16.mxu1 %vm3127_vm0, %v4600_v1 }
  0xd2   : > { %2629 = vmatmul.mubr.msk.bf16.gmra.mrb[84].mxu0 %vm430_vm2, %v3516_v54  ;;  %2759 = vmatmul.mubr.msk.bf16.gmra.mrb[84].mxu1 %vm430_vm2, %v3516_v54 }
  0xd3   : > { %2632 = vmatprep.mubr.msk.bf16.mxu0 %vm3127_vm0, %v4600_v1  ;;  %2762 = vmatprep.mubr.msk.bf16.mxu1 %vm3127_vm0, %v4600_v1 }
  0xda   : > { %2633 = vmatmul.mubr.msk.bf16.gmra.mrb[88].mxu0 %vm430_vm2, %v3527_v55  ;;  %2763 = vmatmul.mubr.msk.bf16.gmra.mrb[88].mxu1 %vm430_vm2, %v3527_v55 }
  0xdb   : > { %2636 = vmatprep.mubr.msk.bf16.mxu0 %vm3127_vm0, %v4600_v1  ;;  %2766 = vmatprep.mubr.msk.bf16.mxu1 %vm3127_vm0, %v4600_v1 }
  0xe2   : > { %2637 = vmatmul.mubr.msk.bf16.gmra.mrb[92].mxu0 %vm430_vm2, %v3538_v56  ;;  %2767 = vmatmul.mubr.msk.bf16.gmra.mrb[92].mxu1 %vm430_vm2, %v3538_v56 }
  0xe3   : > { %2640 = vmatprep.mubr.msk.bf16.mxu0 %vm3127_vm0, %v4600_v1  ;;  %2770 = vmatprep.mubr.msk.bf16.mxu1 %vm3127_vm0, %v4600_v1 }
  0xea   : > { %2641 = vmatmul.mubr.msk.bf16.gmra.mrb[96].mxu0 %vm430_vm2, %v3549_v57  ;;  %2771 = vmatmul.mubr.msk.bf16.gmra.mrb[96].mxu1 %vm430_vm2, %v3549_v57 }
  0xeb   : > { %2644 = vmatprep.mubr.msk.bf16.mxu0 %vm3127_vm0, %v4600_v1  ;;  %2774 = vmatprep.mubr.msk.bf16.mxu1 %vm3127_vm0, %v4600_v1 }
  0xf2   : > { %2645 = vmatmul.mubr.msk.bf16.gmra.mrb[100].mxu0 %vm430_vm2, %v3560_v58  ;;  %2775 = vmatmul.mubr.msk.bf16.gmra.mrb[100].mxu1 %vm430_vm2, %v3560_v58 }
  0xf3   : > { %2648 = vmatprep.mubr.msk.bf16.mxu0 %vm3127_vm0, %v4600_v1  ;;  %2778 = vmatprep.mubr.msk.bf16.mxu1 %vm3127_vm0, %v4600_v1 }
  0xfa   : > { %2649 = vmatmul.mubr.msk.bf16.gmra.mrb[104].mxu0 %vm430_vm2, %v3571_v59  ;;  %2779 = vmatmul.mubr.msk.bf16.gmra.mrb[104].mxu1 %vm430_vm2, %v3571_v59 }
  0xfb   : > { %2652 = vmatprep.mubr.msk.bf16.mxu0 %vm3127_vm0, %v4600_v1  ;;  %2782 = vmatprep.mubr.msk.bf16.mxu1 %vm3127_vm0, %v4600_v1 }
  0xfd   : > { %v3581_v60 = vpop.f32.mrb[0].mxu0  ;;  %v3583_v61 = vpop.f32.mrb[0].mxu1 }
  0xfe   : > { %v2546_v62 = vpop.f32.mrb[1].mxu0  ;;  %v2676_v2 = vpop.f32.mrb[1].mxu1 }
  0xff   : > { %v3590_v3 = vpop.f32.mrb[2].mxu0  ;;  %v3592_v4 = vpop.f32.mrb[2].mxu1 }
 0x100   : > { %v2547_v5 = vpop.f32.mrb[3].mxu0  ;;  %v2677_v7 = vpop.f32.mrb[3].mxu1 }
 0x102   : > { %2653 = vmatmul.mubr.msk.bf16.gmra.mrb[108].mxu0 %vm430_vm2, %v3586_v63  ;;  %2783 = vmatmul.mubr.msk.bf16.gmra.mrb[108].mxu1 %vm430_vm2, %v3586_v63 }
 0x103   : > { %2656 = vmatprep.mubr.msk.bf16.mxu0 %vm3127_vm0, %v4600_v1  ;;  %2786 = vmatprep.mubr.msk.bf16.mxu1 %vm3127_vm0, %v4600_v1 }
 0x105   : > { %v3604_v8 = vpop.f32.mrb[4].mxu0  ;;  %v3606_v9 = vpop.f32.mrb[4].mxu1 }
 0x106   : > { %v2550_v10 = vpop.f32.mrb[5].mxu0  ;;  %v2680_v13 = vpop.f32.mrb[5].mxu1 }
 0x107   : > { %v3613_v14 = vpop.f32.mrb[6].mxu0  ;;  %v3615_v15 = vpop.f32.mrb[6].mxu1 }
 0x108   : > { %v2551_v16 = vpop.f32.mrb[7].mxu0  ;;  %v2681_v19 = vpop.f32.mrb[7].mxu1 }
 0x10a   : > { %2657 = vmatmul.mubr.msk.bf16.gmra.mrb[112].mxu0 %vm430_vm2, %v3609_v11  ;;  %2787 = vmatmul.mubr.msk.bf16.gmra.mrb[112].mxu1 %vm430_vm2, %v3609_v11 }
 0x10b   : > { %2804 = vmatprep.mubr.msk.bf16.mxu0 %vm3127_vm0, %v4600_v1  ;;  %2934 = vmatprep.mubr.msk.bf16.mxu1 %vm3127_vm0, %v4600_v1 }
 0x10d   : > { %v3627_v20 = vpop.f32.mrb[8].mxu0  ;;  %v3629_v21 = vpop.f32.mrb[8].mxu1 }
 0x10e   : > { %v2554_v23 = vpop.f32.mrb[9].mxu0  ;;  %v2684_v26 = vpop.f32.mrb[9].mxu1 }
 0x10f   : > { %v3633_v27 = vpop.f32.mrb[10].mxu0  ;;  %v3635_v28 = vpop.f32.mrb[10].mxu1 }
 0x110   : > { %v2555_v29 = vpop.f32.mrb[11].mxu0  ;;  %v2685_v33 = vpop.f32.mrb[11].mxu1 }
 0x112   : > { %2805 = vmatmul.mubr.msk.bf16.vlgmr.msra.gmra.mrb[116].mxu0 %vm430_vm2, %v3227_v17  ;;  %2935 = vmatmul.mubr.msk.bf16.vlgmr.msra.gmra.mrb[116].mxu1 %vm430_vm2, %v3227_v17 }
 0x113   : > { %2808 = vmatprep.mubr.msk.bf16.mxu0 %vm3127_vm0, %v4600_v1  ;;  %2938 = vmatprep.mubr.msk.bf16.mxu1 %vm3127_vm0, %v4600_v1 }
 0x115   : > { %v3647_v39 = vpop.f32.mrb[12].mxu0  ;;  %v3649_v40 = vpop.f32.mrb[12].mxu1 }
 0x116   : > { %v2558_v41 = vpop.f32.mrb[13].mxu0  ;;  %v2688_v62 = vpop.f32.mrb[13].mxu1 }
 0x117   : > { %v3653_v2 = vpop.f32.mrb[14].mxu0  ;;  %v3655_v5 = vpop.f32.mrb[14].mxu1 }
 0x118   : > { %v2559_v17 = vpop.f32.mrb[15].mxu0  ;;  %v2689_v10 = vpop.f32.mrb[15].mxu1 }
 0x11a   : > { %2809 = vmatmul.mubr.msk.bf16.gmra.mrb[120].mxu0 %vm430_vm2, %v3253_v22  ;;  %2939 = vmatmul.mubr.msk.bf16.gmra.mrb[120].mxu1 %vm430_vm2, %v3253_v22 }
 0x11b   : > { %2812 = vmatprep.mubr.msk.bf16.mxu0 %vm3127_vm0, %v4600_v1  ;;  %2942 = vmatprep.mubr.msk.bf16.mxu1 %vm3127_vm0, %v4600_v1 }
 0x11d   : > { %v3667_v13 = vpop.f32.mrb[16].mxu0  ;;  %v3669_v16 = vpop.f32.mrb[16].mxu1 }
 0x11e   : > { %v2562_v19 = vpop.f32.mrb[17].mxu0  ;;  %v2692_v26 = vpop.f32.mrb[17].mxu1 }
 0x11f   : > { %v3673_v29 = vpop.f32.mrb[18].mxu0  ;;  %v3675_v33 = vpop.f32.mrb[18].mxu1 }
 0x120   : > { %v2563_v22 = vpop.f32.mrb[19].mxu0  ;;  %v2693_v62 = vpop.f32.mrb[19].mxu1 }
 0x122   : > { %2813 = vmatmul.mubr.msk.bf16.gmra.mrb[124].mxu0 %vm430_vm2, %v3273_v25  ;;  %2943 = vmatmul.mubr.msk.bf16.gmra.mrb[124].mxu1 %vm430_vm2, %v3273_v25 }
 0x123   : > { %2816 = vmatprep.mubr.msk.bf16.mxu0 %vm3127_vm0, %v4600_v1  ;;  %2946 = vmatprep.mubr.msk.bf16.mxu1 %vm3127_vm0, %v4600_v1 }
 0x125   : > { %v3687_v17 = vpop.f32.mrb[20].mxu0  ;;  %v3689_v10 = vpop.f32.mrb[20].mxu1 }
 0x126   : > { %v2566_v19 = vpop.f32.mrb[21].mxu0  ;;  %v2696_v22 = vpop.f32.mrb[21].mxu1 }
 0x127   : > { %v3693_v62 = vpop.f32.mrb[22].mxu0  ;;  %v3695_v41 = vpop.f32.mrb[22].mxu1 }
 0x128   : > { %v2567_v25 = vpop.f32.mrb[23].mxu0  ;;  %v2697_v7 = vpop.f32.mrb[23].mxu1 }
 0x12a   : > { %2817 = vmatmul.mubr.msk.bf16.gmra.mrb[128].mxu0 %vm430_vm2, %v3300_v30  ;;  %2947 = vmatmul.mubr.msk.bf16.gmra.mrb[128].mxu1 %vm430_vm2, %v3300_v30 }
 0x12b   : > { %2820 = vmatprep.mubr.msk.bf16.mxu0 %vm3127_vm0, %v4600_v1  ;;  %2950 = vmatprep.mubr.msk.bf16.mxu1 %vm3127_vm0, %v4600_v1 }
 0x12d   : > { %v3707_v19 = vpop.f32.mrb[24].mxu0  ;;  %v3709_v22 = vpop.f32.mrb[24].mxu1 }
 0x12e   : > { %v2570_v25 = vpop.f32.mrb[25].mxu0  ;;  %v2700_v23 = vpop.f32.mrb[25].mxu1 }
 0x12f   : > { %v3713_v26 = vpop.f32.mrb[26].mxu0  ;;  %v3715_v42 = vpop.f32.mrb[26].mxu1 }
 0x130   : > { %v2571_v30 = vpop.f32.mrb[27].mxu0  ;;  %v2701_v24 = vpop.f32.mrb[27].mxu1 }
 0x132   : > { %2821 = vmatmul.mubr.msk.bf16.gmra.mrb[132].mxu0 %vm430_vm2, %v3313_v31  ;;  %2951 = vmatmul.mubr.msk.bf16.gmra.mrb[132].mxu1 %vm430_vm2, %v3313_v31 }
 0x133   : > { %2824 = vmatprep.mubr.msk.bf16.mxu0 %vm3127_vm0, %v4600_v1  ;;  %2954 = vmatprep.mubr.msk.bf16.mxu1 %vm3127_vm0, %v4600_v1 }
 0x135   : > { %v3727_v23 = vpop.f32.mrb[28].mxu0  ;;  %v3729_v25 = vpop.f32.mrb[28].mxu1 }
 0x136   : > { %v2574_v30 = vpop.f32.mrb[29].mxu0  ;;  %v2704_v32 = vpop.f32.mrb[29].mxu1 }
 0x137   : > { %v3733_v7 = vpop.f32.mrb[30].mxu0  ;;  %v3735_v18 = vpop.f32.mrb[30].mxu1 }
 0x138   : > { %4602 = vst [vmem:[#allocation2_spill] sm:$0xff] %v3733_v7  ;;  %4603 = vst [vmem:[#allocation3_spill] sm:$0xff] %v3735_v18  ;;  %v2575_v31 = vpop.f32.mrb[31].mxu0  ;;  %v2705_v6 = vpop.f32.mrb[31].mxu1 }
 0x13a   : > { %2825 = vmatmul.mubr.msk.bf16.gmra.mrb[136].mxu0 %vm430_vm2, %v3330_v34  ;;  %2955 = vmatmul.mubr.msk.bf16.gmra.mrb[136].mxu1 %vm430_vm2, %v3330_v34 }
 0x13b   : > { %2828 = vmatprep.mubr.msk.bf16.mxu0 %vm3127_vm0, %v4600_v1  ;;  %2958 = vmatprep.mubr.msk.bf16.mxu1 %vm3127_vm0, %v4600_v1 }
 0x13d   : > { %v3747_v32 = vpop.f32.mrb[32].mxu0  ;;  %v3749_v30 = vpop.f32.mrb[32].mxu1 }
 0x13e   : > { %4604 = vst [vmem:[#allocation4_spill] sm:$0xff] %v3749_v30  ;;  %v2578_v31 = vpop.f32.mrb[33].mxu0  ;;  %v2708_v12 = vpop.f32.mrb[33].mxu1 }
 0x13f   : > { %v3753_v24 = vpop.f32.mrb[34].mxu0  ;;  %v3755_v0 = vpop.f32.mrb[34].mxu1 }
 0x140   : > { %4605 = vst [vmem:[#allocation5_spill] sm:$0xff] %v3753_v24  ;;  %4606 = vst [vmem:[#allocation6_spill] sm:$0xff] %v3755_v0  ;;  %v2579_v34 = vpop.f32.mrb[35].mxu0  ;;  %v2709_v7 = vpop.f32.mrb[35].mxu1 }
 0x142   : > { %2829 = vmatmul.mubr.msk.bf16.gmra.mrb[140].mxu0 %vm430_vm2, %v3343_v35  ;;  %2959 = vmatmul.mubr.msk.bf16.gmra.mrb[140].mxu1 %vm430_vm2, %v3343_v35 }
 0x143   : > { %2832 = vmatprep.mubr.msk.bf16.mxu0 %vm3127_vm0, %v4600_v1  ;;  %2962 = vmatprep.mubr.msk.bf16.mxu1 %vm3127_vm0, %v4600_v1 }
 0x145   : > { %v3767_v12 = vpop.f32.mrb[36].mxu0  ;;  %v3769_v31 = vpop.f32.mrb[36].mxu1 }
 0x146   : > { %4607 = vst [vmem:[#allocation7_spill] sm:$0xff] %v3769_v31  ;;  %v2582_v34 = vpop.f32.mrb[37].mxu0  ;;  %v2712_v18 = vpop.f32.mrb[37].mxu1 }
 0x147   : > { %v3773_v6 = vpop.f32.mrb[38].mxu0  ;;  %v3775_v0 = vpop.f32.mrb[38].mxu1 }
 0x148   : > { %4608 = vst [vmem:[#allocation8_spill] sm:$0xff] %v3773_v6  ;;  %4609 = vst [vmem:[#allocation9_spill] sm:$0xff] %v3775_v0  ;;  %v2583_v35 = vpop.f32.mrb[39].mxu0  ;;  %v2713_v30 = vpop.f32.mrb[39].mxu1 }
 0x14a   : > { %2833 = vmatmul.mubr.msk.bf16.gmra.mrb[144].mxu0 %vm430_vm2, %v3354_v36  ;;  %2963 = vmatmul.mubr.msk.bf16.gmra.mrb[144].mxu1 %vm430_vm2, %v3354_v36 }
 0x14b   : > { %2836 = vmatprep.mubr.msk.bf16.mxu0 %vm3127_vm0, %v4600_v1  ;;  %2966 = vmatprep.mubr.msk.bf16.mxu1 %vm3127_vm0, %v4600_v1 }
 0x14d   : > { %v3787_v18 = vpop.f32.mrb[40].mxu0  ;;  %v3789_v34 = vpop.f32.mrb[40].mxu1 }
 0x14e   : > { %4610 = vst [vmem:[#allocation10_spill] sm:$0xff] %v3789_v34  ;;  %v2586_v35 = vpop.f32.mrb[41].mxu0  ;;  %v2716_v24 = vpop.f32.mrb[41].mxu1 }
 0x14f   : > { %v3793_v7 = vpop.f32.mrb[42].mxu0  ;;  %v3795_v0 = vpop.f32.mrb[42].mxu1 }
 0x150   : > { %4611 = vst [vmem:[#allocation11_spill] sm:$0xff] %v3793_v7  ;;  %4612 = vst [vmem:[#allocation12_spill] sm:$0xff] %v3795_v0  ;;  %v2587_v36 = vpop.f32.mrb[43].mxu0  ;;  %v2717_v31 = vpop.f32.mrb[43].mxu1 }
 0x152   : > { %2837 = vmatmul.mubr.msk.bf16.gmra.mrb[148].mxu0 %vm430_vm2, %v3365_v37  ;;  %2967 = vmatmul.mubr.msk.bf16.gmra.mrb[148].mxu1 %vm430_vm2, %v3365_v37 }
 0x153   : > { %2840 = vmatprep.mubr.msk.bf16.mxu0 %vm3127_vm0, %v4600_v1  ;;  %2970 = vmatprep.mubr.msk.bf16.mxu1 %vm3127_vm0, %v4600_v1 }
 0x155   : > { %v3807_v24 = vpop.f32.mrb[44].mxu0  ;;  %v3809_v35 = vpop.f32.mrb[44].mxu1 }
 0x156   : > { %4613 = vst [vmem:[#allocation13_spill] sm:$0xff] %v3809_v35  ;;  %v2590_v36 = vpop.f32.mrb[45].mxu0  ;;  %v2720_v6 = vpop.f32.mrb[45].mxu1 }
 0x157   : > { %v3813_v30 = vpop.f32.mrb[46].mxu0  ;;  %v3815_v0 = vpop.f32.mrb[46].mxu1 }
 0x158   : > { %4614 = vst [vmem:[#allocation14_spill] sm:$0xff] %v3813_v30  ;;  %4615 = vst [vmem:[#allocation15_spill] sm:$0xff] %v3815_v0  ;;  %v2591_v37 = vpop.f32.mrb[47].mxu0  ;;  %v2721_v34 = vpop.f32.mrb[47].mxu1 }
 0x15a   : > { %2841 = vmatmul.mubr.msk.bf16.gmra.mrb[152].mxu0 %vm430_vm2, %v3376_v38  ;;  %2971 = vmatmul.mubr.msk.bf16.gmra.mrb[152].mxu1 %vm430_vm2, %v3376_v38 }
 0x15b   : > { %2844 = vmatprep.mubr.msk.bf16.mxu0 %vm3127_vm0, %v4600_v1  ;;  %2974 = vmatprep.mubr.msk.bf16.mxu1 %vm3127_vm0, %v4600_v1 }
 0x15d   : > { %v3827_v6 = vpop.f32.mrb[48].mxu0  ;;  %v3829_v36 = vpop.f32.mrb[48].mxu1 }
 0x15e   : > { %4616 = vst [vmem:[#allocation16_spill] sm:$0xff] %v3829_v36  ;;  %v2594_v37 = vpop.f32.mrb[49].mxu0  ;;  %v2724_v7 = vpop.f32.mrb[49].mxu1 }
 0x15f   : > { %v3833_v31 = vpop.f32.mrb[50].mxu0  ;;  %v3835_v0 = vpop.f32.mrb[50].mxu1 }
 0x160   : > { %4617 = vst [vmem:[#allocation17_spill] sm:$0xff] %v3833_v31  ;;  %4618 = vst [vmem:[#allocation18_spill] sm:$0xff] %v3835_v0  ;;  %v2595_v38 = vpop.f32.mrb[51].mxu0  ;;  %v2725_v35 = vpop.f32.mrb[51].mxu1 }
 0x162   : > { %2845 = vmatmul.mubr.msk.bf16.gmra.mrb[156].mxu0 %vm430_vm2, %v3395_v43  ;;  %2975 = vmatmul.mubr.msk.bf16.gmra.mrb[156].mxu1 %vm430_vm2, %v3395_v43 }
 0x163   : > { %2848 = vmatprep.mubr.msk.bf16.mxu0 %vm3127_vm0, %v4600_v1  ;;  %2978 = vmatprep.mubr.msk.bf16.mxu1 %vm3127_vm0, %v4600_v1 }
 0x165   : > { %v3847_v7 = vpop.f32.mrb[52].mxu0  ;;  %v3849_v37 = vpop.f32.mrb[52].mxu1 }
 0x166   : > { %4619 = vst [vmem:[#allocation19_spill] sm:$0xff] %v3849_v37  ;;  %v2598_v38 = vpop.f32.mrb[53].mxu0  ;;  %v2728_v30 = vpop.f32.mrb[53].mxu1 }
 0x167   : > { %v3853_v34 = vpop.f32.mrb[54].mxu0  ;;  %v3855_v0 = vpop.f32.mrb[54].mxu1 }
 0x168   : > { %4620 = vst [vmem:[#allocation20_spill] sm:$0xff] %v3853_v34  ;;  %4621 = vst [vmem:[#allocation21_spill] sm:$0xff] %v3855_v0  ;;  %v2599_v43 = vpop.f32.mrb[55].mxu0  ;;  %v2729_v36 = vpop.f32.mrb[55].mxu1 }
 0x16a   : > { %2849 = vmatmul.mubr.msk.bf16.gmra.mrb[160].mxu0 %vm430_vm2, %v3406_v44  ;;  %2979 = vmatmul.mubr.msk.bf16.gmra.mrb[160].mxu1 %vm430_vm2, %v3406_v44 }
 0x16b   : > { %2852 = vmatprep.mubr.msk.bf16.mxu0 %vm3127_vm0, %v4600_v1  ;;  %2982 = vmatprep.mubr.msk.bf16.mxu1 %vm3127_vm0, %v4600_v1 }
 0x16d   : > { %v3867_v30 = vpop.f32.mrb[56].mxu0  ;;  %v3869_v38 = vpop.f32.mrb[56].mxu1 }
 0x16e   : > { %4622 = vst [vmem:[#allocation22_spill] sm:$0xff] %v3869_v38  ;;  %v2602_v43 = vpop.f32.mrb[57].mxu0  ;;  %v2732_v31 = vpop.f32.mrb[57].mxu1 }
 0x16f   : > { %v3873_v35 = vpop.f32.mrb[58].mxu0  ;;  %v3875_v0 = vpop.f32.mrb[58].mxu1 }
 0x170   : > { %4623 = vst [vmem:[#allocation23_spill] sm:$0xff] %v3873_v35  ;;  %4624 = vst [vmem:[#allocation24_spill] sm:$0xff] %v3875_v0  ;;  %v2603_v44 = vpop.f32.mrb[59].mxu0  ;;  %v2733_v37 = vpop.f32.mrb[59].mxu1 }
 0x172   : > { %2853 = vmatmul.mubr.msk.bf16.gmra.mrb[164].mxu0 %vm430_vm2, %v3417_v45  ;;  %2983 = vmatmul.mubr.msk.bf16.gmra.mrb[164].mxu1 %vm430_vm2, %v3417_v45 }
 0x173   : > { %2856 = vmatprep.mubr.msk.bf16.mxu0 %vm3127_vm0, %v4600_v1  ;;  %2986 = vmatprep.mubr.msk.bf16.mxu1 %vm3127_vm0, %v4600_v1 }
 0x175   : > { %v3887_v31 = vpop.f32.mrb[60].mxu0  ;;  %v3889_v43 = vpop.f32.mrb[60].mxu1 }
 0x176   : > { %4625 = vst [vmem:[#allocation25_spill] sm:$0xff] %v3889_v43  ;;  %v2606_v44 = vpop.f32.mrb[61].mxu0  ;;  %v2736_v34 = vpop.f32.mrb[61].mxu1 }
 0x177   : > { %v3893_v36 = vpop.f32.mrb[62].mxu0  ;;  %v3895_v0 = vpop.f32.mrb[62].mxu1 }
 0x178   : > { %4626 = vst [vmem:[#allocation26_spill] sm:$0xff] %v3893_v36  ;;  %4627 = vst [vmem:[#allocation27_spill] sm:$0xff] %v3895_v0  ;;  %v2607_v45 = vpop.f32.mrb[63].mxu0  ;;  %v2737_v38 = vpop.f32.mrb[63].mxu1 }
 0x17a   : > { %2857 = vmatmul.mubr.msk.bf16.gmra.mrb[168].mxu0 %vm430_vm2, %v3428_v46  ;;  %2987 = vmatmul.mubr.msk.bf16.gmra.mrb[168].mxu1 %vm430_vm2, %v3428_v46 }
 0x17b   : > { %2860 = vmatprep.mubr.msk.bf16.mxu0 %vm3127_vm0, %v4600_v1  ;;  %2990 = vmatprep.mubr.msk.bf16.mxu1 %vm3127_vm0, %v4600_v1 }
 0x17d   : > { %v3907_v34 = vpop.f32.mrb[64].mxu0  ;;  %v3909_v44 = vpop.f32.mrb[64].mxu1 }
 0x17e   : > { %4628 = vst [vmem:[#allocation28_spill] sm:$0xff] %v3909_v44  ;;  %v2610_v45 = vpop.f32.mrb[65].mxu0  ;;  %v2740_v35 = vpop.f32.mrb[65].mxu1 }
 0x17f   : > { %v3913_v37 = vpop.f32.mrb[66].mxu0  ;;  %v3915_v0 = vpop.f32.mrb[66].mxu1 }
 0x180   : > { %4629 = vst [vmem:[#allocation29_spill] sm:$0xff] %v3913_v37  ;;  %4630 = vst [vmem:[#allocation30_spill] sm:$0xff] %v3915_v0  ;;  %v2611_v46 = vpop.f32.mrb[67].mxu0  ;;  %v2741_v43 = vpop.f32.mrb[67].mxu1 }
 0x182   : > { %2861 = vmatmul.mubr.msk.bf16.gmra.mrb[172].mxu0 %vm430_vm2, %v3439_v47  ;;  %2991 = vmatmul.mubr.msk.bf16.gmra.mrb[172].mxu1 %vm430_vm2, %v3439_v47 }
 0x183   : > { %2864 = vmatprep.mubr.msk.bf16.mxu0 %vm3127_vm0, %v4600_v1  ;;  %2994 = vmatprep.mubr.msk.bf16.mxu1 %vm3127_vm0, %v4600_v1 }
 0x185   : > { %v3927_v35 = vpop.f32.mrb[68].mxu0  ;;  %v3929_v45 = vpop.f32.mrb[68].mxu1 }
 0x186   : > { %4631 = vst [vmem:[#allocation31_spill] sm:$0xff] %v3929_v45  ;;  %v2614_v46 = vpop.f32.mrb[69].mxu0  ;;  %v2744_v36 = vpop.f32.mrb[69].mxu1 }
 0x187   : > { %v3933_v38 = vpop.f32.mrb[70].mxu0  ;;  %v3935_v0 = vpop.f32.mrb[70].mxu1 }
 0x188   : > { %4632 = vst [vmem:[#allocation32_spill] sm:$0xff] %v3933_v38  ;;  %4633 = vst [vmem:[#allocation33_spill] sm:$0xff] %v3935_v0  ;;  %v2615_v47 = vpop.f32.mrb[71].mxu0  ;;  %v2745_v44 = vpop.f32.mrb[71].mxu1 }
 0x18a   : > { %2865 = vmatmul.mubr.msk.bf16.gmra.mrb[176].mxu0 %vm430_vm2, %v3450_v48  ;;  %2995 = vmatmul.mubr.msk.bf16.gmra.mrb[176].mxu1 %vm430_vm2, %v3450_v48 }
 0x18b   : > { %2868 = vmatprep.mubr.msk.bf16.mxu0 %vm3127_vm0, %v4600_v1  ;;  %2998 = vmatprep.mubr.msk.bf16.mxu1 %vm3127_vm0, %v4600_v1 }
 0x18d   : > { %v3947_v36 = vpop.f32.mrb[72].mxu0  ;;  %v3949_v46 = vpop.f32.mrb[72].mxu1 }
 0x18e   : > { %4634 = vst [vmem:[#allocation34_spill] sm:$0xff] %v3949_v46  ;;  %v2618_v47 = vpop.f32.mrb[73].mxu0  ;;  %v2748_v37 = vpop.f32.mrb[73].mxu1 }
 0x18f   : > { %v3953_v43 = vpop.f32.mrb[74].mxu0  ;;  %v3955_v0 = vpop.f32.mrb[74].mxu1 }
 0x190   : > { %4635 = vst [vmem:[#allocation35_spill] sm:$0xff] %v3953_v43  ;;  %4636 = vst [vmem:[#allocation36_spill] sm:$0xff] %v3955_v0  ;;  %v2619_v48 = vpop.f32.mrb[75].mxu0  ;;  %v2749_v45 = vpop.f32.mrb[75].mxu1 }
 0x192   : > { %2869 = vmatmul.mubr.msk.bf16.gmra.mrb[180].mxu0 %vm430_vm2, %v3461_v49  ;;  %2999 = vmatmul.mubr.msk.bf16.gmra.mrb[180].mxu1 %vm430_vm2, %v3461_v49 }
 0x193   : > { %2872 = vmatprep.mubr.msk.bf16.mxu0 %vm3127_vm0, %v4600_v1  ;;  %3002 = vmatprep.mubr.msk.bf16.mxu1 %vm3127_vm0, %v4600_v1 }
 0x195   : > { %v3967_v37 = vpop.f32.mrb[76].mxu0  ;;  %v3969_v47 = vpop.f32.mrb[76].mxu1 }
 0x196   : > { %4637 = vst [vmem:[#allocation37_spill] sm:$0xff] %v3969_v47  ;;  %v2622_v48 = vpop.f32.mrb[77].mxu0  ;;  %v2752_v38 = vpop.f32.mrb[77].mxu1 }
 0x197   : > { %v3973_v44 = vpop.f32.mrb[78].mxu0  ;;  %v3975_v0 = vpop.f32.mrb[78].mxu1 }
 0x198   : > { %4638 = vst [vmem:[#allocation38_spill] sm:$0xff] %v3973_v44  ;;  %4639 = vst [vmem:[#allocation39_spill] sm:$0xff] %v3975_v0  ;;  %v2623_v49 = vpop.f32.mrb[79].mxu0  ;;  %v2753_v46 = vpop.f32.mrb[79].mxu1 }
 0x19a   : > { %2873 = vmatmul.mubr.msk.bf16.gmra.mrb[184].mxu0 %vm430_vm2, %v3472_v50  ;;  %3003 = vmatmul.mubr.msk.bf16.gmra.mrb[184].mxu1 %vm430_vm2, %v3472_v50 }
 0x19b   : > { %2876 = vmatprep.mubr.msk.bf16.mxu0 %vm3127_vm0, %v4600_v1  ;;  %3006 = vmatprep.mubr.msk.bf16.mxu1 %vm3127_vm0, %v4600_v1 }
 0x19d   : > { %v3987_v38 = vpop.f32.mrb[80].mxu0  ;;  %v3989_v48 = vpop.f32.mrb[80].mxu1 }
 0x19e   : > { %4640 = vst [vmem:[#allocation40_spill] sm:$0xff] %v3989_v48  ;;  %v2626_v49 = vpop.f32.mrb[81].mxu0  ;;  %v2756_v43 = vpop.f32.mrb[81].mxu1 }
 0x19f   : > { %v3993_v45 = vpop.f32.mrb[82].mxu0  ;;  %v3995_v0 = vpop.f32.mrb[82].mxu1 }
 0x1a0   : > { %4641 = vst [vmem:[#allocation41_spill] sm:$0xff] %v3993_v45  ;;  %4642 = vst [vmem:[#allocation42_spill] sm:$0xff] %v3995_v0  ;;  %v2627_v50 = vpop.f32.mrb[83].mxu0  ;;  %v2757_v47 = vpop.f32.mrb[83].mxu1 }
 0x1a2   : > { %2877 = vmatmul.mubr.msk.bf16.gmra.mrb[188].mxu0 %vm430_vm2, %v3483_v51  ;;  %3007 = vmatmul.mubr.msk.bf16.gmra.mrb[188].mxu1 %vm430_vm2, %v3483_v51 }
 0x1a3   : > { %2880 = vmatprep.mubr.msk.bf16.mxu0 %vm3127_vm0, %v4600_v1  ;;  %3010 = vmatprep.mubr.msk.bf16.mxu1 %vm3127_vm0, %v4600_v1 }
 0x1a5   : > { %v4007_v43 = vpop.f32.mrb[84].mxu0  ;;  %v4009_v49 = vpop.f32.mrb[84].mxu1 }
 0x1a6   : > { %4643 = vst [vmem:[#allocation43_spill] sm:$0xff] %v4009_v49  ;;  %v2630_v50 = vpop.f32.mrb[85].mxu0  ;;  %v2760_v44 = vpop.f32.mrb[85].mxu1 }
 0x1a7   : > { %v4013_v46 = vpop.f32.mrb[86].mxu0  ;;  %v4015_v0 = vpop.f32.mrb[86].mxu1 }
 0x1a8   : > { %4644 = vst [vmem:[#allocation44_spill] sm:$0xff] %v4013_v46  ;;  %4645 = vst [vmem:[#allocation45_spill] sm:$0xff] %v4015_v0  ;;  %v2631_v51 = vpop.f32.mrb[87].mxu0  ;;  %v2761_v48 = vpop.f32.mrb[87].mxu1 }
 0x1aa   : > { %2881 = vmatmul.mubr.msk.bf16.gmra.mrb[192].mxu0 %vm430_vm2, %v3494_v52  ;;  %3011 = vmatmul.mubr.msk.bf16.gmra.mrb[192].mxu1 %vm430_vm2, %v3494_v52 }
 0x1ab   : > { %2884 = vmatprep.mubr.msk.bf16.mxu0 %vm3127_vm0, %v4600_v1  ;;  %3014 = vmatprep.mubr.msk.bf16.mxu1 %vm3127_vm0, %v4600_v1 }
 0x1ad   : > { %v4027_v44 = vpop.f32.mrb[88].mxu0  ;;  %v4029_v50 = vpop.f32.mrb[88].mxu1 }
 0x1ae   : > { %4646 = vst [vmem:[#allocation46_spill] sm:$0xff] %v4029_v50  ;;  %v2634_v51 = vpop.f32.mrb[89].mxu0  ;;  %v2764_v45 = vpop.f32.mrb[89].mxu1 }
 0x1af   : > { %v4033_v47 = vpop.f32.mrb[90].mxu0  ;;  %v4035_v0 = vpop.f32.mrb[90].mxu1 }
 0x1b0   : > { %4647 = vst [vmem:[#allocation47_spill] sm:$0xff] %v4033_v47  ;;  %4648 = vst [vmem:[#allocation48_spill] sm:$0xff] %v4035_v0  ;;  %v2635_v52 = vpop.f32.mrb[91].mxu0  ;;  %v2765_v49 = vpop.f32.mrb[91].mxu1 }
 0x1b2   : > { %2885 = vmatmul.mubr.msk.bf16.gmra.mrb[196].mxu0 %vm430_vm2, %v3505_v53  ;;  %3015 = vmatmul.mubr.msk.bf16.gmra.mrb[196].mxu1 %vm430_vm2, %v3505_v53 }
 0x1b3   : > { %2888 = vmatprep.mubr.msk.bf16.mxu0 %vm3127_vm0, %v4600_v1  ;;  %3018 = vmatprep.mubr.msk.bf16.mxu1 %vm3127_vm0, %v4600_v1 }
 0x1b5   : > { %v4047_v45 = vpop.f32.mrb[92].mxu0  ;;  %v4049_v51 = vpop.f32.mrb[92].mxu1 }
 0x1b6   : > { %4649 = vst [vmem:[#allocation49_spill] sm:$0xff] %v4049_v51  ;;  %v2638_v52 = vpop.f32.mrb[93].mxu0  ;;  %v2768_v46 = vpop.f32.mrb[93].mxu1 }
 0x1b7   : > { %v4053_v48 = vpop.f32.mrb[94].mxu0  ;;  %v4055_v0 = vpop.f32.mrb[94].mxu1 }
 0x1b8   : > { %4650 = vst [vmem:[#allocation50_spill] sm:$0xff] %v4053_v48  ;;  %4651 = vst [vmem:[#allocation51_spill] sm:$0xff] %v4055_v0  ;;  %v2639_v53 = vpop.f32.mrb[95].mxu0  ;;  %v2769_v50 = vpop.f32.mrb[95].mxu1 }
 0x1ba   : > { %2889 = vmatmul.mubr.msk.bf16.gmra.mrb[200].mxu0 %vm430_vm2, %v3516_v54  ;;  %3019 = vmatmul.mubr.msk.bf16.gmra.mrb[200].mxu1 %vm430_vm2, %v3516_v54 }
 0x1bb   : > { %2892 = vmatprep.mubr.msk.bf16.mxu0 %vm3127_vm0, %v4600_v1  ;;  %3022 = vmatprep.mubr.msk.bf16.mxu1 %vm3127_vm0, %v4600_v1 }
 0x1bd   : > { %v4067_v46 = vpop.f32.mrb[96].mxu0  ;;  %v4069_v52 = vpop.f32.mrb[96].mxu1 }
 0x1be   : > { %4652 = vst [vmem:[#allocation52_spill] sm:$0xff] %v4069_v52  ;;  %v2642_v53 = vpop.f32.mrb[97].mxu0  ;;  %v2772_v47 = vpop.f32.mrb[97].mxu1 }
 0x1bf   : > { %v4073_v49 = vpop.f32.mrb[98].mxu0  ;;  %v4075_v0 = vpop.f32.mrb[98].mxu1 }
 0x1c0   : > { %4653 = vst [vmem:[#allocation53_spill] sm:$0xff] %v4073_v49  ;;  %4654 = vst [vmem:[#allocation54_spill] sm:$0xff] %v4075_v0  ;;  %v2643_v54 = vpop.f32.mrb[99].mxu0  ;;  %v2773_v51 = vpop.f32.mrb[99].mxu1 }
 0x1c2   : > { %2893 = vmatmul.mubr.msk.bf16.gmra.mrb[204].mxu0 %vm430_vm2, %v3527_v55  ;;  %3023 = vmatmul.mubr.msk.bf16.gmra.mrb[204].mxu1 %vm430_vm2, %v3527_v55 }
 0x1c3   : > { %2896 = vmatprep.mubr.msk.bf16.mxu0 %vm3127_vm0, %v4600_v1  ;;  %3026 = vmatprep.mubr.msk.bf16.mxu1 %vm3127_vm0, %v4600_v1 }
 0x1c5   : > { %v4087_v47 = vpop.f32.mrb[100].mxu0  ;;  %v4089_v53 = vpop.f32.mrb[100].mxu1 }
 0x1c6   : > { %4655 = vst [vmem:[#allocation55_spill] sm:$0xff] %v4089_v53  ;;  %v2646_v54 = vpop.f32.mrb[101].mxu0  ;;  %v2776_v48 = vpop.f32.mrb[101].mxu1 }
 0x1c7   : > { %v4093_v50 = vpop.f32.mrb[102].mxu0  ;;  %v4095_v0 = vpop.f32.mrb[102].mxu1 }
 0x1c8   : > { %4656 = vst [vmem:[#allocation56_spill] sm:$0xff] %v4093_v50  ;;  %4657 = vst [vmem:[#allocation57_spill] sm:$0xff] %v4095_v0  ;;  %v2647_v55 = vpop.f32.mrb[103].mxu0  ;;  %v2777_v52 = vpop.f32.mrb[103].mxu1 }
 0x1ca   : > { %2897 = vmatmul.mubr.msk.bf16.gmra.mrb[208].mxu0 %vm430_vm2, %v3538_v56  ;;  %3027 = vmatmul.mubr.msk.bf16.gmra.mrb[208].mxu1 %vm430_vm2, %v3538_v56 }
 0x1cb   : > { %2900 = vmatprep.mubr.msk.bf16.mxu0 %vm3127_vm0, %v4600_v1  ;;  %3030 = vmatprep.mubr.msk.bf16.mxu1 %vm3127_vm0, %v4600_v1 }
 0x1cd   : > { %v4107_v48 = vpop.f32.mrb[104].mxu0  ;;  %v4109_v54 = vpop.f32.mrb[104].mxu1 }
 0x1ce   : > { %4658 = vst [vmem:[#allocation58_spill] sm:$0xff] %v4109_v54  ;;  %v2650_v55 = vpop.f32.mrb[105].mxu0  ;;  %v2780_v49 = vpop.f32.mrb[105].mxu1 }
 0x1cf   : > { %v4113_v51 = vpop.f32.mrb[106].mxu0  ;;  %v4115_v0 = vpop.f32.mrb[106].mxu1 }
 0x1d0   : > { %4659 = vst [vmem:[#allocation59_spill] sm:$0xff] %v4113_v51  ;;  %4660 = vst [vmem:[#allocation60_spill] sm:$0xff] %v4115_v0  ;;  %v2651_v56 = vpop.f32.mrb[107].mxu0  ;;  %v2781_v53 = vpop.f32.mrb[107].mxu1 }
 0x1d2   : > { %2901 = vmatmul.mubr.msk.bf16.gmra.mrb[212].mxu0 %vm430_vm2, %v3549_v57  ;;  %3031 = vmatmul.mubr.msk.bf16.gmra.mrb[212].mxu1 %vm430_vm2, %v3549_v57 }
 0x1d3   : > { %2904 = vmatprep.mubr.msk.bf16.mxu0 %vm3127_vm0, %v4600_v1  ;;  %3034 = vmatprep.mubr.msk.bf16.mxu1 %vm3127_vm0, %v4600_v1 }
 0x1d5   : > { %v4127_v49 = vpop.f32.mrb[108].mxu0  ;;  %v4129_v55 = vpop.f32.mrb[108].mxu1 }
 0x1d6   : > { %4661 = vst [vmem:[#allocation61_spill] sm:$0xff] %v4127_v49  ;;  %4662 = vst [vmem:[#allocation62_spill] sm:$0xff] %v4129_v55  ;;  %v2654_v56 = vpop.f32.mrb[109].mxu0  ;;  %v2784_v50 = vpop.f32.mrb[109].mxu1 }
 0x1d7   : > { %v4133_v52 = vpop.f32.mrb[110].mxu0  ;;  %v4135_v0 = vpop.f32.mrb[110].mxu1 }
 0x1d8   : > { %4663 = vst [vmem:[#allocation63_spill] sm:$0xff] %v4133_v52  ;;  %4664 = vst [vmem:[#allocation64_spill] sm:$0xff] %v4135_v0  ;;  %v2655_v57 = vpop.f32.mrb[111].mxu0  ;;  %v2785_v54 = vpop.f32.mrb[111].mxu1 }
 0x1da   : > { %2905 = vmatmul.mubr.msk.bf16.gmra.mrb[216].mxu0 %vm430_vm2, %v3560_v58  ;;  %3035 = vmatmul.mubr.msk.bf16.gmra.mrb[216].mxu1 %vm430_vm2, %v3560_v58 }
 0x1db   : > { %2908 = vmatprep.mubr.msk.bf16.mxu0 %vm3127_vm0, %v4600_v1  ;;  %3038 = vmatprep.mubr.msk.bf16.mxu1 %vm3127_vm0, %v4600_v1 }
 0x1dd   : > { %v4147_v50 = vpop.f32.mrb[112].mxu0  ;;  %v4149_v56 = vpop.f32.mrb[112].mxu1 }
 0x1de   : > { %4665 = vst [vmem:[#allocation65_spill] sm:$0xff] %v4147_v50  ;;  %4666 = vst [vmem:[#allocation66_spill] sm:$0xff] %v4149_v56  ;;  %v2658_v57 = vpop.f32.mrb[113].mxu0  ;;  %v2788_v51 = vpop.f32.mrb[113].mxu1 }
 0x1df   : > { %v783_v53 = vpop.f32.mrb[114].mxu0  ;;  %v1106_v0 = vpop.f32.mrb[114].mxu1 }
 0x1e0   : > { %v2659_v52 = vpop.f32.mrb[115].mxu0  ;;  %v2789_v58 = vpop.f32.mrb[115].mxu1 }
 0x1e1   : > { %v4164_v52 = vld [vmem:[%s4533_s2] ss:$0 sm:$0xff] }
 0x1e2   : > { %2909 = vmatmul.mubr.msk.bf16.gmra.mrb[220].mxu0 %vm430_vm2, %v3571_v59  ;;  %3039 = vmatmul.mubr.msk.bf16.gmra.mrb[220].mxu1 %vm430_vm2, %v3571_v59  ;;  %v4667_v59 = vmax.f32 %v3581_v60, %v3583_v61 }
 0x1e3   : > { %2912 = vmatprep.mubr.msk.bf16.mxu0 %vm3127_vm0, %v4600_v1  ;;  %3042 = vmatprep.mubr.msk.bf16.mxu1 %vm3127_vm0, %v4600_v1 }
 0x1e5   : > { %v1259_v57 = vpop.f32.mrb[116].mxu0  ;;  %v1582_v54 = vpop.f32.mrb[116].mxu1 }
 0x1e6   : > { %v2806_v51 = vpop.f32.mrb[117].mxu0  ;;  %v1812_v53 = vmax.f32 %v1259_v57, %v1582_v54  ;;  %v2936_v0 = vpop.f32.mrb[117].mxu1  ;;  %v4668_v57 = vmax.f32 %v3590_v3, %v3592_v4 }
 0x1e7   : > { %v1262_v56 = vpop.f32.mrb[118].mxu0  ;;  %v1585_v58 = vpop.f32.mrb[118].mxu1 }
 0x1e8   : > { %v2807_v50 = vpop.f32.mrb[119].mxu0  ;;  %v1869_v55 = vmax.f32 %v4667_v59, %v1812_v53  ;;  %v1813_v49 = vmax.f32 %v1262_v56, %v1585_v58  ;;  %v2937_v1 = vpop.f32.mrb[119].mxu1  ;;  %v4670_v58 = vmax.f32 %v3604_v8, %v3606_v9 }
 0x1e9   : > { %v4669_v50 = vmov 0.0  }
 0x1ea   : > { %2913 = vmatmul.mubr.msk.bf16.gmra.mrb[224].mxu0 %vm430_vm2, %v3586_v63  ;;  %v1933_v54 = vadd.f32 %v4164_v52, %v1869_v55  ;;  %v1870_v51 = vmax.f32 %v4668_v57, %v1813_v49  ;;  %3043 = vmatmul.mubr.msk.bf16.gmra.mrb[224].mxu1 %vm430_vm2, %v3586_v63 }
 0x1eb   : > { %2916 = vmatprep.mubr.msk.bf16.mxu0 %vm3127_vm0, %v4669_v50  ;;  %3046 = vmatprep.mubr.msk.bf16.mxu1 %vm3127_vm0, %v4669_v50  ;;  %v4671_v50 = vmax.f32 %v3613_v14, %v3615_v15 }
 0x1ec   : > { %v1990_v1 = vmax.f32 %v1933_v54, 0.0  ;;  %v1934_v60 = vadd.f32 %v4164_v52, %v1870_v51 }
 0x1ed   : > { %v1267_v61 = vpop.f32.mrb[120].mxu0  ;;  %v1590_v3 = vpop.f32.mrb[120].mxu1 }
 0x1ee   : > { %v2810_v63 = vpop.f32.mrb[121].mxu0  ;;  %2048 = vst.msk [vmem:[%s4183_s29] sm:$0xff] %vm2047_vm3, %v1990_v1  ;;  %v1991_v4 = vmax.f32 %v1934_v60, 0.0  ;;  %v1814_v49 = vmax.f32 %v1267_v61, %v1590_v3  ;;  %v2940_v55 = vpop.f32.mrb[121].mxu1 }
 0x1ef   : > { %v1270_v56 = vpop.f32.mrb[122].mxu0  ;;  %v1593_v53 = vpop.f32.mrb[122].mxu1 }
 0x1f0   : > { %v2811_v0 = vpop.f32.mrb[123].mxu0  ;;  %2049 = vst.msk [vmem:[%s4183_s29 + $0x8] sm:$0xff] %vm2047_vm3, %v1991_v4  ;;  %v1871_v59 = vmax.f32 %v4670_v58, %v1814_v49  ;;  %v1815_v54 = vmax.f32 %v1270_v56, %v1593_v53  ;;  %v2941_v57 = vpop.f32.mrb[123].mxu1 }
 0x1f2   : > { %2917 = vmatmul.mubr.msk.bf16.gmra.mrb[228].mxu0 %vm430_vm2, %v3609_v11  ;;  %v1935_v51 = vadd.f32 %v4164_v52, %v1871_v59  ;;  %v1872_v1 = vmax.f32 %v4671_v50, %v1815_v54  ;;  %3047 = vmatmul.mubr.msk.bf16.gmra.mrb[228].mxu1 %vm430_vm2, %v3609_v11  ;;  %v4672_v11 = vmax.f32 %v3627_v20, %v3629_v21 }
 0x1f3   : > { %v4673_v59 = vmax.f32 %v3633_v27, %v3635_v28  ;;  %v4674_v27 = vmax.f32 %v3647_v39, %v3649_v40 }
 0x1f4   : > { %v1992_v60 = vmax.f32 %v1935_v51, 0.0  ;;  %v1936_v61 = vadd.f32 %v4164_v52, %v1872_v1 }
 0x1f5   : > { %v1275_v8 = vpop.f32.mrb[124].mxu0  ;;  %v1598_v9 = vpop.f32.mrb[124].mxu1 }
 0x1f6   : > { %v2814_v3 = vpop.f32.mrb[125].mxu0  ;;  %2050 = vst.msk [vmem:[%s4183_s29 + $0x10] sm:$0xff] %vm2047_vm3, %v1992_v60  ;;  %v1993_v63 = vmax.f32 %v1936_v61, 0.0  ;;  %v1816_v4 = vmax.f32 %v1275_v8, %v1598_v9  ;;  %v2944_v49 = vpop.f32.mrb[125].mxu1 }
 0x1f7   : > { %v1278_v55 = vpop.f32.mrb[126].mxu0  ;;  %v1601_v56 = vpop.f32.mrb[126].mxu1 }
 0x1f8   : > { %v2815_v53 = vpop.f32.mrb[127].mxu0  ;;  %2051 = vst.msk [vmem:[%s4183_s29 + $0x18] sm:$0xff] %vm2047_vm3, %v1993_v63  ;;  %v1873_v14 = vmax.f32 %v4672_v11, %v1816_v4  ;;  %v1817_v15 = vmax.f32 %v1278_v55, %v1601_v56  ;;  %v2945_v0 = vpop.f32.mrb[127].mxu1  ;;  %v4675_v55 = vmax.f32 %v3653_v2, %v3655_v5  ;;  %v4676_v2 = vmax.f32 %v3667_v13, %v3669_v16 }
 0x1fa   : > { %v1937_v58 = vadd.f32 %v4164_v52, %v1873_v14  ;;  %v1874_v54 = vmax.f32 %v4673_v59, %v1817_v15 }
 0x1fc   : > { %v1994_v57 = vmax.f32 %v1937_v58, 0.0  ;;  %v1938_v51 = vadd.f32 %v4164_v52, %v1874_v54 }
 0x1fd   : > { %v1283_v50 = vpop.f32.mrb[128].mxu0  ;;  %v1606_v1 = vpop.f32.mrb[128].mxu1 }
 0x1fe   : > { %v2818_v60 = vpop.f32.mrb[129].mxu0  ;;  %2052 = vst.msk [vmem:[%s4183_s29 + $0x20] sm:$0xff] %vm2047_vm3, %v1994_v57  ;;  %v1995_v61 = vmax.f32 %v1938_v51, 0.0  ;;  %v1818_v20 = vmax.f32 %v1283_v50, %v1606_v1  ;;  %v2948_v21 = vpop.f32.mrb[129].mxu1 }
 0x1ff   : > { %v1286_v8 = vpop.f32.mrb[130].mxu0  ;;  %v1609_v9 = vpop.f32.mrb[130].mxu1  ;;  %v4677_v60 = vmax.f32 %v3673_v29, %v3675_v33  ;;  %v4678_v29 = vmax.f32 %v3687_v17, %v3689_v10 }
 0x200   : > { %v2819_v3 = vpop.f32.mrb[131].mxu0  ;;  %2053 = vst.msk [vmem:[%s4183_s29 + $0x28] sm:$0xff] %vm2047_vm3, %v1995_v61  ;;  %v1875_v28 = vmax.f32 %v4674_v27, %v1818_v20  ;;  %v1819_v63 = vmax.f32 %v1286_v8, %v1609_v9  ;;  %v2949_v4 = vpop.f32.mrb[131].mxu1 }
 0x202   : > { %v1939_v49 = vadd.f32 %v4164_v52, %v1875_v28  ;;  %v1876_v56 = vmax.f32 %v4675_v55, %v1819_v63 }
 0x204   : > { %v1996_v53 = vmax.f32 %v1939_v49, 0.0  ;;  %v1940_v11 = vadd.f32 %v4164_v52, %v1876_v56 }
 0x205   : > { %v1291_v14 = vpop.f32.mrb[132].mxu0  ;;  %v1614_v15 = vpop.f32.mrb[132].mxu1 }
 0x206   : > { %v2822_v0 = vpop.f32.mrb[133].mxu0  ;;  %2054 = vst.msk [vmem:[%s4183_s29 + $0x30] sm:$0xff] %vm2047_vm3, %v1996_v53  ;;  %v1997_v58 = vmax.f32 %v1940_v11, 0.0  ;;  %v1820_v39 = vmax.f32 %v1291_v14, %v1614_v15  ;;  %v2952_v40 = vpop.f32.mrb[133].mxu1  ;;  %v4679_v53 = vmax.f32 %v3693_v62, %v3695_v41  ;;  %v4680_v41 = vmax.f32 %v3707_v19, %v3709_v22 }
 0x207   : > { %v1294_v59 = vpop.f32.mrb[134].mxu0  ;;  %v1617_v54 = vpop.f32.mrb[134].mxu1 }
 0x208   : > { %v2823_v57 = vpop.f32.mrb[135].mxu0  ;;  %2055 = vst.msk [vmem:[%s4183_s29 + $0x38] sm:$0xff] %vm2047_vm3, %v1997_v58  ;;  %v1877_v5 = vmax.f32 %v4676_v2, %v1820_v39  ;;  %v1821_v51 = vmax.f32 %v1294_v59, %v1617_v54  ;;  %v2953_v50 = vpop.f32.mrb[135].mxu1 }
 0x209   : > { %v4681_v50 = vmax.f32 %v3713_v26, %v3715_v42  ;;  %v4682_v42 = vmax.f32 %v3727_v23, %v3729_v25 }
 0x20a   : > { %v1941_v1 = vadd.f32 %v4164_v52, %v1877_v5  ;;  %v1878_v61 = vmax.f32 %v4677_v60, %v1821_v51 }
 0x20c   : > { %v1998_v20 = vmax.f32 %v1941_v1, 0.0  ;;  %v1942_v21 = vadd.f32 %v4164_v52, %v1878_v61 }
 0x20d   : > { %v1299_v8 = vpop.f32.mrb[136].mxu0  ;;  %v1622_v9 = vpop.f32.mrb[136].mxu1 }
 0x20e   : > { %v2826_v3 = vpop.f32.mrb[137].mxu0  ;;  %2056 = vst.msk [vmem:[%s4183_s29 + $0x40] sm:$0xff] %vm2047_vm3, %v1998_v20  ;;  %v1999_v27 = vmax.f32 %v1942_v21, 0.0  ;;  %v1822_v13 = vmax.f32 %v1299_v8, %v1622_v9  ;;  %v2956_v16 = vpop.f32.mrb[137].mxu1 }
 0x20f   : > { %v1302_v28 = vpop.f32.mrb[138].mxu0  ;;  %v1625_v63 = vpop.f32.mrb[138].mxu1 }
 0x210   : > { %v2827_v4 = vpop.f32.mrb[139].mxu0  ;;  %2057 = vst.msk [vmem:[%s4183_s29 + $0x48] sm:$0xff] %vm2047_vm3, %v1999_v27  ;;  %v1879_v33 = vmax.f32 %v4678_v29, %v1822_v13  ;;  %v1823_v49 = vmax.f32 %v1302_v28, %v1625_v63  ;;  %v2957_v55 = vpop.f32.mrb[139].mxu1  ;;  %v4684_v29 = vld [vmem:[#allocation3_spill] sm:$0xff] }
 0x211   : > { %v4683_v4 = vld [vmem:[#allocation2_spill] sm:$0xff] }
 0x212   : > { %v1943_v56 = vadd.f32 %v4164_v52, %v1879_v33  ;;  %v1880_v11 = vmax.f32 %v4679_v53, %v1823_v49  ;;  %v4685_v33 = vmax.f32 %v4683_v4, %v4684_v29 }
 0x214   : > { %v2000_v14 = vmax.f32 %v1943_v56, 0.0  ;;  %v1944_v15 = vadd.f32 %v4164_v52, %v1880_v11 }
 0x215   : > { %v1307_v0 = vpop.f32.mrb[140].mxu0  ;;  %v1630_v58 = vpop.f32.mrb[140].mxu1 }
 0x216   : > { %v2830_v39 = vpop.f32.mrb[141].mxu0  ;;  %2058 = vst.msk [vmem:[%s4183_s29 + $0x50] sm:$0xff] %vm2047_vm3, %v2000_v14  ;;  %v2001_v40 = vmax.f32 %v1944_v15, 0.0  ;;  %v1824_v17 = vmax.f32 %v1307_v0, %v1630_v58  ;;  %v2960_v10 = vpop.f32.mrb[141].mxu1 }
 0x217   : > { %v1310_v59 = vpop.f32.mrb[142].mxu0  ;;  %v1633_v54 = vpop.f32.mrb[142].mxu1 }
 0x218   : > { %v2831_v57 = vpop.f32.mrb[143].mxu0  ;;  %2059 = vst.msk [vmem:[%s4183_s29 + $0x58] sm:$0xff] %vm2047_vm3, %v2001_v40  ;;  %v1881_v62 = vmax.f32 %v4680_v41, %v1824_v17  ;;  %v1825_v2 = vmax.f32 %v1310_v59, %v1633_v54  ;;  %v2961_v5 = vpop.f32.mrb[143].mxu1  ;;  %v4686_v40 = vld [vmem:[#allocation4_spill] sm:$0xff]  ;;  %v4688_v41 = vld [vmem:[#allocation5_spill] sm:$0xff] }
 0x219   : > { %v4687_v17 = vmax.f32 %v3747_v32, %v4686_v40 }
 0x21a   : > { %v1945_v51 = vadd.f32 %v4164_v52, %v1881_v62  ;;  %v1882_v1 = vmax.f32 %v4681_v50, %v1825_v2  ;;  %v4689_v62 = vld [vmem:[#allocation6_spill] sm:$0xff] }
 0x21b   : > { %v4690_v2 = vmax.f32 %v4688_v41, %v4689_v62 }
 0x21c   : > { %v2002_v60 = vmax.f32 %v1945_v51, 0.0  ;;  %v1946_v61 = vadd.f32 %v4164_v52, %v1882_v1 }
 0x21d   : > { %v1315_v20 = vpop.f32.mrb[144].mxu0  ;;  %v1638_v21 = vpop.f32.mrb[144].mxu1 }
 0x21e   : > { %v2834_v8 = vpop.f32.mrb[145].mxu0  ;;  %2060 = vst.msk [vmem:[%s4183_s29 + $0x60] sm:$0xff] %vm2047_vm3, %v2002_v60  ;;  %v2003_v9 = vmax.f32 %v1946_v61, 0.0  ;;  %v1826_v19 = vmax.f32 %v1315_v20, %v1638_v21  ;;  %v2964_v22 = vpop.f32.mrb[145].mxu1 }
 0x21f   : > { %v1318_v3 = vpop.f32.mrb[146].mxu0  ;;  %v1641_v27 = vpop.f32.mrb[146].mxu1  ;;  %v4691_v22 = vld [vmem:[#allocation7_spill] sm:$0xff] }
 0x220   : > { %v2835_v13 = vpop.f32.mrb[147].mxu0  ;;  %2061 = vst.msk [vmem:[%s4183_s29 + $0x68] sm:$0xff] %vm2047_vm3, %v2003_v9  ;;  %v1883_v26 = vmax.f32 %v4682_v42, %v1826_v19  ;;  %v1827_v16 = vmax.f32 %v1318_v3, %v1641_v27  ;;  %v2965_v28 = vpop.f32.mrb[147].mxu1  ;;  %v4692_v3 = vmax.f32 %v3767_v12, %v4691_v22 }
 0x221   : > { %v4694_v28 = vld [vmem:[#allocation9_spill] sm:$0xff] }
 0x222   : > { %v1947_v63 = vadd.f32 %v4164_v52, %v1883_v26  ;;  %v1884_v49 = vmax.f32 %v4685_v33, %v1827_v16  ;;  %v4693_v16 = vld [vmem:[#allocation8_spill] sm:$0xff] }
 0x224   : > { %v2004_v55 = vmax.f32 %v1947_v63, 0.0  ;;  %v1948_v56 = vadd.f32 %v4164_v52, %v1884_v49  ;;  %v4695_v63 = vmax.f32 %v4693_v16, %v4694_v28 }
 0x225   : > { %v1323_v53 = vpop.f32.mrb[148].mxu0  ;;  %v1646_v11 = vpop.f32.mrb[148].mxu1 }
 0x226   : > { %v2838_v14 = vpop.f32.mrb[149].mxu0  ;;  %2062 = vst.msk [vmem:[%s4183_s29 + $0x70] sm:$0xff] %vm2047_vm3, %v2004_v55  ;;  %v2005_v15 = vmax.f32 %v1948_v56, 0.0  ;;  %v1828_v23 = vmax.f32 %v1323_v53, %v1646_v11  ;;  %v2968_v25 = vpop.f32.mrb[149].mxu1 }
 0x227   : > { %v1326_v0 = vpop.f32.mrb[150].mxu0  ;;  %v1649_v58 = vpop.f32.mrb[150].mxu1  ;;  %v4696_v25 = vld [vmem:[#allocation10_spill] sm:$0xff] }
 0x228   : > { %v2839_v39 = vpop.f32.mrb[151].mxu0  ;;  %2063 = vst.msk [vmem:[%s4183_s29 + $0x78] sm:$0xff] %vm2047_vm3, %v2005_v15  ;;  %v1885_v10 = vmax.f32 %v4687_v17, %v1828_v23  ;;  %v1829_v59 = vmax.f32 %v1326_v0, %v1649_v58  ;;  %v2969_v54 = vpop.f32.mrb[151].mxu1  ;;  %v4697_v0 = vmax.f32 %v3787_v18, %v4696_v25  ;;  %v4708_v25 = vld [vmem:[#allocation17_spill] sm:$0xff] }
 0x22a   : > { %v1949_v57 = vadd.f32 %v4164_v52, %v1885_v10  ;;  %v1886_v5 = vmax.f32 %v4690_v2, %v1829_v59  ;;  %v4698_v10 = vld [vmem:[#allocation11_spill] sm:$0xff]  ;;  %v4699_v59 = vld [vmem:[#allocation12_spill] sm:$0xff] }
 0x22b   : > { %v4700_v54 = vmax.f32 %v4698_v10, %v4699_v59 }
 0x22c   : > { %v2006_v51 = vmax.f32 %v1949_v57, 0.0  ;;  %v1950_v50 = vadd.f32 %v4164_v52, %v1886_v5 }
 0x22d   : > { %v1331_v1 = vpop.f32.mrb[152].mxu0  ;;  %v1654_v60 = vpop.f32.mrb[152].mxu1 }
 0x22e   : > { %v2842_v61 = vpop.f32.mrb[153].mxu0  ;;  %2064 = vst.msk [vmem:[%s4183_s29 + $0x80] sm:$0xff] %vm2047_vm3, %v2006_v51  ;;  %v2007_v20 = vmax.f32 %v1950_v50, 0.0  ;;  %v1830_v32 = vmax.f32 %v1331_v1, %v1654_v60  ;;  %v2972_v21 = vpop.f32.mrb[153].mxu1 }
 0x22f   : > { %v1334_v8 = vpop.f32.mrb[154].mxu0  ;;  %v1657_v9 = vpop.f32.mrb[154].mxu1 }
 0x230   : > { %v2843_v19 = vpop.f32.mrb[155].mxu0  ;;  %2065 = vst.msk [vmem:[%s4183_s29 + $0x88] sm:$0xff] %vm2047_vm3, %v2007_v20  ;;  %v1887_v27 = vmax.f32 %v4692_v3, %v1830_v32  ;;  %v1831_v13 = vmax.f32 %v1334_v8, %v1657_v9  ;;  %v2973_v42 = vpop.f32.mrb[155].mxu1  ;;  %v4701_v32 = vld [vmem:[#allocation13_spill] sm:$0xff]  ;;  %v4703_v3 = vld [vmem:[#allocation14_spill] sm:$0xff] }
 0x231   : > { %v4702_v21 = vmax.f32 %v3807_v24, %v4701_v32  ;;  %v4714_v32 = vld [vmem:[#allocation21_spill] sm:$0xff] }
 0x232   : > { %v1951_v26 = vadd.f32 %v4164_v52, %v1887_v27  ;;  %v1888_v4 = vmax.f32 %v4695_v63, %v1831_v13  ;;  %v4704_v27 = vld [vmem:[#allocation15_spill] sm:$0xff] }
 0x233   : > { %v4705_v13 = vmax.f32 %v4703_v3, %v4704_v27 }
 0x234   : > { %v2008_v29 = vmax.f32 %v1951_v26, 0.0  ;;  %v1952_v33 = vadd.f32 %v4164_v52, %v1888_v4 }
 0x235   : > { %v1339_v49 = vpop.f32.mrb[156].mxu0  ;;  %v1662_v55 = vpop.f32.mrb[156].mxu1 }
 0x236   : > { %v2846_v56 = vpop.f32.mrb[157].mxu0  ;;  %2066 = vst.msk [vmem:[%s4183_s29 + $0x90] sm:$0xff] %vm2047_vm3, %v2008_v29  ;;  %v2009_v53 = vmax.f32 %v1952_v33, 0.0  ;;  %v1832_v12 = vmax.f32 %v1339_v49, %v1662_v55  ;;  %v2976_v11 = vpop.f32.mrb[157].mxu1 }
 0x237   : > { %v1342_v14 = vpop.f32.mrb[158].mxu0  ;;  %v1665_v15 = vpop.f32.mrb[158].mxu1 }
 0x238   : > { %v2847_v23 = vpop.f32.mrb[159].mxu0  ;;  %2067 = vst.msk [vmem:[%s4183_s29 + $0x98] sm:$0xff] %vm2047_vm3, %v2009_v53  ;;  %v1889_v58 = vmax.f32 %v4697_v0, %v1832_v12  ;;  %v1833_v39 = vmax.f32 %v1342_v14, %v1665_v15  ;;  %v2977_v40 = vpop.f32.mrb[159].mxu1  ;;  %v4706_v53 = vld [vmem:[#allocation16_spill] sm:$0xff]  ;;  %v4709_v0 = vld [vmem:[#allocation18_spill] sm:$0xff] }
 0x239   : > { %v4707_v12 = vmax.f32 %v3827_v6, %v4706_v53 }
 0x23a   : > { %v1953_v17 = vadd.f32 %v4164_v52, %v1889_v58  ;;  %v1890_v57 = vmax.f32 %v4700_v54, %v1833_v39  ;;  %v4710_v58 = vmax.f32 %v4708_v25, %v4709_v0 }
 0x23c   : > { %v2010_v41 = vmax.f32 %v1953_v17, 0.0  ;;  %v1954_v62 = vadd.f32 %v4164_v52, %v1890_v57 }
 0x23d   : > { %v1347_v2 = vpop.f32.mrb[160].mxu0  ;;  %v1670_v5 = vpop.f32.mrb[160].mxu1 }
 0x23e   : > { %v2850_v51 = vpop.f32.mrb[161].mxu0  ;;  %2068 = vst.msk [vmem:[%s4183_s29 + $0xa0] sm:$0xff] %vm2047_vm3, %v2010_v41  ;;  %v2011_v50 = vmax.f32 %v1954_v62, 0.0  ;;  %v1834_v18 = vmax.f32 %v1347_v2, %v1670_v5  ;;  %v2980_v1 = vpop.f32.mrb[161].mxu1 }
 0x23f   : > { %v1350_v60 = vpop.f32.mrb[162].mxu0  ;;  %v1673_v61 = vpop.f32.mrb[162].mxu1  ;;  %v4711_v51 = vld [vmem:[#allocation19_spill] sm:$0xff] }
 0x240   : > { %v2851_v20 = vpop.f32.mrb[163].mxu0  ;;  %2069 = vst.msk [vmem:[%s4183_s29 + $0xa8] sm:$0xff] %vm2047_vm3, %v2011_v50  ;;  %v1891_v8 = vmax.f32 %v4702_v21, %v1834_v18  ;;  %v1835_v9 = vmax.f32 %v1350_v60, %v1673_v61  ;;  %v2981_v19 = vpop.f32.mrb[163].mxu1  ;;  %v4712_v50 = vmax.f32 %v3847_v7, %v4711_v51 }
 0x241   : > { %v4713_v20 = vld [vmem:[#allocation20_spill] sm:$0xff] }
 0x242   : > { %v1955_v22 = vadd.f32 %v4164_v52, %v1891_v8  ;;  %v1892_v42 = vmax.f32 %v4705_v13, %v1835_v9  ;;  %v4715_v21 = vmax.f32 %v4713_v20, %v4714_v32 }
 0x244   : > { %v2012_v26 = vmax.f32 %v1955_v22, 0.0  ;;  %v1956_v16 = vadd.f32 %v4164_v52, %v1892_v42 }
 0x245   : > { %v1355_v28 = vpop.f32.mrb[164].mxu0  ;;  %v1678_v63 = vpop.f32.mrb[164].mxu1 }
 0x246   : > { %v2854_v4 = vpop.f32.mrb[165].mxu0  ;;  %2070 = vst.msk [vmem:[%s4183_s29 + $0xb0] sm:$0xff] %vm2047_vm3, %v2012_v26  ;;  %v2013_v29 = vmax.f32 %v1956_v16, 0.0  ;;  %v1836_v24 = vmax.f32 %v1355_v28, %v1678_v63  ;;  %v2984_v33 = vpop.f32.mrb[165].mxu1  ;;  %v4716_v63 = vld [vmem:[#allocation22_spill] sm:$0xff] }
 0x247   : > { %v1358_v49 = vpop.f32.mrb[166].mxu0  ;;  %v1681_v55 = vpop.f32.mrb[166].mxu1  ;;  %v4717_v4 = vmax.f32 %v3867_v30, %v4716_v63 }
 0x248   : > { %v2855_v56 = vpop.f32.mrb[167].mxu0  ;;  %2071 = vst.msk [vmem:[%s4183_s29 + $0xb8] sm:$0xff] %vm2047_vm3, %v2013_v29  ;;  %v1893_v11 = vmax.f32 %v4707_v12, %v1836_v24  ;;  %v1837_v14 = vmax.f32 %v1358_v49, %v1681_v55  ;;  %v2985_v15 = vpop.f32.mrb[167].mxu1  ;;  %v4718_v55 = vld [vmem:[#allocation23_spill] sm:$0xff] }
 0x249   : > { %v4719_v56 = vld [vmem:[#allocation24_spill] sm:$0xff] }
 0x24a   : > { %v1957_v23 = vadd.f32 %v4164_v52, %v1893_v11  ;;  %v1894_v39 = vmax.f32 %v4710_v58, %v1837_v14  ;;  %v4720_v53 = vmax.f32 %v4718_v55, %v4719_v56 }
 0x24c   : > { %v2014_v40 = vmax.f32 %v1957_v23, 0.0  ;;  %v1958_v17 = vadd.f32 %v4164_v52, %v1894_v39 }
 0x24d   : > { %v1363_v10 = vpop.f32.mrb[168].mxu0  ;;  %v1686_v59 = vpop.f32.mrb[168].mxu1 }
 0x24e   : > { %v2858_v54 = vpop.f32.mrb[169].mxu0  ;;  %2072 = vst.msk [vmem:[%s4183_s29 + $0xc0] sm:$0xff] %vm2047_vm3, %v2014_v40  ;;  %v2015_v57 = vmax.f32 %v1958_v17, 0.0  ;;  %v1838_v6 = vmax.f32 %v1363_v10, %v1686_v59  ;;  %v2988_v41 = vpop.f32.mrb[169].mxu1  ;;  %v4721_v10 = vld [vmem:[#allocation25_spill] sm:$0xff] }
 0x24f   : > { %v1366_v62 = vpop.f32.mrb[170].mxu0  ;;  %v1689_v2 = vpop.f32.mrb[170].mxu1  ;;  %v4722_v59 = vmax.f32 %v3887_v31, %v4721_v10 }
 0x250   : > { %v2859_v5 = vpop.f32.mrb[171].mxu0  ;;  %2073 = vst.msk [vmem:[%s4183_s29 + $0xc8] sm:$0xff] %vm2047_vm3, %v2015_v57  ;;  %v1895_v18 = vmax.f32 %v4712_v50, %v1838_v6  ;;  %v1839_v1 = vmax.f32 %v1366_v62, %v1689_v2  ;;  %v2989_v60 = vpop.f32.mrb[171].mxu1  ;;  %v4723_v62 = vld [vmem:[#allocation26_spill] sm:$0xff]  ;;  %v4724_v2 = vld [vmem:[#allocation27_spill] sm:$0xff] }
 0x251   : > { %v4725_v5 = vmax.f32 %v4723_v62, %v4724_v2 }
 0x252   : > { %v1959_v61 = vadd.f32 %v4164_v52, %v1895_v18  ;;  %v1896_v8 = vmax.f32 %v4715_v21, %v1839_v1 }
 0x254   : > { %v2016_v9 = vmax.f32 %v1959_v61, 0.0  ;;  %v1960_v19 = vadd.f32 %v4164_v52, %v1896_v8 }
 0x255   : > { %v1371_v22 = vpop.f32.mrb[172].mxu0  ;;  %v1694_v3 = vpop.f32.mrb[172].mxu1 }
 0x256   : > { %v2862_v27 = vpop.f32.mrb[173].mxu0  ;;  %2074 = vst.msk [vmem:[%s4183_s29 + $0xd0] sm:$0xff] %vm2047_vm3, %v2016_v9  ;;  %v2017_v13 = vmax.f32 %v1960_v19, 0.0  ;;  %v1840_v7 = vmax.f32 %v1371_v22, %v1694_v3  ;;  %v2992_v42 = vpop.f32.mrb[173].mxu1  ;;  %v4726_v19 = vld [vmem:[#allocation28_spill] sm:$0xff] }
 0x257   : > { %v1374_v26 = vpop.f32.mrb[174].mxu0  ;;  %v1697_v16 = vpop.f32.mrb[174].mxu1  ;;  %v4727_v22 = vmax.f32 %v3907_v34, %v4726_v19  ;;  %v4728_v42 = vld [vmem:[#allocation29_spill] sm:$0xff] }
 0x258   : > { %v2863_v28 = vpop.f32.mrb[175].mxu0  ;;  %2075 = vst.msk [vmem:[%s4183_s29 + $0xd8] sm:$0xff] %vm2047_vm3, %v2017_v13  ;;  %v1897_v29 = vmax.f32 %v4717_v4, %v1840_v7  ;;  %v1841_v24 = vmax.f32 %v1374_v26, %v1697_v16  ;;  %v2993_v33 = vpop.f32.mrb[175].mxu1  ;;  %v4729_v26 = vld [vmem:[#allocation30_spill] sm:$0xff] }
 0x259   : > { %v4730_v16 = vmax.f32 %v4728_v42, %v4729_v26 }
 0x25a   : > { %v1961_v49 = vadd.f32 %v4164_v52, %v1897_v29  ;;  %v1898_v12 = vmax.f32 %v4720_v53, %v1841_v24 }
 0x25c   : > { %v2018_v11 = vmax.f32 %v1961_v49, 0.0  ;;  %v1962_v14 = vadd.f32 %v4164_v52, %v1898_v12 }
 0x25d   : > { %v1379_v15 = vpop.f32.mrb[176].mxu0  ;;  %v1702_v23 = vpop.f32.mrb[176].mxu1 }
 0x25e   : > { %v2866_v25 = vpop.f32.mrb[177].mxu0  ;;  %2076 = vst.msk [vmem:[%s4183_s29 + $0xe0] sm:$0xff] %vm2047_vm3, %v2018_v11  ;;  %v2019_v0 = vmax.f32 %v1962_v14, 0.0  ;;  %v1842_v30 = vmax.f32 %v1379_v15, %v1702_v23  ;;  %v2996_v58 = vpop.f32.mrb[177].mxu1  ;;  %v4731_v11 = vld [vmem:[#allocation31_spill] sm:$0xff] }
 0x25f   : > { %v1382_v39 = vpop.f32.mrb[178].mxu0  ;;  %v1705_v40 = vpop.f32.mrb[178].mxu1  ;;  %v4732_v14 = vmax.f32 %v3927_v35, %v4731_v11  ;;  %v4734_v58 = vld [vmem:[#allocation33_spill] sm:$0xff] }
 0x260   : > { %v2867_v17 = vpop.f32.mrb[179].mxu0  ;;  %2077 = vst.msk [vmem:[%s4183_s29 + $0xe8] sm:$0xff] %vm2047_vm3, %v2019_v0  ;;  %v1899_v54 = vmax.f32 %v4722_v59, %v1842_v30  ;;  %v1843_v57 = vmax.f32 %v1382_v39, %v1705_v40  ;;  %v2997_v6 = vpop.f32.mrb[179].mxu1  ;;  %v4733_v30 = vld [vmem:[#allocation32_spill] sm:$0xff] }
 0x261   : > { %v4735_v39 = vmax.f32 %v4733_v30, %v4734_v58  ;;  %v4746_v58 = vld [vmem:[#allocation40_spill] sm:$0xff] }
 0x262   : > { %v1963_v41 = vadd.f32 %v4164_v52, %v1899_v54  ;;  %v1900_v51 = vmax.f32 %v4725_v5, %v1843_v57 }
 0x264   : > { %v2020_v50 = vmax.f32 %v1963_v41, 0.0  ;;  %v1964_v18 = vadd.f32 %v4164_v52, %v1900_v51  ;;  %v4736_v51 = vld [vmem:[#allocation34_spill] sm:$0xff] }
 0x265   : > { %v1387_v1 = vpop.f32.mrb[180].mxu0  ;;  %v1710_v60 = vpop.f32.mrb[180].mxu1 }
 0x266   : > { %v2870_v61 = vpop.f32.mrb[181].mxu0  ;;  %2078 = vst.msk [vmem:[%s4183_s29 + $0xf0] sm:$0xff] %vm2047_vm3, %v2020_v50  ;;  %v2021_v20 = vmax.f32 %v1964_v18, 0.0  ;;  %v1844_v31 = vmax.f32 %v1387_v1, %v1710_v60  ;;  %v3000_v32 = vpop.f32.mrb[181].mxu1  ;;  %v4737_v50 = vmax.f32 %v3947_v36, %v4736_v51 }
 0x267   : > { %v1390_v21 = vpop.f32.mrb[182].mxu0  ;;  %v1713_v8 = vpop.f32.mrb[182].mxu1 }
 0x268   : > { %v2871_v9 = vpop.f32.mrb[183].mxu0  ;;  %2079 = vst.msk [vmem:[%s4183_s29 + $0xf8] sm:$0xff] %vm2047_vm3, %v2021_v20  ;;  %v1901_v3 = vmax.f32 %v4727_v22, %v1844_v31  ;;  %v1845_v27 = vmax.f32 %v1390_v21, %v1713_v8  ;;  %v3001_v13 = vpop.f32.mrb[183].mxu1  ;;  %v4738_v20 = vld [vmem:[#allocation35_spill] sm:$0xff]  ;;  %v4739_v31 = vld [vmem:[#allocation36_spill] sm:$0xff] }
 0x269   : > { %v4740_v32 = vmax.f32 %v4738_v20, %v4739_v31  ;;  %v4751_v20 = vld [vmem:[#allocation43_spill] sm:$0xff] }
 0x26a   : > { %v1965_v7 = vadd.f32 %v4164_v52, %v1901_v3  ;;  %v1902_v28 = vmax.f32 %v4730_v16, %v1845_v27  ;;  %v4741_v16 = vld [vmem:[#allocation37_spill] sm:$0xff]  ;;  %v4752_v31 = vmax.f32 %v4007_v43, %v4751_v20 }
 0x26c   : > { %v2022_v63 = vmax.f32 %v1965_v7, 0.0  ;;  %v1966_v4 = vadd.f32 %v4164_v52, %v1902_v28  ;;  %v4742_v28 = vmax.f32 %v3967_v37, %v4741_v16 }
 0x26d   : > { %v1395_v29 = vpop.f32.mrb[184].mxu0  ;;  %v1718_v24 = vpop.f32.mrb[184].mxu1 }
 0x26e   : > { %v2874_v33 = vpop.f32.mrb[185].mxu0  ;;  %2080 = vst.msk [vmem:[%s4183_s29 + $0x100] sm:$0xff] %vm2047_vm3, %v2022_v63  ;;  %v2023_v49 = vmax.f32 %v1966_v4, 0.0  ;;  %v1846_v34 = vmax.f32 %v1395_v29, %v1718_v24  ;;  %v3004_v55 = vpop.f32.mrb[185].mxu1 }
 0x26f   : > { %v1398_v56 = vpop.f32.mrb[186].mxu0  ;;  %v1721_v53 = vpop.f32.mrb[186].mxu1  ;;  %v4743_v33 = vld [vmem:[#allocation38_spill] sm:$0xff] }
 0x270   : > { %v2875_v12 = vpop.f32.mrb[187].mxu0  ;;  %2081 = vst.msk [vmem:[%s4183_s29 + $0x108] sm:$0xff] %vm2047_vm3, %v2023_v49  ;;  %v1903_v15 = vmax.f32 %v4732_v14, %v1846_v34  ;;  %v1847_v23 = vmax.f32 %v1398_v56, %v1721_v53  ;;  %v3005_v25 = vpop.f32.mrb[187].mxu1  ;;  %v4744_v49 = vld [vmem:[#allocation39_spill] sm:$0xff] }
 0x271   : > { %v4745_v34 = vmax.f32 %v4743_v33, %v4744_v49 }
 0x272   : > { %v1967_v0 = vadd.f32 %v4164_v52, %v1903_v15  ;;  %v1904_v40 = vmax.f32 %v4735_v39, %v1847_v23  ;;  %v4747_v39 = vmax.f32 %v3987_v38, %v4746_v58 }
 0x274   : > { %v2024_v17 = vmax.f32 %v1967_v0, 0.0  ;;  %v1968_v10 = vadd.f32 %v4164_v52, %v1904_v40 }
 0x275   : > { %v1403_v59 = vpop.f32.mrb[188].mxu0  ;;  %v1726_v54 = vpop.f32.mrb[188].mxu1 }
 0x276   : > { %v2878_v57 = vpop.f32.mrb[189].mxu0  ;;  %2082 = vst.msk [vmem:[%s4183_s29 + $0x110] sm:$0xff] %vm2047_vm3, %v2024_v17  ;;  %v2025_v6 = vmax.f32 %v1968_v10, 0.0  ;;  %v1848_v35 = vmax.f32 %v1403_v59, %v1726_v54  ;;  %v3008_v41 = vpop.f32.mrb[189].mxu1  ;;  %v4748_v54 = vld [vmem:[#allocation41_spill] sm:$0xff] }
 0x277   : > { %v1406_v62 = vpop.f32.mrb[190].mxu0  ;;  %v1729_v2 = vpop.f32.mrb[190].mxu1  ;;  %v4749_v57 = vld [vmem:[#allocation42_spill] sm:$0xff] }
 0x278   : > { %v2879_v5 = vpop.f32.mrb[191].mxu0  ;;  %2083 = vst.msk [vmem:[%s4183_s29 + $0x118] sm:$0xff] %vm2047_vm3, %v2025_v6  ;;  %v1905_v18 = vmax.f32 %v4737_v50, %v1848_v35  ;;  %v1849_v1 = vmax.f32 %v1406_v62, %v1729_v2  ;;  %v3009_v60 = vpop.f32.mrb[191].mxu1  ;;  %v4750_v6 = vmax.f32 %v4748_v54, %v4749_v57 }
 0x27a   : > { %v1969_v61 = vadd.f32 %v4164_v52, %v1905_v18  ;;  %v1906_v21 = vmax.f32 %v4740_v32, %v1849_v1 }
 0x27c   : > { %v2026_v8 = vmax.f32 %v1969_v61, 0.0  ;;  %v1970_v9 = vadd.f32 %v4164_v52, %v1906_v21 }
 0x27d   : > { %v1411_v19 = vpop.f32.mrb[192].mxu0  ;;  %v1734_v22 = vpop.f32.mrb[192].mxu1 }
 0x27e   : > { %v2882_v3 = vpop.f32.mrb[193].mxu0  ;;  %2084 = vst.msk [vmem:[%s4183_s29 + $0x120] sm:$0xff] %vm2047_vm3, %v2026_v8  ;;  %v2027_v27 = vmax.f32 %v1970_v9, 0.0  ;;  %v1850_v36 = vmax.f32 %v1411_v19, %v1734_v22  ;;  %v3012_v13 = vpop.f32.mrb[193].mxu1  ;;  %v4753_v19 = vld [vmem:[#allocation44_spill] sm:$0xff]  ;;  %v4754_v22 = vld [vmem:[#allocation45_spill] sm:$0xff] }
 0x27f   : > { %v1414_v7 = vpop.f32.mrb[194].mxu0  ;;  %v1737_v42 = vpop.f32.mrb[194].mxu1  ;;  %v4755_v3 = vmax.f32 %v4753_v19, %v4754_v22 }
 0x280   : > { %v2883_v26 = vpop.f32.mrb[195].mxu0  ;;  %2085 = vst.msk [vmem:[%s4183_s29 + $0x128] sm:$0xff] %vm2047_vm3, %v2027_v27  ;;  %v1907_v63 = vmax.f32 %v4742_v28, %v1850_v36  ;;  %v1851_v4 = vmax.f32 %v1414_v7, %v1737_v42  ;;  %v3013_v29 = vpop.f32.mrb[195].mxu1 }
 0x282   : > { %v1971_v24 = vadd.f32 %v4164_v52, %v1907_v63  ;;  %v1908_v55 = vmax.f32 %v4745_v34, %v1851_v4 }
 0x284   : > { %v2028_v56 = vmax.f32 %v1971_v24, 0.0  ;;  %v1972_v53 = vadd.f32 %v4164_v52, %v1908_v55  ;;  %v4756_v24 = vld [vmem:[#allocation46_spill] sm:$0xff] }
 0x285   : > { %v1419_v12 = vpop.f32.mrb[196].mxu0  ;;  %v1742_v11 = vpop.f32.mrb[196].mxu1  ;;  %v4757_v33 = vmax.f32 %v4027_v44, %v4756_v24 }
 0x286   : > { %v2886_v14 = vpop.f32.mrb[197].mxu0  ;;  %2086 = vst.msk [vmem:[%s4183_s29 + $0x130] sm:$0xff] %vm2047_vm3, %v2028_v56  ;;  %v2029_v15 = vmax.f32 %v1972_v53, 0.0  ;;  %v1852_v37 = vmax.f32 %v1419_v12, %v1742_v11  ;;  %v3016_v23 = vpop.f32.mrb[197].mxu1  ;;  %v4758_v53 = vld [vmem:[#allocation47_spill] sm:$0xff]  ;;  %v4759_v12 = vld [vmem:[#allocation48_spill] sm:$0xff] }
 0x287   : > { %v1422_v25 = vpop.f32.mrb[198].mxu0  ;;  %v1745_v0 = vpop.f32.mrb[198].mxu1  ;;  %v4760_v11 = vmax.f32 %v4758_v53, %v4759_v12 }
 0x288   : > { %v2887_v30 = vpop.f32.mrb[199].mxu0  ;;  %2087 = vst.msk [vmem:[%s4183_s29 + $0x138] sm:$0xff] %vm2047_vm3, %v2029_v15  ;;  %v1909_v40 = vmax.f32 %v4747_v39, %v1852_v37  ;;  %v1853_v17 = vmax.f32 %v1422_v25, %v1745_v0  ;;  %v3017_v10 = vpop.f32.mrb[199].mxu1 }
 0x289   : > { %v4761_v10 = vld [vmem:[#allocation49_spill] sm:$0xff] }
 0x28a   : > { %v1973_v59 = vadd.f32 %v4164_v52, %v1909_v40  ;;  %v1910_v35 = vmax.f32 %v4750_v6, %v1853_v17 }
 0x28c   : > { %v2030_v41 = vmax.f32 %v1973_v59, 0.0  ;;  %v1974_v62 = vadd.f32 %v4164_v52, %v1910_v35  ;;  %v4762_v59 = vmax.f32 %v4047_v45, %v4761_v10 }
 0x28d   : > { %v1427_v2 = vpop.f32.mrb[200].mxu0  ;;  %v1750_v5 = vpop.f32.mrb[200].mxu1 }
 0x28e   : > { %v2890_v51 = vpop.f32.mrb[201].mxu0  ;;  %2088 = vst.msk [vmem:[%s4183_s29 + $0x140] sm:$0xff] %vm2047_vm3, %v2030_v41  ;;  %v2031_v50 = vmax.f32 %v1974_v62, 0.0  ;;  %v1854_v38 = vmax.f32 %v1427_v2, %v1750_v5  ;;  %v3020_v18 = vpop.f32.mrb[201].mxu1  ;;  %v4763_v41 = vld [vmem:[#allocation50_spill] sm:$0xff]  ;;  %v4764_v62 = vld [vmem:[#allocation51_spill] sm:$0xff] }
 0x28f   : > { %v1430_v1 = vpop.f32.mrb[202].mxu0  ;;  %v1753_v60 = vpop.f32.mrb[202].mxu1  ;;  %v4765_v2 = vmax.f32 %v4763_v41, %v4764_v62  ;;  %v4778_v62 = vld [vmem:[#allocation59_spill] sm:$0xff] }
 0x290   : > { %v2891_v61 = vpop.f32.mrb[203].mxu0  ;;  %2089 = vst.msk [vmem:[%s4183_s29 + $0x148] sm:$0xff] %vm2047_vm3, %v2031_v50  ;;  %v1911_v32 = vmax.f32 %v4752_v31, %v1854_v38  ;;  %v1855_v21 = vmax.f32 %v1430_v1, %v1753_v60  ;;  %v3021_v8 = vpop.f32.mrb[203].mxu1 }
 0x292   : > { %v1975_v9 = vadd.f32 %v4164_v52, %v1911_v32  ;;  %v1912_v27 = vmax.f32 %v4755_v3, %v1855_v21  ;;  %v4766_v21 = vld [vmem:[#allocation52_spill] sm:$0xff] }
 0x293   : > { %v4767_v8 = vmax.f32 %v4067_v46, %v4766_v21  ;;  %v4781_v21 = vld [vmem:[#allocation61_spill] sm:$0xff] }
 0x294   : > { %v2032_v36 = vmax.f32 %v1975_v9, 0.0  ;;  %v1976_v13 = vadd.f32 %v4164_v52, %v1912_v27  ;;  %v4768_v27 = vld [vmem:[#allocation53_spill] sm:$0xff] }
 0x295   : > { %v1435_v7 = vpop.f32.mrb[204].mxu0  ;;  %v1758_v42 = vpop.f32.mrb[204].mxu1 }
 0x296   : > { %v2894_v26 = vpop.f32.mrb[205].mxu0  ;;  %2090 = vst.msk [vmem:[%s4183_s29 + $0x150] sm:$0xff] %vm2047_vm3, %v2032_v36  ;;  %v2033_v16 = vmax.f32 %v1976_v13, 0.0  ;;  %v1856_v43 = vmax.f32 %v1435_v7, %v1758_v42  ;;  %v3024_v28 = vpop.f32.mrb[205].mxu1  ;;  %v4769_v36 = vld [vmem:[#allocation54_spill] sm:$0xff] }
 0x297   : > { %v1438_v63 = vpop.f32.mrb[206].mxu0  ;;  %v1761_v4 = vpop.f32.mrb[206].mxu1  ;;  %v4770_v13 = vmax.f32 %v4768_v27, %v4769_v36  ;;  %v4784_v36 = vld [vmem:[#allocation63_spill] sm:$0xff] }
 0x298   : > { %v2895_v29 = vpop.f32.mrb[207].mxu0  ;;  %2091 = vst.msk [vmem:[%s4183_s29 + $0x158] sm:$0xff] %vm2047_vm3, %v2033_v16  ;;  %v1913_v49 = vmax.f32 %v4757_v33, %v1856_v43  ;;  %v1857_v34 = vmax.f32 %v1438_v63, %v1761_v4  ;;  %v3025_v55 = vpop.f32.mrb[207].mxu1 }
 0x29a   : > { %v1977_v56 = vadd.f32 %v4164_v52, %v1913_v49  ;;  %v1914_v14 = vmax.f32 %v4760_v11, %v1857_v34  ;;  %v4771_v49 = vld [vmem:[#allocation55_spill] sm:$0xff]  ;;  %v4773_v11 = vld [vmem:[#allocation56_spill] sm:$0xff] }
 0x29b   : > { %v4772_v34 = vmax.f32 %v4087_v47, %v4771_v49 }
 0x29c   : > { %v2034_v15 = vmax.f32 %v1977_v56, 0.0  ;;  %v1978_v37 = vadd.f32 %v4164_v52, %v1914_v14  ;;  %v4774_v14 = vld [vmem:[#allocation57_spill] sm:$0xff] }
 0x29d   : > { %v1443_v23 = vpop.f32.mrb[208].mxu0  ;;  %v1766_v25 = vpop.f32.mrb[208].mxu1 }
 0x29e   : > { %v2898_v0 = vpop.f32.mrb[209].mxu0  ;;  %2092 = vst.msk [vmem:[%s4183_s29 + $0x160] sm:$0xff] %vm2047_vm3, %v2034_v15  ;;  %v2035_v30 = vmax.f32 %v1978_v37, 0.0  ;;  %v1858_v44 = vmax.f32 %v1443_v23, %v1766_v25  ;;  %v3028_v58 = vpop.f32.mrb[209].mxu1  ;;  %v4775_v15 = vmax.f32 %v4773_v11, %v4774_v14 }
 0x29f   : > { %v1446_v39 = vpop.f32.mrb[210].mxu0  ;;  %v1769_v40 = vpop.f32.mrb[210].mxu1 }
 0x2a0   : > { %v2899_v17 = vpop.f32.mrb[211].mxu0  ;;  %2093 = vst.msk [vmem:[%s4183_s29 + $0x168] sm:$0xff] %vm2047_vm3, %v2035_v30  ;;  %v1915_v54 = vmax.f32 %v4762_v59, %v1858_v44  ;;  %v1859_v57 = vmax.f32 %v1446_v39, %v1769_v40  ;;  %v3029_v6 = vpop.f32.mrb[211].mxu1  ;;  %v4776_v59 = vld [vmem:[#allocation58_spill] sm:$0xff] }
 0x2a2   : > { %v1979_v35 = vadd.f32 %v4164_v52, %v1915_v54  ;;  %v1916_v5 = vmax.f32 %v4765_v2, %v1859_v57  ;;  %v4777_v54 = vmax.f32 %v4107_v48, %v4776_v59  ;;  %v4779_v2 = vld [vmem:[#allocation60_spill] sm:$0xff] }
 0x2a4   : > { %v2036_v51 = vmax.f32 %v1979_v35, 0.0  ;;  %v1980_v50 = vadd.f32 %v4164_v52, %v1916_v5  ;;  %v4780_v5 = vmax.f32 %v4778_v62, %v4779_v2 }
 0x2a5   : > { %v1451_v38 = vpop.f32.mrb[212].mxu0  ;;  %v1774_v18 = vpop.f32.mrb[212].mxu1 }
 0x2a6   : > { %v2902_v1 = vpop.f32.mrb[213].mxu0  ;;  %2094 = vst.msk [vmem:[%s4183_s29 + $0x170] sm:$0xff] %vm2047_vm3, %v2036_v51  ;;  %v2037_v60 = vmax.f32 %v1980_v50, 0.0  ;;  %v1860_v45 = vmax.f32 %v1451_v38, %v1774_v18  ;;  %v3032_v61 = vpop.f32.mrb[213].mxu1 }
 0x2a7   : > { %v1454_v20 = vpop.f32.mrb[214].mxu0  ;;  %v1777_v31 = vpop.f32.mrb[214].mxu1 }
 0x2a8   : > { %v2903_v32 = vpop.f32.mrb[215].mxu0  ;;  %2095 = vst.msk [vmem:[%s4183_s29 + $0x178] sm:$0xff] %vm2047_vm3, %v2037_v60  ;;  %v1917_v9 = vmax.f32 %v4767_v8, %v1860_v45  ;;  %v1861_v19 = vmax.f32 %v1454_v20, %v1777_v31  ;;  %v3033_v22 = vpop.f32.mrb[215].mxu1  ;;  %v4782_v8 = vld [vmem:[#allocation62_spill] sm:$0xff] }
 0x2aa   : > { %v1981_v3 = vadd.f32 %v4164_v52, %v1917_v9  ;;  %v1918_v7 = vmax.f32 %v4770_v13, %v1861_v19  ;;  %v4783_v9 = vmax.f32 %v4781_v21, %v4782_v8  ;;  %v4785_v13 = vld [vmem:[#allocation64_spill] sm:$0xff] }
 0x2ac   : > { %v2038_v42 = vmax.f32 %v1981_v3, 0.0  ;;  %v1982_v26 = vadd.f32 %v4164_v52, %v1918_v7  ;;  %v4786_v7 = vmax.f32 %v4784_v36, %v4785_v13 }
 0x2ad   : > { %v1459_v16 = vpop.f32.mrb[216].mxu0  ;;  %v1782_v43 = vpop.f32.mrb[216].mxu1 }
 0x2ae   : > { %v2906_v28 = vpop.f32.mrb[217].mxu0  ;;  %2096 = vst.msk [vmem:[%s4183_s29 + $0x180] sm:$0xff] %vm2047_vm3, %v2038_v42  ;;  %v2039_v63 = vmax.f32 %v1982_v26, 0.0  ;;  %v1862_v46 = vmax.f32 %v1459_v16, %v1782_v43  ;;  %v3036_v4 = vpop.f32.mrb[217].mxu1 }
 0x2af   : > { %v1462_v29 = vpop.f32.mrb[218].mxu0  ;;  %v1785_v24 = vpop.f32.mrb[218].mxu1 }
 0x2b0   : > { %v2907_v33 = vpop.f32.mrb[219].mxu0  ;;  %2097 = vst.msk [vmem:[%s4183_s29 + $0x188] sm:$0xff] %vm2047_vm3, %v2039_v63  ;;  %v1919_v55 = vmax.f32 %v4772_v34, %v1862_v46  ;;  %v1863_v56 = vmax.f32 %v1462_v29, %v1785_v24  ;;  %v3037_v53 = vpop.f32.mrb[219].mxu1  ;;  %v4787_v34 = vld [vmem:[#allocation65_spill] sm:$0xff] }
 0x2b2   : > { %v1983_v12 = vadd.f32 %v4164_v52, %v1919_v55  ;;  %v1920_v37 = vmax.f32 %v4775_v15, %v1863_v56  ;;  %v4788_v55 = vld [vmem:[#allocation66_spill] sm:$0xff] }
 0x2b3   : > { %v4789_v56 = vmax.f32 %v4787_v34, %v4788_v55 }
 0x2b4   : > { %v2040_v23 = vmax.f32 %v1983_v12, 0.0  ;;  %v1984_v25 = vadd.f32 %v4164_v52, %v1920_v37 }
 0x2b5   : > { %v1467_v0 = vpop.f32.mrb[220].mxu0  ;;  %v1790_v30 = vpop.f32.mrb[220].mxu1 }
 0x2b6   : > { %v2910_v44 = vpop.f32.mrb[221].mxu0  ;;  %2098 = vst.msk [vmem:[%s4183_s29 + $0x190] sm:$0xff] %vm2047_vm3, %v2040_v23  ;;  %v2041_v58 = vmax.f32 %v1984_v25, 0.0  ;;  %v1864_v47 = vmax.f32 %v1467_v0, %v1790_v30  ;;  %v3040_v39 = vpop.f32.mrb[221].mxu1 }
 0x2b7   : > { %v1470_v40 = vpop.f32.mrb[222].mxu0  ;;  %v1793_v17 = vpop.f32.mrb[222].mxu1 }
 0x2b8   : > { %v2911_v10 = vpop.f32.mrb[223].mxu0  ;;  %2099 = vst.msk [vmem:[%s4183_s29 + $0x198] sm:$0xff] %vm2047_vm3, %v2041_v58  ;;  %v1921_v57 = vmax.f32 %v4777_v54, %v1864_v47  ;;  %v1865_v6 = vmax.f32 %v1470_v40, %v1793_v17  ;;  %v3041_v35 = vpop.f32.mrb[223].mxu1 }
 0x2ba   : > { %v1985_v41 = vadd.f32 %v4164_v52, %v1921_v57  ;;  %v1922_v51 = vmax.f32 %v4780_v5, %v1865_v6 }
 0x2bc   : > { %v2042_v50 = vmax.f32 %v1985_v41, 0.0  ;;  %v1986_v38 = vadd.f32 %v4164_v52, %v1922_v51 }
 0x2bd   : > { %v1475_v18 = vpop.f32.mrb[224].mxu0  ;;  %v1798_v1 = vpop.f32.mrb[224].mxu1 }
 0x2be   : > { %v2914_v60 = vpop.f32.mrb[225].mxu0  ;;  %2100 = vst.msk [vmem:[%s4183_s29 + $0x1a0] sm:$0xff] %vm2047_vm3, %v2042_v50  ;;  %v2043_v45 = vmax.f32 %v1986_v38, 0.0  ;;  %v1866_v48 = vmax.f32 %v1475_v18, %v1798_v1  ;;  %v3044_v61 = vpop.f32.mrb[225].mxu1 }
 0x2bf   : > { %v1478_v20 = vpop.f32.mrb[226].mxu0  ;;  %v1801_v31 = vpop.f32.mrb[226].mxu1 }
 0x2c0   : > { %v2915_v32 = vpop.f32.mrb[227].mxu0  ;;  %2101 = vst.msk [vmem:[%s4183_s29 + $0x1a8] sm:$0xff] %vm2047_vm3, %v2043_v45  ;;  %v1923_v19 = vmax.f32 %v4783_v9, %v1866_v48  ;;  %v1867_v22 = vmax.f32 %v1478_v20, %v1801_v31  ;;  %v3045_v3 = vpop.f32.mrb[227].mxu1 }
 0x2c2   : > { %v1987_v27 = vadd.f32 %v4164_v52, %v1923_v19  ;;  %v1924_v42 = vmax.f32 %v4786_v7, %v1867_v22 }
 0x2c4   : > { %v2044_v26 = vmax.f32 %v1987_v27, 0.0  ;;  %v1988_v16 = vadd.f32 %v4164_v52, %v1924_v42  ;;  %v3117_v52 = vld [vmem:[%s4533_s2] ss:$0 sm:$0xff] }
 0x2c5   : > { %v1483_v43 = vpop.f32.mrb[228].mxu0  ;;  %v1806_v28 = vpop.f32.mrb[228].mxu1 }
 0x2c6   : > { %v2918_v63 = vpop.f32.mrb[229].mxu0  ;;  %2102 = vst.msk [vmem:[%s4183_s29 + $0x1b0] sm:$0xff] %vm2047_vm3, %v2044_v26  ;;  %v2045_v46 = vmax.f32 %v1988_v16, 0.0  ;;  %v1868_v4 = vmax.f32 %v1483_v43, %v1806_v28  ;;  %v3048_v29 = vpop.f32.mrb[229].mxu1 }
 0x2c7   : > { %v1486_v24 = vpop.f32.mrb[230].mxu0  ;;  %v1809_v33 = vpop.f32.mrb[230].mxu1 }
 0x2c8   : > { %v2919_v49 = vpop.f32.mrb[231].mxu0  ;;  %2103 = vst.msk [vmem:[%s4183_s29 + $0x1b8] sm:$0xff] %vm2047_vm3, %v2045_v46  ;;  %v1925_v53 = vmax.f32 %v4789_v56, %v1868_v4  ;;  %v3049_v12 = vpop.f32.mrb[231].mxu1 }
 0x2ca   : > { %v1989_v11 = vadd.f32 %v3117_v52, %v1925_v53 }
 0x2cc   : > { %v2046_v14 = vmax.f32 %v1989_v11, 0.0 }
 0x2ce   : > { %2104 = vst.msk [vmem:[%s4183_s29 + $0x1c0] sm:$0xff] %vm2047_vm3, %v2046_v14 }
 0x2cf PF: > { %s13_s12 = sadd.s32 1, %s3124_s12  }
 0x2d0   : > { %p10_p4 = scmp.ge.s32.totalorder %s13_s12, 6  }
 0x2d2   :  { %12 = sbr.rel (!%p10_p4) target bundleno = 1 (0x1), region = 65 }

// kernel: net_forward.4
= control target key start
LH: loop header
LB: loop body
LE: loop exit
PB: predicated region body
PF: predicated region fallthrough
CT: control target
= control target key end

     0   :  { %v2262_v0 = vmov 0   ;;  %vm361_vm0 = vcmask 719872   ;;  %vm428_vm1 = vcmask 1043456   ;;  %vm1822_vm2 = vcmask 130048   ;;  %s3599_s1 = inlined_call_operand.vmem [shape: bf16[4,216,16], index: 1, kind: input, shape index: {}]   ;;  %s3600_s0 = inlined_call_operand.vmem [shape: bf16[344,216], index: 0, kind: input, shape index: {}]   ;;  %s3601_s2 = inlined_call_operand.vmem [shape: f32[1,16], index: 2, kind: input, shape index: {}]   ;;  %s3602_s3 = inlined_call_operand.vmem [shape: f32[344,16], index: 3, kind: output, shape index: {}]  }
   0x1   :  { %432 = vmatprep.subr.bf16.mxu0 %v2262_v0  ;;  %752 = vmatprep.subr.bf16.mxu1 %v2262_v0  ;;  %v2141_v1 = vld [vmem:[%s3599_s1] sm:$0xff]   ;;  %v2142_v2 = vld [vmem:[%s3599_s1 + $0x6c] sm:$0xff]   ;;  %v2144_v4 = vld [vmem:[%s3599_s1 + $0x74] sm:$0xff]  }
   0x2   :  { %433 = vmatpush1.bf16.msra.mxu0 %v2141_v1  ;;  %v2143_v3 = vld [vmem:[%s3599_s1 + $0x8] sm:$0xff]   ;;  %753 = vmatpush1.bf16.msra.mxu1 %v2142_v2  ;;  %v2145_v5 = vld [vmem:[%s3599_s1 + $0x10] sm:$0xff]   ;;  %v2146_v6 = vld [vmem:[%s3599_s1 + $0x7c] sm:$0xff]  }
   0x3   :  { %434 = vmatprep.subr.bf16.mxu0 %v2262_v0  ;;  %754 = vmatprep.subr.bf16.mxu1 %v2262_v0  ;;  %v2147_v7 = vld [vmem:[%s3599_s1 + $0x18] sm:$0xff]   ;;  %v2148_v8 = vld [vmem:[%s3599_s1 + $0x84] sm:$0xff]   ;;  %v2150_v10 = vld [vmem:[%s3599_s1 + $0x8c] sm:$0xff]  }
   0x4   :  { %v2149_v9 = vld [vmem:[%s3599_s1 + $0x20] sm:$0xff]   ;;  %v2151_v11 = vld [vmem:[%s3599_s1 + $0x28] sm:$0xff]   ;;  %v2152_v12 = vld [vmem:[%s3599_s1 + $0x94] sm:$0xff]  }
   0x5   :  { %v2153_v13 = vld [vmem:[%s3599_s1 + $0x30] sm:$0xff]   ;;  %v2154_v14 = vld [vmem:[%s3599_s1 + $0x9c] sm:$0xff]   ;;  %v2156_v16 = vld [vmem:[%s3599_s1 + $0xa4] sm:$0xff]  }
   0x6   :  { %435 = vmatpush1.bf16.msra.mxu0 %v2143_v3  ;;  %755 = vmatpush1.bf16.msra.mxu1 %v2144_v4  ;;  %v2155_v15 = vld [vmem:[%s3599_s1 + $0x38] sm:$0xff]   ;;  %v2350_v17 = vld [vmem:[%s3600_s0 + $0x4] ss:$8 sps:$4 sm:$0xff]   ;;  %v2161_v22 = vld [vmem:[%s3599_s1 + $0x50] sm:$0xff]  }
   0x7   :  { %436 = vmatprep.subr.bf16.mxu0 %v2262_v0  ;;  %756 = vmatprep.subr.bf16.mxu1 %v2262_v0  ;;  %v2157_v18 = vld [vmem:[%s3599_s1 + $0x40] sm:$0xff]   ;;  %v2158_v19 = vld [vmem:[%s3599_s1 + $0xac] sm:$0xff]   ;;  %v2160_v21 = vld [vmem:[%s3599_s1 + $0xb4] sm:$0xff]  }
   0x8   :  { %1928 = vmatprep.mubr.msk.bf16.mxu0 %vm361_vm0, %v2350_v17  ;;  %1991 = vmatprep.mubr.msk.bf16.mxu1 %vm361_vm0, %v2350_v17  ;;  %v2159_v20 = vld [vmem:[%s3599_s1 + $0x48] sm:$0xff]   ;;  %v2162_v23 = vld [vmem:[%s3599_s1 + $0xbc] sm:$0xff]   ;;  %v2168_v29 = vld [vmem:[%s3599_s1 + $0xd4] ss:$0 sps:$4 sm:$0xff]  }
   0x9   :  { %v2163_v24 = vld [vmem:[%s3599_s1 + $0x58] sm:$0xff]   ;;  %v2164_v25 = vld [vmem:[%s3599_s1 + $0xc4] sm:$0xff]   ;;  %v2166_v27 = vld [vmem:[%s3599_s1 + $0xcc] sm:$0xff]   ;;  %v750_v31 = vsel %vm428_vm1, %v2168_v29, 0 }
   0xa   :  { %437 = vmatpush1.bf16.msra.mxu0 %v2145_v5  ;;  %757 = vmatpush1.bf16.msra.mxu1 %v2146_v6  ;;  %v2165_v26 = vld [vmem:[%s3599_s1 + $0x60] sm:$0xff]   ;;  %v2167_v28 = vld [vmem:[%s3599_s1 + $0x68] ss:$0 sps:$4 sm:$0xff]   ;;  %v2172_v33 = vld [vmem:[%s3599_s1 + $0xd8] sm:$0xff]  }
   0xb   :  { %438 = vmatprep.subr.bf16.mxu0 %v2262_v0  ;;  %758 = vmatprep.subr.bf16.mxu1 %v2262_v0  ;;  %v430_v30 = vsel %vm428_vm1, %v2167_v28, 0  ;;  %v2409_v32 = vld [vmem:[%s3600_s0] ss:$8 sps:$4 sm:$0xff]   ;;  %v2421_v35 = vld [vmem:[%s3600_s0 + $0x14] ss:$8 sps:$4 sm:$0xff]   ;;  %v2178_v37 = vld [vmem:[%s3599_s1 + $0x14c] sm:$0xff]  }
   0xc   :  { %v2173_v34 = vld [vmem:[%s3599_s1 + $0x144] sm:$0xff]   ;;  %v2440_v38 = vld [vmem:[%s3600_s0 + $0x10] ss:$8 sps:$4 sm:$0xff]   ;;  %v2193_v43 = vld [vmem:[%s3599_s1 + $0x15c] sm:$0xff]  }
   0xd   :  { %v2177_v36 = vld [vmem:[%s3599_s1 + $0xe0] sm:$0xff]   ;;  %v2185_v40 = vld [vmem:[%s3599_s1 + $0xe8] sm:$0xff]   ;;  %v2186_v41 = vld [vmem:[%s3599_s1 + $0x154] sm:$0xff]  }
   0xe   :  { %439 = vmatpush1.bf16.msra.mxu0 %v2147_v7  ;;  %759 = vmatpush1.bf16.msra.mxu1 %v2148_v8  ;;  %v2446_v39 = vld [vmem:[%s3600_s0 + $0x24] ss:$8 sps:$4 sm:$0xff]   ;;  %v2192_v42 = vld [vmem:[%s3599_s1 + $0xf0] sm:$0xff]   ;;  %v2472_v44 = vld [vmem:[%s3600_s0 + $0x20] ss:$8 sps:$4 sm:$0xff]  }
   0xf   :  { %440 = vmatprep.subr.bf16.mxu0 %v2262_v0  ;;  %760 = vmatprep.subr.bf16.mxu1 %v2262_v0  ;;  %v2478_v45 = vld [vmem:[%s3600_s0 + $0x34] ss:$8 sps:$4 sm:$0xff]   ;;  %v2199_v47 = vld [vmem:[%s3599_s1 + $0x164] sm:$0xff]   ;;  %v2500_v49 = vld [vmem:[%s3600_s0 + $0x30] ss:$8 sps:$4 sm:$0xff]  }
  0x10   :  { %v2198_v46 = vld [vmem:[%s3599_s1 + $0xf8] sm:$0xff]   ;;  %v2206_v48 = vld [vmem:[%s3599_s1 + $0x100] sm:$0xff]   ;;  %v2207_v50 = vld [vmem:[%s3599_s1 + $0x16c] sm:$0xff]  }
  0x11   :  { %v2509_v51 = vld [vmem:[%s3600_s0 + $0x44] ss:$8 sps:$4 sm:$0xff]   ;;  %v2212_v53 = vld [vmem:[%s3599_s1 + $0x174] sm:$0xff]   ;;  %v2220_v55 = vld [vmem:[%s3599_s1 + $0x17c] sm:$0xff]  }
  0x12   :  { %441 = vmatpush1.bf16.msra.mxu0 %v2149_v9  ;;  %761 = vmatpush1.bf16.msra.mxu1 %v2150_v10  ;;  %v2211_v52 = vld [vmem:[%s3599_s1 + $0x108] sm:$0xff]   ;;  %v2219_v54 = vld [vmem:[%s3599_s1 + $0x110] sm:$0xff]   ;;  %v2224_v58 = vld [vmem:[%s3599_s1 + $0x118] sm:$0xff]  }
  0x13   :  { %442 = vmatprep.subr.bf16.mxu0 %v2262_v0  ;;  %762 = vmatprep.subr.bf16.mxu1 %v2262_v0  ;;  %v2536_v56 = vld [vmem:[%s3600_s0 + $0x40] ss:$8 sps:$4 sm:$0xff]   ;;  %v2542_v57 = vld [vmem:[%s3600_s0 + $0x54] ss:$8 sps:$4 sm:$0xff]   ;;  %v2233_v61 = vld [vmem:[%s3599_s1 + $0x18c] sm:$0xff]  }
  0x14   :  { %v2225_v59 = vld [vmem:[%s3599_s1 + $0x184] sm:$0xff]   ;;  %v2568_v62 = vld [vmem:[%s3600_s0 + $0x50] ss:$8 sps:$4 sm:$0xff]   ;;  %v2246_v4 = vld [vmem:[%s3599_s1 + $0x19c] sm:$0xff]  }
  0x15   :  { %v2232_v60 = vld [vmem:[%s3599_s1 + $0x120] sm:$0xff]   ;;  %v2239_v1 = vld [vmem:[%s3599_s1 + $0x128] sm:$0xff]   ;;  %v2240_v2 = vld [vmem:[%s3599_s1 + $0x194] sm:$0xff]  }
  0x16   :  { %443 = vmatpush1.bf16.msra.mxu0 %v2151_v11  ;;  %763 = vmatpush1.bf16.msra.mxu1 %v2152_v12  ;;  %v2574_v63 = vld [vmem:[%s3600_s0 + $0x64] ss:$8 sps:$4 sm:$0xff]   ;;  %v2245_v3 = vld [vmem:[%s3599_s1 + $0x130] sm:$0xff]   ;;  %v2600_v5 = vld [vmem:[%s3600_s0 + $0x60] ss:$8 sps:$4 sm:$0xff]  }
  0x17   :  { %444 = vmatprep.subr.bf16.mxu0 %v2262_v0  ;;  %764 = vmatprep.subr.bf16.mxu1 %v2262_v0  ;;  %v2606_v6 = vld [vmem:[%s3600_s0 + $0x74] ss:$8 sps:$4 sm:$0xff]   ;;  %v2254_v8 = vld [vmem:[%s3599_s1 + $0x1a4] sm:$0xff]   ;;  %v2258_v9 = vld [vmem:[%s3599_s1 + $0x140] ss:$0 sps:$4 sm:$0xff]  }
  0x18   :  { %v2253_v7 = vld [vmem:[%s3599_s1 + $0x138] sm:$0xff]   ;;  %v2259_v10 = vld [vmem:[%s3599_s1 + $0x1ac] ss:$0 sps:$4 sm:$0xff]   ;;  %v1113_v11 = vsel %vm428_vm1, %v2258_v9, 0 }
  0x19   :  { %v2633_v12 = vld [vmem:[%s3600_s0 + $0x70] ss:$8 sps:$4 sm:$0xff]   ;;  %v2752_v28 = vld [vmem:[%s3600_s0 + $0xf4] ss:$8 sps:$4 sm:$0xff]  }
  0x1a   :  { %445 = vmatpush1.bf16.msra.mxu0 %v2153_v13  ;;  %765 = vmatpush1.bf16.msra.mxu1 %v2154_v14  ;;  %v1433_v13 = vsel %vm428_vm1, %v2259_v10, 0  ;;  %v2640_v14 = vld [vmem:[%s3600_s0 + $0x84] ss:$8 sps:$4 sm:$0xff]   ;;  %v2763_v29 = vld [vmem:[%s3600_s0 + $0xf0] ss:$8 sps:$4 sm:$0xff]  }
  0x1b   :  { %446 = vmatprep.subr.bf16.mxu0 %v2262_v0  ;;  %766 = vmatprep.subr.bf16.mxu1 %v2262_v0 }
  0x1e   :  { %447 = vmatpush1.bf16.msra.mxu0 %v2155_v15  ;;  %767 = vmatpush1.bf16.msra.mxu1 %v2156_v16  ;;  %v2656_v15 = vld [vmem:[%s3600_s0 + $0x94] ss:$8 sps:$4 sm:$0xff]   ;;  %v2667_v16 = vld [vmem:[%s3600_s0 + $0x90] ss:$8 sps:$4 sm:$0xff]  }
  0x1f   :  { %448 = vmatprep.subr.bf16.mxu0 %v2262_v0  ;;  %768 = vmatprep.subr.bf16.mxu1 %v2262_v0 }
  0x22   :  { %449 = vmatpush1.bf16.msra.mxu0 %v2157_v18  ;;  %769 = vmatpush1.bf16.msra.mxu1 %v2158_v19  ;;  %v2672_v18 = vld [vmem:[%s3600_s0 + $0xa4] ss:$8 sps:$4 sm:$0xff]   ;;  %v2683_v19 = vld [vmem:[%s3600_s0 + $0xa0] ss:$8 sps:$4 sm:$0xff]  }
  0x23   :  { %450 = vmatprep.subr.bf16.mxu0 %v2262_v0  ;;  %770 = vmatprep.subr.bf16.mxu1 %v2262_v0 }
  0x26   :  { %451 = vmatpush1.bf16.msra.mxu0 %v2159_v20  ;;  %771 = vmatpush1.bf16.msra.mxu1 %v2160_v21  ;;  %v2688_v20 = vld [vmem:[%s3600_s0 + $0xb4] ss:$8 sps:$4 sm:$0xff]   ;;  %v2699_v21 = vld [vmem:[%s3600_s0 + $0xb0] ss:$8 sps:$4 sm:$0xff]  }
  0x27   :  { %452 = vmatprep.subr.bf16.mxu0 %v2262_v0  ;;  %772 = vmatprep.subr.bf16.mxu1 %v2262_v0 }
  0x2a   :  { %453 = vmatpush1.bf16.msra.mxu0 %v2161_v22  ;;  %773 = vmatpush1.bf16.msra.mxu1 %v2162_v23  ;;  %v2704_v22 = vld [vmem:[%s3600_s0 + $0xc4] ss:$8 sps:$4 sm:$0xff]   ;;  %v2715_v23 = vld [vmem:[%s3600_s0 + $0xc0] ss:$8 sps:$4 sm:$0xff]  }
  0x2b   :  { %454 = vmatprep.subr.bf16.mxu0 %v2262_v0  ;;  %774 = vmatprep.subr.bf16.mxu1 %v2262_v0 }
  0x2e   :  { %455 = vmatpush1.bf16.msra.mxu0 %v2163_v24  ;;  %775 = vmatpush1.bf16.msra.mxu1 %v2164_v25  ;;  %v2720_v24 = vld [vmem:[%s3600_s0 + $0xd4] ss:$8 sps:$4 sm:$0xff]   ;;  %v2731_v25 = vld [vmem:[%s3600_s0 + $0xd0] ss:$8 sps:$4 sm:$0xff]  }
  0x2f   :  { %456 = vmatprep.subr.bf16.mxu0 %v2262_v0  ;;  %776 = vmatprep.subr.bf16.mxu1 %v2262_v0 }
  0x32   :  { %457 = vmatpush1.bf16.msra.mxu0 %v2165_v26  ;;  %777 = vmatpush1.bf16.msra.mxu1 %v2166_v27  ;;  %v2736_v26 = vld [vmem:[%s3600_s0 + $0xe4] ss:$8 sps:$4 sm:$0xff]   ;;  %v2747_v27 = vld [vmem:[%s3600_s0 + $0xe0] ss:$8 sps:$4 sm:$0xff]  }
  0x33   :  { %458 = vmatprep.subr.bf16.mxu0 %v2262_v0  ;;  %778 = vmatprep.subr.bf16.mxu1 %v2262_v0 }
  0x36   :  { %459 = vmatpush1.bf16.msra.mxu0 %v430_v30  ;;  %779 = vmatpush1.bf16.msra.mxu1 %v750_v31  ;;  %v2768_v30 = vld [vmem:[%s3600_s0 + $0x104] ss:$8 sps:$4 sm:$0xff]   ;;  %v2779_v31 = vld [vmem:[%s3600_s0 + $0x100] ss:$8 sps:$4 sm:$0xff]  }
  0x37   :  { %1115 = vmatprep.subr.bf16.mxu0 %v2262_v0  ;;  %1435 = vmatprep.subr.bf16.mxu1 %v2262_v0 }
  0x39   :  { %465 = vmatmul.mubr.bf16.vlgmr.msra.gmra.mrb[0].mxu0 %v2409_v32  ;;  %785 = vmatmul.mubr.bf16.vlgmr.msra.gmra.mrb[0].mxu1 %v2409_v32 }
  0x3a   :  { %1116 = vmatpush1.bf16.msra.mxu0 %v2172_v33  ;;  %1436 = vmatpush1.bf16.msra.mxu1 %v2173_v34  ;;  %v2784_v33 = vld [vmem:[%s3600_s0 + $0x114] ss:$8 sps:$4 sm:$0xff]   ;;  %v2795_v34 = vld [vmem:[%s3600_s0 + $0x110] ss:$8 sps:$4 sm:$0xff]  }
  0x3b   :  { %1929 = vmatprep.mubr.msk.bf16.mxu0 %vm361_vm0, %v2421_v35  ;;  %1992 = vmatprep.mubr.msk.bf16.mxu1 %vm361_vm0, %v2421_v35 }
  0x3c   :  { %1117 = vmatprep.subr.bf16.mxu0 %v2262_v0  ;;  %1437 = vmatprep.subr.bf16.mxu1 %v2262_v0 }
  0x3e   :  { %1118 = vmatpush1.bf16.msra.mxu0 %v2177_v36  ;;  %1438 = vmatpush1.bf16.msra.mxu1 %v2178_v37  ;;  %v2800_v36 = vld [vmem:[%s3600_s0 + $0x124] ss:$8 sps:$4 sm:$0xff]   ;;  %v2811_v37 = vld [vmem:[%s3600_s0 + $0x120] ss:$8 sps:$4 sm:$0xff]  }
  0x3f   :  { %1119 = vmatprep.subr.bf16.mxu0 %v2262_v0  ;;  %1439 = vmatprep.subr.bf16.mxu1 %v2262_v0 }
  0x41   :  { %473 = vmatmul.mubr.bf16.gmra.mrb[4].mxu0 %v2440_v38  ;;  %793 = vmatmul.mubr.bf16.gmra.mrb[4].mxu1 %v2440_v38 }
  0x42   :  { %1930 = vmatprep.mubr.msk.bf16.mxu0 %vm361_vm0, %v2446_v39  ;;  %1993 = vmatprep.mubr.msk.bf16.mxu1 %vm361_vm0, %v2446_v39 }
  0x43   :  { %1120 = vmatpush1.bf16.msra.mxu0 %v2185_v40  ;;  %1440 = vmatpush1.bf16.msra.mxu1 %v2186_v41  ;;  %v2816_v40 = vld [vmem:[%s3600_s0 + $0x134] ss:$8 sps:$4 sm:$0xff]   ;;  %v2827_v41 = vld [vmem:[%s3600_s0 + $0x130] ss:$8 sps:$4 sm:$0xff]  }
  0x44   :  { %1121 = vmatprep.subr.bf16.mxu0 %v2262_v0  ;;  %1441 = vmatprep.subr.bf16.mxu1 %v2262_v0 }
  0x47   :  { %1122 = vmatpush1.bf16.msra.mxu0 %v2192_v42  ;;  %1442 = vmatpush1.bf16.msra.mxu1 %v2193_v43  ;;  %v2832_v42 = vld [vmem:[%s3600_s0 + $0x144] ss:$8 sps:$4 sm:$0xff]   ;;  %v57_v43 = vld [vmem:[%s3600_s0 + $0x150] sm:$0xff] }
  0x48   :  { %1123 = vmatprep.subr.bf16.mxu0 %v2262_v0  ;;  %1443 = vmatprep.subr.bf16.mxu1 %v2262_v0 }
  0x49   :  { %481 = vmatmul.mubr.bf16.gmra.mrb[8].mxu0 %v2472_v44  ;;  %801 = vmatmul.mubr.bf16.gmra.mrb[8].mxu1 %v2472_v44 }
  0x4a   :  { %1931 = vmatprep.mubr.msk.bf16.mxu0 %vm361_vm0, %v2478_v45  ;;  %1994 = vmatprep.mubr.msk.bf16.mxu1 %vm361_vm0, %v2478_v45 }
  0x4b   :  { %1124 = vmatpush1.bf16.msra.mxu0 %v2198_v46  ;;  %1444 = vmatpush1.bf16.msra.mxu1 %v2199_v47  ;;  %v2846_v46 = vld [vmem:[%s3600_s0 + $0x140] ss:$8 sps:$4 sm:$0xff]   ;;  %v2848_v47 = vcombine.high %v57_v43, %v57_v43 }
  0x4c   :  { %1125 = vmatprep.subr.bf16.mxu0 %v2262_v0  ;;  %1445 = vmatprep.subr.bf16.mxu1 %v2262_v0 }
  0x4f   :  { %1126 = vmatpush1.bf16.msra.mxu0 %v2206_v48  ;;  %1446 = vmatpush1.bf16.msra.mxu1 %v2207_v50  ;;  %v2856_v48 = vcombine.low %v57_v43, %v57_v43 }
  0x50   :  { %1127 = vmatprep.subr.bf16.mxu0 %v2262_v0  ;;  %1447 = vmatprep.subr.bf16.mxu1 %v2262_v0 }
  0x51   :  { %489 = vmatmul.mubr.bf16.gmra.mrb[12].mxu0 %v2500_v49  ;;  %809 = vmatmul.mubr.bf16.gmra.mrb[12].mxu1 %v2500_v49 }
  0x52   :  { %1932 = vmatprep.mubr.msk.bf16.mxu0 %vm361_vm0, %v2509_v51  ;;  %1995 = vmatprep.mubr.msk.bf16.mxu1 %vm361_vm0, %v2509_v51 }
  0x53   :  { %1128 = vmatpush1.bf16.msra.mxu0 %v2211_v52  ;;  %1448 = vmatpush1.bf16.msra.mxu1 %v2212_v53 }
  0x54   :  { %1129 = vmatprep.subr.bf16.mxu0 %v2262_v0  ;;  %1449 = vmatprep.subr.bf16.mxu1 %v2262_v0 }
  0x57   :  { %1130 = vmatpush1.bf16.msra.mxu0 %v2219_v54  ;;  %1450 = vmatpush1.bf16.msra.mxu1 %v2220_v55 }
  0x58   :  { %1131 = vmatprep.subr.bf16.mxu0 %v2262_v0  ;;  %1451 = vmatprep.subr.bf16.mxu1 %v2262_v0 }
  0x59   :  { %497 = vmatmul.mubr.bf16.gmra.mrb[16].mxu0 %v2536_v56  ;;  %817 = vmatmul.mubr.bf16.gmra.mrb[16].mxu1 %v2536_v56 }
  0x5a   :  { %1933 = vmatprep.mubr.msk.bf16.mxu0 %vm361_vm0, %v2542_v57  ;;  %1996 = vmatprep.mubr.msk.bf16.mxu1 %vm361_vm0, %v2542_v57 }
  0x5b   :  { %1132 = vmatpush1.bf16.msra.mxu0 %v2224_v58  ;;  %1452 = vmatpush1.bf16.msra.mxu1 %v2225_v59 }
  0x5c   :  { %1133 = vmatprep.subr.bf16.mxu0 %v2262_v0  ;;  %1453 = vmatprep.subr.bf16.mxu1 %v2262_v0 }
  0x5f   :  { %1134 = vmatpush1.bf16.msra.mxu0 %v2232_v60  ;;  %1454 = vmatpush1.bf16.msra.mxu1 %v2233_v61 }
  0x60   :  { %1135 = vmatprep.subr.bf16.mxu0 %v2262_v0  ;;  %1455 = vmatprep.subr.bf16.mxu1 %v2262_v0 }
  0x61   :  { %505 = vmatmul.mubr.bf16.gmra.mrb[20].mxu0 %v2568_v62  ;;  %825 = vmatmul.mubr.bf16.gmra.mrb[20].mxu1 %v2568_v62 }
  0x62   :  { %1934 = vmatprep.mubr.msk.bf16.mxu0 %vm361_vm0, %v2574_v63  ;;  %1997 = vmatprep.mubr.msk.bf16.mxu1 %vm361_vm0, %v2574_v63 }
  0x63   :  { %1136 = vmatpush1.bf16.msra.mxu0 %v2239_v1  ;;  %1456 = vmatpush1.bf16.msra.mxu1 %v2240_v2 }
  0x64   :  { %1137 = vmatprep.subr.bf16.mxu0 %v2262_v0  ;;  %1457 = vmatprep.subr.bf16.mxu1 %v2262_v0 }
  0x67   :  { %1138 = vmatpush1.bf16.msra.mxu0 %v2245_v3  ;;  %1458 = vmatpush1.bf16.msra.mxu1 %v2246_v4 }
  0x68   :  { %1139 = vmatprep.subr.bf16.mxu0 %v2262_v0  ;;  %1459 = vmatprep.subr.bf16.mxu1 %v2262_v0 }
  0x69   :  { %513 = vmatmul.mubr.bf16.gmra.mrb[24].mxu0 %v2600_v5  ;;  %833 = vmatmul.mubr.bf16.gmra.mrb[24].mxu1 %v2600_v5 }
  0x6a   :  { %1935 = vmatprep.mubr.msk.bf16.mxu0 %vm361_vm0, %v2606_v6  ;;  %1998 = vmatprep.mubr.msk.bf16.mxu1 %vm361_vm0, %v2606_v6 }
  0x6b   :  { %1140 = vmatpush1.bf16.msra.mxu0 %v2253_v7  ;;  %1460 = vmatpush1.bf16.msra.mxu1 %v2254_v8 }
  0x6c   :  { %1141 = vmatprep.subr.bf16.mxu0 %v2262_v0  ;;  %1461 = vmatprep.subr.bf16.mxu1 %v2262_v0  ;;  %v2651_v0 = vld [vmem:[%s3600_s0 + $0x80] ss:$8 sps:$4 sm:$0xff]  }
  0x6f   :  { %1142 = vmatpush1.bf16.msra.mxu0 %v1113_v11  ;;  %1462 = vmatpush1.bf16.msra.mxu1 %v1433_v13 }
  0x71   :  { %521 = vmatmul.mubr.bf16.gmra.mrb[28].mxu0 %v2633_v12  ;;  %841 = vmatmul.mubr.bf16.gmra.mrb[28].mxu1 %v2633_v12 }
  0x72   :  { %1936 = vmatprep.mubr.msk.bf16.mxu0 %vm361_vm0, %v2640_v14  ;;  %1999 = vmatprep.mubr.msk.bf16.mxu1 %vm361_vm0, %v2640_v14 }
  0x79   :  { %529 = vmatmul.mubr.bf16.gmra.mrb[32].mxu0 %v2651_v0  ;;  %849 = vmatmul.mubr.bf16.gmra.mrb[32].mxu1 %v2651_v0 }
  0x7a   :  { %1937 = vmatprep.mubr.msk.bf16.mxu0 %vm361_vm0, %v2656_v15  ;;  %2000 = vmatprep.mubr.msk.bf16.mxu1 %vm361_vm0, %v2656_v15 }
  0x81   :  { %537 = vmatmul.mubr.bf16.gmra.mrb[36].mxu0 %v2667_v16  ;;  %857 = vmatmul.mubr.bf16.gmra.mrb[36].mxu1 %v2667_v16 }
  0x82   :  { %1938 = vmatprep.mubr.msk.bf16.mxu0 %vm361_vm0, %v2672_v18  ;;  %2001 = vmatprep.mubr.msk.bf16.mxu1 %vm361_vm0, %v2672_v18 }
  0x89   :  { %545 = vmatmul.mubr.bf16.gmra.mrb[40].mxu0 %v2683_v19  ;;  %865 = vmatmul.mubr.bf16.gmra.mrb[40].mxu1 %v2683_v19 }
  0x8a   :  { %1939 = vmatprep.mubr.msk.bf16.mxu0 %vm361_vm0, %v2688_v20  ;;  %2002 = vmatprep.mubr.msk.bf16.mxu1 %vm361_vm0, %v2688_v20 }
  0x91   :  { %553 = vmatmul.mubr.bf16.gmra.mrb[44].mxu0 %v2699_v21  ;;  %873 = vmatmul.mubr.bf16.gmra.mrb[44].mxu1 %v2699_v21 }
  0x92   :  { %1940 = vmatprep.mubr.msk.bf16.mxu0 %vm361_vm0, %v2704_v22  ;;  %2003 = vmatprep.mubr.msk.bf16.mxu1 %vm361_vm0, %v2704_v22 }
  0x99   :  { %561 = vmatmul.mubr.bf16.gmra.mrb[48].mxu0 %v2715_v23  ;;  %881 = vmatmul.mubr.bf16.gmra.mrb[48].mxu1 %v2715_v23 }
  0x9a   :  { %1941 = vmatprep.mubr.msk.bf16.mxu0 %vm361_vm0, %v2720_v24  ;;  %2004 = vmatprep.mubr.msk.bf16.mxu1 %vm361_vm0, %v2720_v24 }
  0xa1   :  { %569 = vmatmul.mubr.bf16.gmra.mrb[52].mxu0 %v2731_v25  ;;  %889 = vmatmul.mubr.bf16.gmra.mrb[52].mxu1 %v2731_v25 }
  0xa2   :  { %1942 = vmatprep.mubr.msk.bf16.mxu0 %vm361_vm0, %v2736_v26  ;;  %2005 = vmatprep.mubr.msk.bf16.mxu1 %vm361_vm0, %v2736_v26 }
  0xa9   :  { %577 = vmatmul.mubr.bf16.gmra.mrb[56].mxu0 %v2747_v27  ;;  %897 = vmatmul.mubr.bf16.gmra.mrb[56].mxu1 %v2747_v27 }
  0xaa   :  { %1943 = vmatprep.mubr.msk.bf16.mxu0 %vm361_vm0, %v2752_v28  ;;  %2006 = vmatprep.mubr.msk.bf16.mxu1 %vm361_vm0, %v2752_v28 }
  0xb1   :  { %585 = vmatmul.mubr.bf16.gmra.mrb[60].mxu0 %v2763_v29  ;;  %905 = vmatmul.mubr.bf16.gmra.mrb[60].mxu1 %v2763_v29 }
  0xb2   :  { %1944 = vmatprep.mubr.msk.bf16.mxu0 %vm361_vm0, %v2768_v30  ;;  %2007 = vmatprep.mubr.msk.bf16.mxu1 %vm361_vm0, %v2768_v30 }
  0xb9   :  { %593 = vmatmul.mubr.bf16.gmra.mrb[64].mxu0 %v2779_v31  ;;  %913 = vmatmul.mubr.bf16.gmra.mrb[64].mxu1 %v2779_v31 }
  0xba   :  { %1945 = vmatprep.mubr.msk.bf16.mxu0 %vm361_vm0, %v2784_v33  ;;  %2008 = vmatprep.mubr.msk.bf16.mxu1 %vm361_vm0, %v2784_v33 }
  0xc1   :  { %601 = vmatmul.mubr.bf16.gmra.mrb[68].mxu0 %v2795_v34  ;;  %921 = vmatmul.mubr.bf16.gmra.mrb[68].mxu1 %v2795_v34 }
  0xc2   :  { %1946 = vmatprep.mubr.msk.bf16.mxu0 %vm361_vm0, %v2800_v36  ;;  %2009 = vmatprep.mubr.msk.bf16.mxu1 %vm361_vm0, %v2800_v36 }
  0xc9   :  { %609 = vmatmul.mubr.bf16.gmra.mrb[72].mxu0 %v2811_v37  ;;  %929 = vmatmul.mubr.bf16.gmra.mrb[72].mxu1 %v2811_v37 }
  0xca   :  { %1947 = vmatprep.mubr.msk.bf16.mxu0 %vm361_vm0, %v2816_v40  ;;  %2010 = vmatprep.mubr.msk.bf16.mxu1 %vm361_vm0, %v2816_v40 }
  0xd1   :  { %617 = vmatmul.mubr.bf16.gmra.mrb[76].mxu0 %v2827_v41  ;;  %937 = vmatmul.mubr.bf16.gmra.mrb[76].mxu1 %v2827_v41 }
  0xd2   :  { %1948 = vmatprep.mubr.msk.bf16.mxu0 %vm361_vm0, %v2832_v42  ;;  %2011 = vmatprep.mubr.msk.bf16.mxu1 %vm361_vm0, %v2832_v42 }
  0xd9   :  { %625 = vmatmul.mubr.bf16.gmra.mrb[80].mxu0 %v2846_v46  ;;  %945 = vmatmul.mubr.bf16.gmra.mrb[80].mxu1 %v2846_v46 }
  0xda   :  { %1949 = vmatprep.mubr.msk.bf16.mxu0 %vm361_vm0, %v2848_v47  ;;  %2012 = vmatprep.mubr.msk.bf16.mxu1 %vm361_vm0, %v2848_v47 }
  0xe1   :  { %633 = vmatmul.mubr.bf16.gmra.mrb[84].mxu0 %v2856_v48  ;;  %953 = vmatmul.mubr.bf16.gmra.mrb[84].mxu1 %v2856_v48 }
  0xe2   :  { %2054 = vmatprep.mubr.msk.bf16.mxu0 %vm361_vm0, %v2350_v17  ;;  %2117 = vmatprep.mubr.msk.bf16.mxu1 %vm361_vm0, %v2350_v17 }
  0xe9   :  { %1148 = vmatmul.mubr.bf16.vlgmr.msra.gmra.mrb[88].mxu0 %v2409_v32  ;;  %1468 = vmatmul.mubr.bf16.vlgmr.msra.gmra.mrb[88].mxu1 %v2409_v32 }
  0xea   :  { %2055 = vmatprep.mubr.msk.bf16.mxu0 %vm361_vm0, %v2421_v35  ;;  %2118 = vmatprep.mubr.msk.bf16.mxu1 %vm361_vm0, %v2421_v35 }
  0xf1   :  { %1156 = vmatmul.mubr.bf16.gmra.mrb[92].mxu0 %v2440_v38  ;;  %1476 = vmatmul.mubr.bf16.gmra.mrb[92].mxu1 %v2440_v38 }
  0xf2   :  { %2056 = vmatprep.mubr.msk.bf16.mxu0 %vm361_vm0, %v2446_v39  ;;  %2119 = vmatprep.mubr.msk.bf16.mxu1 %vm361_vm0, %v2446_v39 }
  0xf9   :  { %1164 = vmatmul.mubr.bf16.gmra.mrb[96].mxu0 %v2472_v44  ;;  %1484 = vmatmul.mubr.bf16.gmra.mrb[96].mxu1 %v2472_v44 }
  0xfa   :  { %2057 = vmatprep.mubr.msk.bf16.mxu0 %vm361_vm0, %v2478_v45  ;;  %2120 = vmatprep.mubr.msk.bf16.mxu1 %vm361_vm0, %v2478_v45 }
 0x101   :  { %1172 = vmatmul.mubr.bf16.gmra.mrb[100].mxu0 %v2500_v49  ;;  %1492 = vmatmul.mubr.bf16.gmra.mrb[100].mxu1 %v2500_v49 }
 0x102   :  { %2058 = vmatprep.mubr.msk.bf16.mxu0 %vm361_vm0, %v2509_v51  ;;  %2121 = vmatprep.mubr.msk.bf16.mxu1 %vm361_vm0, %v2509_v51 }
 0x109   :  { %1180 = vmatmul.mubr.bf16.gmra.mrb[104].mxu0 %v2536_v56  ;;  %1500 = vmatmul.mubr.bf16.gmra.mrb[104].mxu1 %v2536_v56 }
 0x10a   :  { %2059 = vmatprep.mubr.msk.bf16.mxu0 %vm361_vm0, %v2542_v57  ;;  %2122 = vmatprep.mubr.msk.bf16.mxu1 %vm361_vm0, %v2542_v57 }
 0x10c   :  { %v2894_v17 = vpop.f32.mrb[0].mxu0  ;;  %v2896_v32 = vpop.f32.mrb[0].mxu1 }
 0x10d   :  { %v468_v35 = vpop.f32.mrb[1].mxu0  ;;  %v788_v39 = vpop.f32.mrb[1].mxu1 }
 0x10e   :  { %v2900_v44 = vpop.f32.mrb[2].mxu0  ;;  %v2902_v45 = vpop.f32.mrb[2].mxu1 }
 0x10f   :  { %v471_v49 = vpop.f32.mrb[3].mxu0  ;;  %v791_v51 = vpop.f32.mrb[3].mxu1 }
 0x111   :  { %1188 = vmatmul.mubr.bf16.gmra.mrb[108].mxu0 %v2568_v62  ;;  %1508 = vmatmul.mubr.bf16.gmra.mrb[108].mxu1 %v2568_v62 }
 0x112   :  { %2060 = vmatprep.mubr.msk.bf16.mxu0 %vm361_vm0, %v2574_v63  ;;  %2123 = vmatprep.mubr.msk.bf16.mxu1 %vm361_vm0, %v2574_v63 }
 0x114   :  { %v2912_v52 = vpop.f32.mrb[4].mxu0  ;;  %v2914_v53 = vpop.f32.mrb[4].mxu1 }
 0x115   :  { %v476_v54 = vpop.f32.mrb[5].mxu0  ;;  %v796_v56 = vpop.f32.mrb[5].mxu1 }
 0x116   :  { %v2918_v57 = vpop.f32.mrb[6].mxu0  ;;  %v2920_v58 = vpop.f32.mrb[6].mxu1 }
 0x117   :  { %v479_v59 = vpop.f32.mrb[7].mxu0  ;;  %v799_v61 = vpop.f32.mrb[7].mxu1 }
 0x119   :  { %1196 = vmatmul.mubr.bf16.gmra.mrb[112].mxu0 %v2600_v5  ;;  %1516 = vmatmul.mubr.bf16.gmra.mrb[112].mxu1 %v2600_v5 }
 0x11a   :  { %2061 = vmatprep.mubr.msk.bf16.mxu0 %vm361_vm0, %v2606_v6  ;;  %2124 = vmatprep.mubr.msk.bf16.mxu1 %vm361_vm0, %v2606_v6 }
 0x11c   :  { %v2930_v62 = vpop.f32.mrb[8].mxu0  ;;  %v2932_v63 = vpop.f32.mrb[8].mxu1 }
 0x11d   :  { %v484_v1 = vpop.f32.mrb[9].mxu0  ;;  %v804_v3 = vpop.f32.mrb[9].mxu1 }
 0x11e   :  { %v2936_v4 = vpop.f32.mrb[10].mxu0  ;;  %v2938_v7 = vpop.f32.mrb[10].mxu1 }
 0x11f   :  { %v487_v5 = vpop.f32.mrb[11].mxu0  ;;  %v807_v9 = vpop.f32.mrb[11].mxu1 }
 0x121   :  { %1204 = vmatmul.mubr.bf16.gmra.mrb[116].mxu0 %v2633_v12  ;;  %1524 = vmatmul.mubr.bf16.gmra.mrb[116].mxu1 %v2633_v12 }
 0x122   :  { %2062 = vmatprep.mubr.msk.bf16.mxu0 %vm361_vm0, %v2640_v14  ;;  %2125 = vmatprep.mubr.msk.bf16.mxu1 %vm361_vm0, %v2640_v14 }
 0x124   :  { %v2948_v6 = vpop.f32.mrb[12].mxu0  ;;  %v2950_v10 = vpop.f32.mrb[12].mxu1 }
 0x125   :  { %v492_v11 = vpop.f32.mrb[13].mxu0  ;;  %v812_v43 = vpop.f32.mrb[13].mxu1 }
 0x126   :  { %v2954_v35 = vpop.f32.mrb[14].mxu0  ;;  %v2956_v39 = vpop.f32.mrb[14].mxu1 }
 0x127   :  { %v495_v12 = vpop.f32.mrb[15].mxu0  ;;  %v815_v51 = vpop.f32.mrb[15].mxu1 }
 0x129   :  { %1212 = vmatmul.mubr.bf16.gmra.mrb[120].mxu0 %v2651_v0  ;;  %1532 = vmatmul.mubr.bf16.gmra.mrb[120].mxu1 %v2651_v0 }
 0x12a   :  { %2063 = vmatprep.mubr.msk.bf16.mxu0 %vm361_vm0, %v2656_v15  ;;  %2126 = vmatprep.mubr.msk.bf16.mxu1 %vm361_vm0, %v2656_v15 }
 0x12c   :  { %v2966_v14 = vpop.f32.mrb[16].mxu0  ;;  %v2968_v54 = vpop.f32.mrb[16].mxu1 }
 0x12d   :  { %v500_v56 = vpop.f32.mrb[17].mxu0  ;;  %v820_v61 = vpop.f32.mrb[17].mxu1 }
 0x12e   :  { %v2972_v1 = vpop.f32.mrb[18].mxu0  ;;  %v2974_v3 = vpop.f32.mrb[18].mxu1 }
 0x12f   :  { %v503_v0 = vpop.f32.mrb[19].mxu0  ;;  %v823_v9 = vpop.f32.mrb[19].mxu1 }
 0x131   :  { %1220 = vmatmul.mubr.bf16.gmra.mrb[124].mxu0 %v2667_v16  ;;  %1540 = vmatmul.mubr.bf16.gmra.mrb[124].mxu1 %v2667_v16 }
 0x132   :  { %2064 = vmatprep.mubr.msk.bf16.mxu0 %vm361_vm0, %v2672_v18  ;;  %2127 = vmatprep.mubr.msk.bf16.mxu1 %vm361_vm0, %v2672_v18 }
 0x134   :  { %v2984_v15 = vpop.f32.mrb[20].mxu0  ;;  %v2986_v11 = vpop.f32.mrb[20].mxu1 }
 0x135   :  { %v508_v43 = vpop.f32.mrb[21].mxu0  ;;  %v828_v51 = vpop.f32.mrb[21].mxu1 }
 0x136   :  { %v2990_v56 = vpop.f32.mrb[22].mxu0  ;;  %v2992_v61 = vpop.f32.mrb[22].mxu1 }
 0x137   :  { %v511_v16 = vpop.f32.mrb[23].mxu0  ;;  %v831_v9 = vpop.f32.mrb[23].mxu1 }
 0x139   :  { %1228 = vmatmul.mubr.bf16.gmra.mrb[128].mxu0 %v2683_v19  ;;  %1548 = vmatmul.mubr.bf16.gmra.mrb[128].mxu1 %v2683_v19 }
 0x13a   :  { %2065 = vmatprep.mubr.msk.bf16.mxu0 %vm361_vm0, %v2688_v20  ;;  %2128 = vmatprep.mubr.msk.bf16.mxu1 %vm361_vm0, %v2688_v20 }
 0x13c   :  { %v3002_v18 = vpop.f32.mrb[24].mxu0  ;;  %v3004_v43 = vpop.f32.mrb[24].mxu1 }
 0x13d   :  { %v516_v51 = vpop.f32.mrb[25].mxu0  ;;  %v836_v0 = vpop.f32.mrb[25].mxu1 }
 0x13e   :  { %v3008_v9 = vpop.f32.mrb[26].mxu0  ;;  %v3010_v12 = vpop.f32.mrb[26].mxu1 }
 0x13f   :  { %v519_v19 = vpop.f32.mrb[27].mxu0  ;;  %v839_v59 = vpop.f32.mrb[27].mxu1 }
 0x141   :  { %1236 = vmatmul.mubr.bf16.gmra.mrb[132].mxu0 %v2699_v21  ;;  %1556 = vmatmul.mubr.bf16.gmra.mrb[132].mxu1 %v2699_v21 }
 0x142   :  { %2066 = vmatprep.mubr.msk.bf16.mxu0 %vm361_vm0, %v2704_v22  ;;  %2129 = vmatprep.mubr.msk.bf16.mxu1 %vm361_vm0, %v2704_v22 }
 0x144   :  { %v3020_v20 = vpop.f32.mrb[28].mxu0  ;;  %v3022_v0 = vpop.f32.mrb[28].mxu1 }
 0x145   :  { %v524_v51 = vpop.f32.mrb[29].mxu0  ;;  %v844_v5 = vpop.f32.mrb[29].mxu1 }
 0x146   :  { %v3026_v59 = vpop.f32.mrb[30].mxu0  ;;  %v3028_v16 = vpop.f32.mrb[30].mxu1 }
 0x147   :  { %v527_v21 = vpop.f32.mrb[31].mxu0  ;;  %v847_v13 = vpop.f32.mrb[31].mxu1 }
 0x149   :  { %1244 = vmatmul.mubr.bf16.gmra.mrb[136].mxu0 %v2715_v23  ;;  %1564 = vmatmul.mubr.bf16.gmra.mrb[136].mxu1 %v2715_v23 }
 0x14a   :  { %2067 = vmatprep.mubr.msk.bf16.mxu0 %vm361_vm0, %v2720_v24  ;;  %2130 = vmatprep.mubr.msk.bf16.mxu1 %vm361_vm0, %v2720_v24 }
 0x14c   :  { %v3038_v22 = vpop.f32.mrb[32].mxu0  ;;  %v3040_v5 = vpop.f32.mrb[32].mxu1 }
 0x14d   :  { %v532_v51 = vpop.f32.mrb[33].mxu0  ;;  %v852_v49 = vpop.f32.mrb[33].mxu1 }
 0x14e   :  { %v3044_v13 = vpop.f32.mrb[34].mxu0  ;;  %v3046_v19 = vpop.f32.mrb[34].mxu1 }
 0x14f   :  { %v535_v23 = vpop.f32.mrb[35].mxu0  ;;  %v855_v2 = vpop.f32.mrb[35].mxu1 }
 0x151   :  { %1252 = vmatmul.mubr.bf16.gmra.mrb[140].mxu0 %v2731_v25  ;;  %1572 = vmatmul.mubr.bf16.gmra.mrb[140].mxu1 %v2731_v25 }
 0x152   :  { %2068 = vmatprep.mubr.msk.bf16.mxu0 %vm361_vm0, %v2736_v26  ;;  %2131 = vmatprep.mubr.msk.bf16.mxu1 %vm361_vm0, %v2736_v26 }
 0x154   :  { %v3056_v24 = vpop.f32.mrb[36].mxu0  ;;  %v3058_v49 = vpop.f32.mrb[36].mxu1 }
 0x155   :  { %v540_v51 = vpop.f32.mrb[37].mxu0  ;;  %v860_v8 = vpop.f32.mrb[37].mxu1 }
 0x156   :  { %v3062_v2 = vpop.f32.mrb[38].mxu0  ;;  %v3064_v21 = vpop.f32.mrb[38].mxu1 }
 0x157   :  { %v543_v25 = vpop.f32.mrb[39].mxu0  ;;  %v863_v55 = vpop.f32.mrb[39].mxu1 }
 0x159   :  { %1260 = vmatmul.mubr.bf16.gmra.mrb[144].mxu0 %v2747_v27  ;;  %1580 = vmatmul.mubr.bf16.gmra.mrb[144].mxu1 %v2747_v27 }
 0x15a   :  { %2069 = vmatprep.mubr.msk.bf16.mxu0 %vm361_vm0, %v2752_v28  ;;  %2132 = vmatprep.mubr.msk.bf16.mxu1 %vm361_vm0, %v2752_v28 }
 0x15c   :  { %v3074_v26 = vpop.f32.mrb[40].mxu0  ;;  %v3076_v8 = vpop.f32.mrb[40].mxu1 }
 0x15d   :  { %v548_v51 = vpop.f32.mrb[41].mxu0  ;;  %v868_v60 = vpop.f32.mrb[41].mxu1 }
 0x15e   :  { %v3080_v55 = vpop.f32.mrb[42].mxu0  ;;  %v3082_v23 = vpop.f32.mrb[42].mxu1 }
 0x15f   :  { %3642 = vst [vmem:[#allocation2_spill] sm:$0xff] %v3080_v55  ;;  %3643 = vst [vmem:[#allocation3_spill] sm:$0xff] %v3082_v23  ;;  %v551_v27 = vpop.f32.mrb[43].mxu0  ;;  %v871_v38 = vpop.f32.mrb[43].mxu1 }
 0x161   :  { %1268 = vmatmul.mubr.bf16.gmra.mrb[148].mxu0 %v2763_v29  ;;  %1588 = vmatmul.mubr.bf16.gmra.mrb[148].mxu1 %v2763_v29 }
 0x162   :  { %2070 = vmatprep.mubr.msk.bf16.mxu0 %vm361_vm0, %v2768_v30  ;;  %2133 = vmatprep.mubr.msk.bf16.mxu1 %vm361_vm0, %v2768_v30 }
 0x164   :  { %v3092_v28 = vpop.f32.mrb[44].mxu0  ;;  %v3094_v60 = vpop.f32.mrb[44].mxu1 }
 0x165   :  { %v556_v51 = vpop.f32.mrb[45].mxu0  ;;  %v876_v50 = vpop.f32.mrb[45].mxu1 }
 0x166   :  { %v3098_v38 = vpop.f32.mrb[46].mxu0  ;;  %v3100_v25 = vpop.f32.mrb[46].mxu1 }
 0x167   :  { %3644 = vst [vmem:[#allocation4_spill] sm:$0xff] %v3098_v38  ;;  %3645 = vst [vmem:[#allocation5_spill] sm:$0xff] %v3100_v25  ;;  %v559_v29 = vpop.f32.mrb[47].mxu0  ;;  %v879_v55 = vpop.f32.mrb[47].mxu1 }
 0x169   :  { %1276 = vmatmul.mubr.bf16.gmra.mrb[152].mxu0 %v2779_v31  ;;  %1596 = vmatmul.mubr.bf16.gmra.mrb[152].mxu1 %v2779_v31 }
 0x16a   :  { %2071 = vmatprep.mubr.msk.bf16.mxu0 %vm361_vm0, %v2784_v33  ;;  %2134 = vmatprep.mubr.msk.bf16.mxu1 %vm361_vm0, %v2784_v33 }
 0x16c   :  { %v3110_v30 = vpop.f32.mrb[48].mxu0  ;;  %v3112_v50 = vpop.f32.mrb[48].mxu1 }
 0x16d   :  { %v564_v51 = vpop.f32.mrb[49].mxu0  ;;  %v884_v23 = vpop.f32.mrb[49].mxu1 }
 0x16e   :  { %v3116_v55 = vpop.f32.mrb[50].mxu0  ;;  %v3118_v27 = vpop.f32.mrb[50].mxu1 }
 0x16f   :  { %3646 = vst [vmem:[#allocation6_spill] sm:$0xff] %v3116_v55  ;;  %3647 = vst [vmem:[#allocation7_spill] sm:$0xff] %v3118_v27  ;;  %v567_v31 = vpop.f32.mrb[51].mxu0  ;;  %v887_v38 = vpop.f32.mrb[51].mxu1 }
 0x171   :  { %1284 = vmatmul.mubr.bf16.gmra.mrb[156].mxu0 %v2795_v34  ;;  %1604 = vmatmul.mubr.bf16.gmra.mrb[156].mxu1 %v2795_v34 }
 0x172   :  { %2072 = vmatprep.mubr.msk.bf16.mxu0 %vm361_vm0, %v2800_v36  ;;  %2135 = vmatprep.mubr.msk.bf16.mxu1 %vm361_vm0, %v2800_v36 }
 0x174   :  { %v3128_v33 = vpop.f32.mrb[52].mxu0  ;;  %v3130_v23 = vpop.f32.mrb[52].mxu1 }
 0x175   :  { %3648 = vst [vmem:[#allocation8_spill] sm:$0xff] %v3128_v33  ;;  %3649 = vst [vmem:[#allocation9_spill] sm:$0xff] %v3130_v23  ;;  %v572_v51 = vpop.f32.mrb[53].mxu0  ;;  %v892_v25 = vpop.f32.mrb[53].mxu1 }
 0x176   :  { %v3134_v38 = vpop.f32.mrb[54].mxu0  ;;  %v3136_v29 = vpop.f32.mrb[54].mxu1 }
 0x177   :  { %3650 = vst [vmem:[#allocation10_spill] sm:$0xff] %v3134_v38  ;;  %3651 = vst [vmem:[#allocation11_spill] sm:$0xff] %v3136_v29  ;;  %v575_v34 = vpop.f32.mrb[55].mxu0  ;;  %v895_v55 = vpop.f32.mrb[55].mxu1 }
 0x179   :  { %1292 = vmatmul.mubr.bf16.gmra.mrb[160].mxu0 %v2811_v37  ;;  %1612 = vmatmul.mubr.bf16.gmra.mrb[160].mxu1 %v2811_v37 }
 0x17a   :  { %2073 = vmatprep.mubr.msk.bf16.mxu0 %vm361_vm0, %v2816_v40  ;;  %2136 = vmatprep.mubr.msk.bf16.mxu1 %vm361_vm0, %v2816_v40 }
 0x17c   :  { %v3146_v36 = vpop.f32.mrb[56].mxu0  ;;  %v3148_v25 = vpop.f32.mrb[56].mxu1 }
 0x17d   :  { %3652 = vst [vmem:[#allocation12_spill] sm:$0xff] %v3146_v36  ;;  %3653 = vst [vmem:[#allocation13_spill] sm:$0xff] %v3148_v25  ;;  %v580_v51 = vpop.f32.mrb[57].mxu0  ;;  %v900_v27 = vpop.f32.mrb[57].mxu1 }
 0x17e   :  { %v3152_v55 = vpop.f32.mrb[58].mxu0  ;;  %v3154_v31 = vpop.f32.mrb[58].mxu1 }
 0x17f   :  { %3654 = vst [vmem:[#allocation14_spill] sm:$0xff] %v3152_v55  ;;  %3655 = vst [vmem:[#allocation15_spill] sm:$0xff] %v3154_v31  ;;  %v583_v37 = vpop.f32.mrb[59].mxu0  ;;  %v903_v38 = vpop.f32.mrb[59].mxu1 }
 0x181   :  { %1300 = vmatmul.mubr.bf16.gmra.mrb[164].mxu0 %v2827_v41  ;;  %1620 = vmatmul.mubr.bf16.gmra.mrb[164].mxu1 %v2827_v41 }
 0x182   :  { %2074 = vmatprep.mubr.msk.bf16.mxu0 %vm361_vm0, %v2832_v42  ;;  %2137 = vmatprep.mubr.msk.bf16.mxu1 %vm361_vm0, %v2832_v42 }
 0x184   :  { %v3164_v40 = vpop.f32.mrb[60].mxu0  ;;  %v3166_v27 = vpop.f32.mrb[60].mxu1 }
 0x185   :  { %3656 = vst [vmem:[#allocation16_spill] sm:$0xff] %v3164_v40  ;;  %3657 = vst [vmem:[#allocation17_spill] sm:$0xff] %v3166_v27  ;;  %v588_v51 = vpop.f32.mrb[61].mxu0  ;;  %v908_v29 = vpop.f32.mrb[61].mxu1 }
 0x186   :  { %v3170_v38 = vpop.f32.mrb[62].mxu0  ;;  %v3172_v34 = vpop.f32.mrb[62].mxu1 }
 0x187   :  { %3658 = vst [vmem:[#allocation18_spill] sm:$0xff] %v3170_v38  ;;  %3659 = vst [vmem:[#allocation19_spill] sm:$0xff] %v3172_v34  ;;  %v591_v41 = vpop.f32.mrb[63].mxu0  ;;  %v911_v55 = vpop.f32.mrb[63].mxu1 }
 0x189   :  { %1308 = vmatmul.mubr.bf16.gmra.mrb[168].mxu0 %v2846_v46  ;;  %1628 = vmatmul.mubr.bf16.gmra.mrb[168].mxu1 %v2846_v46 }
 0x18a   :  { %2075 = vmatprep.mubr.msk.bf16.mxu0 %vm361_vm0, %v2848_v47  ;;  %2138 = vmatprep.mubr.msk.bf16.mxu1 %vm361_vm0, %v2848_v47 }
 0x18c   :  { %v3182_v42 = vpop.f32.mrb[64].mxu0  ;;  %v3184_v29 = vpop.f32.mrb[64].mxu1 }
 0x18d   :  { %3660 = vst [vmem:[#allocation20_spill] sm:$0xff] %v3182_v42  ;;  %3661 = vst [vmem:[#allocation21_spill] sm:$0xff] %v3184_v29  ;;  %v596_v51 = vpop.f32.mrb[65].mxu0  ;;  %v916_v31 = vpop.f32.mrb[65].mxu1 }
 0x18e   :  { %v3188_v55 = vpop.f32.mrb[66].mxu0  ;;  %v3190_v37 = vpop.f32.mrb[66].mxu1 }
 0x18f   :  { %3662 = vst [vmem:[#allocation22_spill] sm:$0xff] %v3188_v55  ;;  %3663 = vst [vmem:[#allocation23_spill] sm:$0xff] %v3190_v37  ;;  %v599_v46 = vpop.f32.mrb[67].mxu0  ;;  %v919_v38 = vpop.f32.mrb[67].mxu1 }
 0x191   :  { %1316 = vmatmul.mubr.bf16.gmra.mrb[172].mxu0 %v2856_v48  ;;  %1636 = vmatmul.mubr.bf16.gmra.mrb[172].mxu1 %v2856_v48 }
 0x194   :  { %v3196_v47 = vpop.f32.mrb[68].mxu0  ;;  %v3198_v51 = vpop.f32.mrb[68].mxu1 }
 0x195   :  { %3664 = vst [vmem:[#allocation24_spill] sm:$0xff] %v3196_v47  ;;  %3665 = vst [vmem:[#allocation25_spill] sm:$0xff] %v3198_v51  ;;  %v604_v27 = vpop.f32.mrb[69].mxu0  ;;  %v924_v41 = vpop.f32.mrb[69].mxu1 }
 0x196   :  { %v3202_v29 = vpop.f32.mrb[70].mxu0  ;;  %v3204_v46 = vpop.f32.mrb[70].mxu1 }
 0x197   :  { %3666 = vst [vmem:[#allocation26_spill] sm:$0xff] %v3202_v29  ;;  %3667 = vst [vmem:[#allocation27_spill] sm:$0xff] %v3204_v46  ;;  %v607_v42 = vpop.f32.mrb[71].mxu0  ;;  %v927_v34 = vpop.f32.mrb[71].mxu1 }
 0x19c   :  { %v3208_v37 = vpop.f32.mrb[72].mxu0  ;;  %v3210_v48 = vpop.f32.mrb[72].mxu1 }
 0x19d   :  { %3668 = vst [vmem:[#allocation28_spill] sm:$0xff] %v3208_v37  ;;  %3669 = vst [vmem:[#allocation29_spill] sm:$0xff] %v3210_v48  ;;  %v612_v55 = vpop.f32.mrb[73].mxu0  ;;  %v932_v40 = vpop.f32.mrb[73].mxu1 }
 0x19e   :  { %v3214_v31 = vpop.f32.mrb[74].mxu0  ;;  %v3216_v41 = vpop.f32.mrb[74].mxu1 }
 0x19f   :  { %3670 = vst [vmem:[#allocation30_spill] sm:$0xff] %v3214_v31  ;;  %3671 = vst [vmem:[#allocation31_spill] sm:$0xff] %v3216_v41  ;;  %v615_v51 = vpop.f32.mrb[75].mxu0  ;;  %v935_v47 = vpop.f32.mrb[75].mxu1 }
 0x1a4   :  { %v3220_v38 = vpop.f32.mrb[76].mxu0  ;;  %v3222_v34 = vpop.f32.mrb[76].mxu1 }
 0x1a5   :  { %3672 = vst [vmem:[#allocation32_spill] sm:$0xff] %v3220_v38  ;;  %3673 = vst [vmem:[#allocation33_spill] sm:$0xff] %v3222_v34  ;;  %v620_v46 = vpop.f32.mrb[77].mxu0  ;;  %v940_v29 = vpop.f32.mrb[77].mxu1 }
 0x1a6   :  { %v3226_v27 = vpop.f32.mrb[78].mxu0  ;;  %v3228_v40 = vpop.f32.mrb[78].mxu1 }
 0x1a7   :  { %3674 = vst [vmem:[#allocation34_spill] sm:$0xff] %v3226_v27  ;;  %3675 = vst [vmem:[#allocation35_spill] sm:$0xff] %v3228_v40  ;;  %v623_v48 = vpop.f32.mrb[79].mxu0  ;;  %v943_v37 = vpop.f32.mrb[79].mxu1 }
 0x1ac   :  { %v3232_v42 = vpop.f32.mrb[80].mxu0  ;;  %v3234_v47 = vpop.f32.mrb[80].mxu1 }
 0x1ad   :  { %3676 = vst [vmem:[#allocation36_spill] sm:$0xff] %v3232_v42  ;;  %3677 = vst [vmem:[#allocation37_spill] sm:$0xff] %v3234_v47  ;;  %v628_v41 = vpop.f32.mrb[81].mxu0  ;;  %v948_v31 = vpop.f32.mrb[81].mxu1 }
 0x1ae   :  { %v3238_v55 = vpop.f32.mrb[82].mxu0  ;;  %v3240_v29 = vpop.f32.mrb[82].mxu1 }
 0x1af   :  { %3678 = vst [vmem:[#allocation38_spill] sm:$0xff] %v3240_v29  ;;  %v631_v34 = vpop.f32.mrb[83].mxu0  ;;  %v951_v38 = vpop.f32.mrb[83].mxu1 }
 0x1b0   :  { %v3253_v38 = vld [vmem:[%s3601_s2] ss:$0 sm:$0xff] }
 0x1b4   :  { %v3244_v51 = vpop.f32.mrb[84].mxu0  ;;  %v3246_v37 = vpop.f32.mrb[84].mxu1 }
 0x1b5   :  { %3679 = vst [vmem:[#allocation39_spill] sm:$0xff] %v3244_v51  ;;  %3680 = vst [vmem:[#allocation40_spill] sm:$0xff] %v3246_v37  ;;  %v636_v40 = vpop.f32.mrb[85].mxu0  ;;  %v956_v27 = vpop.f32.mrb[85].mxu1 }
 0x1b6   :  { %v637_v46 = vpop.f32.mrb[86].mxu0  ;;  %v957_v31 = vpop.f32.mrb[86].mxu1  ;;  %v3681_v27 = vmax.f32 %v2894_v17, %v2896_v32 }
 0x1b7   :  { %v638_v47 = vpop.f32.mrb[87].mxu0  ;;  %v958_v42 = vpop.f32.mrb[87].mxu1 }
 0x1bc   :  { %v1149_v25 = vpop.f32.mrb[88].mxu0  ;;  %v1469_v36 = vpop.f32.mrb[88].mxu1 }
 0x1bd   :  { %v1151_v34 = vpop.f32.mrb[89].mxu0  ;;  %v1643_v23 = vmax.f32 %v1149_v25, %v1469_v36  ;;  %v1471_v33 = vpop.f32.mrb[89].mxu1  ;;  %v3682_v36 = vmax.f32 %v2900_v44, %v2902_v45  ;;  %v3683_v44 = vmax.f32 %v2912_v52, %v2914_v53 }
 0x1be   :  { %v1152_v48 = vpop.f32.mrb[90].mxu0  ;;  %v1472_v40 = vpop.f32.mrb[90].mxu1 }
 0x1bf   :  { %v1154_v29 = vpop.f32.mrb[91].mxu0  ;;  %v1686_v46 = vmax.f32 %v3681_v27, %v1643_v23  ;;  %v1644_v31 = vmax.f32 %v1152_v48, %v1472_v40  ;;  %v1474_v47 = vpop.f32.mrb[91].mxu1 }
 0x1c1   :  { %v1736_v42 = vadd.f32 %v3253_v38, %v1686_v46  ;;  %v1687_v33 = vmax.f32 %v3682_v36, %v1644_v31 }
 0x1c3   :  { %v1779_v25 = vmax.f32 %v1736_v42, 0.0  ;;  %v1737_v34 = vadd.f32 %v3253_v38, %v1687_v33 }
 0x1c4   :  { %v1157_v41 = vpop.f32.mrb[92].mxu0  ;;  %v1477_v37 = vpop.f32.mrb[92].mxu1 }
 0x1c5   :  { %v1159_v51 = vpop.f32.mrb[93].mxu0  ;;  %1823 = vst.msk [vmem:[%s3602_s3] sm:$0xff] %vm1822_vm2, %v1779_v25  ;;  %v1780_v17 = vmax.f32 %v1737_v34, 0.0  ;;  %v1645_v32 = vmax.f32 %v1157_v41, %v1477_v37  ;;  %v1479_v23 = vpop.f32.mrb[93].mxu1  ;;  %v3684_v37 = vmax.f32 %v2918_v57, %v2920_v58  ;;  %v3685_v57 = vmax.f32 %v2930_v62, %v2932_v63 }
 0x1c6   :  { %v1160_v29 = vpop.f32.mrb[94].mxu0  ;;  %v1480_v48 = vpop.f32.mrb[94].mxu1 }
 0x1c7   :  { %v1162_v40 = vpop.f32.mrb[95].mxu0  ;;  %1824 = vst.msk [vmem:[%s3602_s3 + $0x8] sm:$0xff] %vm1822_vm2, %v1780_v17  ;;  %v1688_v45 = vmax.f32 %v3683_v44, %v1645_v32  ;;  %v1646_v51 = vmax.f32 %v1160_v29, %v1480_v48  ;;  %v1482_v27 = vpop.f32.mrb[95].mxu1 }
 0x1c8   :  { %v3686_v40 = vmax.f32 %v2936_v4, %v2938_v7  ;;  %v3687_v4 = vmax.f32 %v2948_v6, %v2950_v10 }
 0x1c9   :  { %v1738_v46 = vadd.f32 %v3253_v38, %v1688_v45  ;;  %v1689_v41 = vmax.f32 %v3684_v37, %v1646_v51 }
 0x1cb   :  { %v1781_v31 = vmax.f32 %v1738_v46, 0.0  ;;  %v1739_v47 = vadd.f32 %v3253_v38, %v1689_v41 }
 0x1cc   :  { %v1165_v42 = vpop.f32.mrb[96].mxu0  ;;  %v1485_v36 = vpop.f32.mrb[96].mxu1 }
 0x1cd   :  { %v1167_v33 = vpop.f32.mrb[97].mxu0  ;;  %1825 = vst.msk [vmem:[%s3602_s3 + $0x10] sm:$0xff] %vm1822_vm2, %v1781_v31  ;;  %v1782_v52 = vmax.f32 %v1739_v47, 0.0  ;;  %v1647_v53 = vmax.f32 %v1165_v42, %v1485_v36  ;;  %v1487_v25 = vpop.f32.mrb[97].mxu1 }
 0x1ce   :  { %v1168_v34 = vpop.f32.mrb[98].mxu0  ;;  %v1488_v17 = vpop.f32.mrb[98].mxu1 }
 0x1cf   :  { %v1170_v32 = vpop.f32.mrb[99].mxu0  ;;  %1826 = vst.msk [vmem:[%s3602_s3 + $0x18] sm:$0xff] %vm1822_vm2, %v1782_v52  ;;  %v1690_v58 = vmax.f32 %v3685_v57, %v1647_v53  ;;  %v1648_v23 = vmax.f32 %v1168_v34, %v1488_v17  ;;  %v1490_v29 = vpop.f32.mrb[99].mxu1  ;;  %v3688_v53 = vmax.f32 %v2954_v35, %v2956_v39  ;;  %v3689_v35 = vmax.f32 %v2966_v14, %v2968_v54 }
 0x1d1   :  { %v1740_v48 = vadd.f32 %v3253_v38, %v1690_v58  ;;  %v1691_v44 = vmax.f32 %v3686_v40, %v1648_v23 }
 0x1d3   :  { %v1783_v45 = vmax.f32 %v1740_v48, 0.0  ;;  %v1741_v51 = vadd.f32 %v3253_v38, %v1691_v44 }
 0x1d4   :  { %v1173_v27 = vpop.f32.mrb[100].mxu0  ;;  %v1493_v46 = vpop.f32.mrb[100].mxu1 }
 0x1d5   :  { %v1175_v37 = vpop.f32.mrb[101].mxu0  ;;  %1827 = vst.msk [vmem:[%s3602_s3 + $0x20] sm:$0xff] %vm1822_vm2, %v1783_v45  ;;  %v1784_v62 = vmax.f32 %v1741_v51, 0.0  ;;  %v1649_v63 = vmax.f32 %v1173_v27, %v1493_v46  ;;  %v1495_v41 = vpop.f32.mrb[101].mxu1  ;;  %v3690_v27 = vmax.f32 %v2972_v1, %v2974_v3  ;;  %v3691_v1 = vmax.f32 %v2984_v15, %v2986_v11 }
 0x1d6   :  { %v1176_v31 = vpop.f32.mrb[102].mxu0  ;;  %v1496_v47 = vpop.f32.mrb[102].mxu1 }
 0x1d7   :  { %v1178_v42 = vpop.f32.mrb[103].mxu0  ;;  %1828 = vst.msk [vmem:[%s3602_s3 + $0x28] sm:$0xff] %vm1822_vm2, %v1784_v62  ;;  %v1692_v7 = vmax.f32 %v3687_v4, %v1649_v63  ;;  %v1650_v36 = vmax.f32 %v1176_v31, %v1496_v47  ;;  %v1498_v33 = vpop.f32.mrb[103].mxu1 }
 0x1d9   :  { %v1742_v52 = vadd.f32 %v3253_v38, %v1692_v7  ;;  %v1693_v25 = vmax.f32 %v3688_v53, %v1650_v36  ;;  %v3692_v53 = vmax.f32 %v2990_v56, %v2992_v61  ;;  %v3693_v56 = vmax.f32 %v3002_v18, %v3004_v43 }
 0x1db   :  { %v1785_v34 = vmax.f32 %v1742_v52, 0.0  ;;  %v1743_v17 = vadd.f32 %v3253_v38, %v1693_v25 }
 0x1dc   :  { %v1181_v32 = vpop.f32.mrb[104].mxu0  ;;  %v1501_v57 = vpop.f32.mrb[104].mxu1 }
 0x1dd   :  { %v1183_v58 = vpop.f32.mrb[105].mxu0  ;;  %1829 = vst.msk [vmem:[%s3602_s3 + $0x30] sm:$0xff] %vm1822_vm2, %v1785_v34  ;;  %v1786_v6 = vmax.f32 %v1743_v17, 0.0  ;;  %v1651_v10 = vmax.f32 %v1181_v32, %v1501_v57  ;;  %v1503_v23 = vpop.f32.mrb[105].mxu1 }
 0x1de   :  { %v1184_v29 = vpop.f32.mrb[106].mxu0  ;;  %v1504_v48 = vpop.f32.mrb[106].mxu1 }
 0x1df   :  { %v1186_v40 = vpop.f32.mrb[107].mxu0  ;;  %1830 = vst.msk [vmem:[%s3602_s3 + $0x38] sm:$0xff] %vm1822_vm2, %v1786_v6  ;;  %v1694_v39 = vmax.f32 %v3689_v35, %v1651_v10  ;;  %v1652_v44 = vmax.f32 %v1184_v29, %v1504_v48  ;;  %v1506_v45 = vpop.f32.mrb[107].mxu1 }
 0x1e1   :  { %v1744_v51 = vadd.f32 %v3253_v38, %v1694_v39  ;;  %v1695_v46 = vmax.f32 %v3690_v27, %v1652_v44  ;;  %v3694_v39 = vmax.f32 %v3008_v9, %v3010_v12  ;;  %v3695_v12 = vmax.f32 %v3020_v20, %v3022_v0 }
 0x1e3   :  { %v1787_v37 = vmax.f32 %v1744_v51, 0.0  ;;  %v1745_v62 = vadd.f32 %v3253_v38, %v1695_v46 }
 0x1e4   :  { %v1189_v63 = vpop.f32.mrb[108].mxu0  ;;  %v1509_v41 = vpop.f32.mrb[108].mxu1 }
 0x1e5   :  { %v1191_v31 = vpop.f32.mrb[109].mxu0  ;;  %1831 = vst.msk [vmem:[%s3602_s3 + $0x40] sm:$0xff] %vm1822_vm2, %v1787_v37  ;;  %v1788_v14 = vmax.f32 %v1745_v62, 0.0  ;;  %v1653_v54 = vmax.f32 %v1189_v63, %v1509_v41  ;;  %v1511_v47 = vpop.f32.mrb[109].mxu1 }
 0x1e6   :  { %v1192_v42 = vpop.f32.mrb[110].mxu0  ;;  %v1512_v4 = vpop.f32.mrb[110].mxu1 }
 0x1e7   :  { %v1194_v7 = vpop.f32.mrb[111].mxu0  ;;  %1832 = vst.msk [vmem:[%s3602_s3 + $0x48] sm:$0xff] %vm1822_vm2, %v1788_v14  ;;  %v1696_v3 = vmax.f32 %v3691_v1, %v1653_v54  ;;  %v1654_v36 = vmax.f32 %v1192_v42, %v1512_v4  ;;  %v1514_v33 = vpop.f32.mrb[111].mxu1  ;;  %v3696_v42 = vmax.f32 %v3026_v59, %v3028_v16  ;;  %v3697_v16 = vmax.f32 %v3038_v22, %v3040_v5 }
 0x1e9   :  { %v1746_v52 = vadd.f32 %v3253_v38, %v1696_v3  ;;  %v1697_v25 = vmax.f32 %v3692_v53, %v1654_v36 }
 0x1eb   :  { %v1789_v34 = vmax.f32 %v1746_v52, 0.0  ;;  %v1747_v17 = vadd.f32 %v3253_v38, %v1697_v25 }
 0x1ec   :  { %v1197_v32 = vpop.f32.mrb[112].mxu0  ;;  %v1517_v57 = vpop.f32.mrb[112].mxu1 }
 0x1ed   :  { %v1199_v58 = vpop.f32.mrb[113].mxu0  ;;  %1833 = vst.msk [vmem:[%s3602_s3 + $0x50] sm:$0xff] %vm1822_vm2, %v1789_v34  ;;  %v1790_v15 = vmax.f32 %v1747_v17, 0.0  ;;  %v1655_v11 = vmax.f32 %v1197_v32, %v1517_v57  ;;  %v1519_v6 = vpop.f32.mrb[113].mxu1 }
 0x1ee   :  { %v1200_v10 = vpop.f32.mrb[114].mxu0  ;;  %v1520_v23 = vpop.f32.mrb[114].mxu1  ;;  %v3698_v58 = vmax.f32 %v3044_v13, %v3046_v19  ;;  %v3699_v19 = vmax.f32 %v3056_v24, %v3058_v49 }
 0x1ef   :  { %v1202_v29 = vpop.f32.mrb[115].mxu0  ;;  %1834 = vst.msk [vmem:[%s3602_s3 + $0x58] sm:$0xff] %vm1822_vm2, %v1790_v15  ;;  %v1698_v61 = vmax.f32 %v3693_v56, %v1655_v11  ;;  %v1656_v48 = vmax.f32 %v1200_v10, %v1520_v23  ;;  %v1522_v40 = vpop.f32.mrb[115].mxu1 }
 0x1f1   :  { %v1748_v35 = vadd.f32 %v3253_v38, %v1698_v61  ;;  %v1699_v44 = vmax.f32 %v3694_v39, %v1656_v48 }
 0x1f3   :  { %v1791_v45 = vmax.f32 %v1748_v35, 0.0  ;;  %v1749_v51 = vadd.f32 %v3253_v38, %v1699_v44 }
 0x1f4   :  { %v1205_v27 = vpop.f32.mrb[116].mxu0  ;;  %v1525_v46 = vpop.f32.mrb[116].mxu1 }
 0x1f5   :  { %v1207_v37 = vpop.f32.mrb[117].mxu0  ;;  %1835 = vst.msk [vmem:[%s3602_s3 + $0x60] sm:$0xff] %vm1822_vm2, %v1791_v45  ;;  %v1792_v18 = vmax.f32 %v1749_v51, 0.0  ;;  %v1657_v43 = vmax.f32 %v1205_v27, %v1525_v46  ;;  %v1527_v62 = vpop.f32.mrb[117].mxu1  ;;  %v3700_v45 = vmax.f32 %v3062_v2, %v3064_v21  ;;  %v3701_v21 = vmax.f32 %v3074_v26, %v3076_v8 }
 0x1f6   :  { %v1208_v63 = vpop.f32.mrb[118].mxu0  ;;  %v1528_v41 = vpop.f32.mrb[118].mxu1 }
 0x1f7   :  { %v1210_v31 = vpop.f32.mrb[119].mxu0  ;;  %1836 = vst.msk [vmem:[%s3602_s3 + $0x68] sm:$0xff] %vm1822_vm2, %v1792_v18  ;;  %v1700_v9 = vmax.f32 %v3695_v12, %v1657_v43  ;;  %v1658_v14 = vmax.f32 %v1208_v63, %v1528_v41  ;;  %v1530_v54 = vpop.f32.mrb[119].mxu1 }
 0x1f8   :  { %v3702_v54 = vld [vmem:[#allocation2_spill] sm:$0xff] }
 0x1f9   :  { %v1750_v47 = vadd.f32 %v3253_v38, %v1700_v9  ;;  %v1701_v4 = vmax.f32 %v3696_v42, %v1658_v14 }
 0x1fb   :  { %v1793_v7 = vmax.f32 %v1750_v47, 0.0  ;;  %v1751_v1 = vadd.f32 %v3253_v38, %v1701_v4  ;;  %v3703_v47 = vld [vmem:[#allocation3_spill] sm:$0xff] }
 0x1fc   :  { %v1213_v3 = vpop.f32.mrb[120].mxu0  ;;  %v1533_v36 = vpop.f32.mrb[120].mxu1  ;;  %v3704_v42 = vmax.f32 %v3702_v54, %v3703_v47  ;;  %v3716_v54 = vld [vmem:[#allocation10_spill] sm:$0xff]  ;;  %v3717_v47 = vld [vmem:[#allocation11_spill] sm:$0xff] }
 0x1fd   :  { %v1215_v33 = vpop.f32.mrb[121].mxu0  ;;  %1837 = vst.msk [vmem:[%s3602_s3 + $0x70] sm:$0xff] %vm1822_vm2, %v1793_v7  ;;  %v1794_v20 = vmax.f32 %v1751_v1, 0.0  ;;  %v1659_v0 = vmax.f32 %v1213_v3, %v1533_v36  ;;  %v1535_v52 = vpop.f32.mrb[121].mxu1 }
 0x1fe   :  { %v1216_v53 = vpop.f32.mrb[122].mxu0  ;;  %v1536_v25 = vpop.f32.mrb[122].mxu1 }
 0x1ff   :  { %v1218_v34 = vpop.f32.mrb[123].mxu0  ;;  %1838 = vst.msk [vmem:[%s3602_s3 + $0x78] sm:$0xff] %vm1822_vm2, %v1794_v20  ;;  %v1702_v59 = vmax.f32 %v3697_v16, %v1659_v0  ;;  %v1660_v17 = vmax.f32 %v1216_v53, %v1536_v25  ;;  %v1538_v32 = vpop.f32.mrb[123].mxu1  ;;  %v3705_v25 = vmax.f32 %v3092_v28, %v3094_v60 }
 0x200   :  { %v3706_v32 = vld [vmem:[#allocation4_spill] sm:$0xff] }
 0x201   :  { %v1752_v57 = vadd.f32 %v3253_v38, %v1702_v59  ;;  %v1703_v15 = vmax.f32 %v3698_v58, %v1660_v17 }
 0x203   :  { %v1795_v11 = vmax.f32 %v1752_v57, 0.0  ;;  %v1753_v6 = vadd.f32 %v3253_v38, %v1703_v15  ;;  %v3707_v57 = vld [vmem:[#allocation5_spill] sm:$0xff] }
 0x204   :  { %v1221_v10 = vpop.f32.mrb[124].mxu0  ;;  %v1541_v23 = vpop.f32.mrb[124].mxu1  ;;  %v3708_v58 = vmax.f32 %v3706_v32, %v3707_v57 }
 0x205   :  { %v1223_v29 = vpop.f32.mrb[125].mxu0  ;;  %1839 = vst.msk [vmem:[%s3602_s3 + $0x80] sm:$0xff] %vm1822_vm2, %v1795_v11  ;;  %v1796_v22 = vmax.f32 %v1753_v6, 0.0  ;;  %v1661_v5 = vmax.f32 %v1221_v10, %v1541_v23  ;;  %v1543_v56 = vpop.f32.mrb[125].mxu1 }
 0x206   :  { %v1224_v61 = vpop.f32.mrb[126].mxu0  ;;  %v1544_v48 = vpop.f32.mrb[126].mxu1 }
 0x207   :  { %v1226_v40 = vpop.f32.mrb[127].mxu0  ;;  %1840 = vst.msk [vmem:[%s3602_s3 + $0x88] sm:$0xff] %vm1822_vm2, %v1796_v22  ;;  %v1704_v13 = vmax.f32 %v3699_v19, %v1661_v5  ;;  %v1662_v35 = vmax.f32 %v1224_v61, %v1544_v48  ;;  %v1546_v39 = vpop.f32.mrb[127].mxu1  ;;  %v3709_v48 = vmax.f32 %v3110_v30, %v3112_v50 }
 0x208   :  { %v3710_v39 = vld [vmem:[#allocation6_spill] sm:$0xff] }
 0x209   :  { %v1754_v44 = vadd.f32 %v3253_v38, %v1704_v13  ;;  %v1705_v51 = vmax.f32 %v3700_v45, %v1662_v35 }
 0x20b   :  { %v1797_v27 = vmax.f32 %v1754_v44, 0.0  ;;  %v1755_v46 = vadd.f32 %v3253_v38, %v1705_v51  ;;  %v3711_v44 = vld [vmem:[#allocation7_spill] sm:$0xff] }
 0x20c   :  { %v1229_v37 = vpop.f32.mrb[128].mxu0  ;;  %v1549_v18 = vpop.f32.mrb[128].mxu1  ;;  %v3712_v45 = vmax.f32 %v3710_v39, %v3711_v44 }
 0x20d   :  { %v1231_v43 = vpop.f32.mrb[129].mxu0  ;;  %1841 = vst.msk [vmem:[%s3602_s3 + $0x90] sm:$0xff] %vm1822_vm2, %v1797_v27  ;;  %v1798_v24 = vmax.f32 %v1755_v46, 0.0  ;;  %v1663_v49 = vmax.f32 %v1229_v37, %v1549_v18  ;;  %v1551_v62 = vpop.f32.mrb[129].mxu1 }
 0x20e   :  { %v1232_v63 = vpop.f32.mrb[130].mxu0  ;;  %v1552_v41 = vpop.f32.mrb[130].mxu1 }
 0x20f   :  { %v1234_v31 = vpop.f32.mrb[131].mxu0  ;;  %1842 = vst.msk [vmem:[%s3602_s3 + $0x98] sm:$0xff] %vm1822_vm2, %v1798_v24  ;;  %v1706_v2 = vmax.f32 %v3701_v21, %v1663_v49  ;;  %v1664_v12 = vmax.f32 %v1232_v63, %v1552_v41  ;;  %v1554_v9 = vpop.f32.mrb[131].mxu1  ;;  %v3713_v41 = vld [vmem:[#allocation8_spill] sm:$0xff] }
 0x210   :  { %v3714_v31 = vld [vmem:[#allocation9_spill] sm:$0xff] }
 0x211   :  { %v1756_v14 = vadd.f32 %v3253_v38, %v1706_v2  ;;  %v1707_v4 = vmax.f32 %v3704_v42, %v1664_v12  ;;  %v3715_v21 = vmax.f32 %v3713_v41, %v3714_v31  ;;  %v3718_v42 = vmax.f32 %v3716_v54, %v3717_v47 }
 0x213   :  { %v1799_v7 = vmax.f32 %v1756_v14, 0.0  ;;  %v1757_v1 = vadd.f32 %v3253_v38, %v1707_v4 }
 0x214   :  { %v1237_v3 = vpop.f32.mrb[132].mxu0  ;;  %v1557_v36 = vpop.f32.mrb[132].mxu1 }
 0x215   :  { %v1239_v33 = vpop.f32.mrb[133].mxu0  ;;  %1843 = vst.msk [vmem:[%s3602_s3 + $0xa0] sm:$0xff] %vm1822_vm2, %v1799_v7  ;;  %v1800_v26 = vmax.f32 %v1757_v1, 0.0  ;;  %v1665_v8 = vmax.f32 %v1237_v3, %v1557_v36  ;;  %v1559_v20 = vpop.f32.mrb[133].mxu1 }
 0x216   :  { %v1240_v0 = vpop.f32.mrb[134].mxu0  ;;  %v1560_v52 = vpop.f32.mrb[134].mxu1 }
 0x217   :  { %v1242_v53 = vpop.f32.mrb[135].mxu0  ;;  %1844 = vst.msk [vmem:[%s3602_s3 + $0xa8] sm:$0xff] %vm1822_vm2, %v1800_v26  ;;  %v1708_v34 = vmax.f32 %v3705_v25, %v1665_v8  ;;  %v1666_v16 = vmax.f32 %v1240_v0, %v1560_v52  ;;  %v1562_v59 = vpop.f32.mrb[135].mxu1  ;;  %v3719_v25 = vld [vmem:[#allocation12_spill] sm:$0xff] }
 0x219   :  { %v1758_v17 = vadd.f32 %v3253_v38, %v1708_v34  ;;  %v1709_v15 = vmax.f32 %v3708_v58, %v1666_v16  ;;  %v3720_v34 = vld [vmem:[#allocation13_spill] sm:$0xff]  ;;  %v3722_v58 = vld [vmem:[#allocation14_spill] sm:$0xff] }
 0x21a   :  { %v3721_v16 = vmax.f32 %v3719_v25, %v3720_v34 }
 0x21b   :  { %v1801_v11 = vmax.f32 %v1758_v17, 0.0  ;;  %v1759_v6 = vadd.f32 %v3253_v38, %v1709_v15  ;;  %v3723_v15 = vld [vmem:[#allocation15_spill] sm:$0xff] }
 0x21c   :  { %v1245_v10 = vpop.f32.mrb[136].mxu0  ;;  %v1565_v23 = vpop.f32.mrb[136].mxu1 }
 0x21d   :  { %v1247_v29 = vpop.f32.mrb[137].mxu0  ;;  %1845 = vst.msk [vmem:[%s3602_s3 + $0xb0] sm:$0xff] %vm1822_vm2, %v1801_v11  ;;  %v1802_v28 = vmax.f32 %v1759_v6, 0.0  ;;  %v1667_v60 = vmax.f32 %v1245_v10, %v1565_v23  ;;  %v1567_v22 = vpop.f32.mrb[137].mxu1  ;;  %v3724_v11 = vmax.f32 %v3722_v58, %v3723_v15 }
 0x21e   :  { %v1248_v5 = vpop.f32.mrb[138].mxu0  ;;  %v1568_v56 = vpop.f32.mrb[138].mxu1 }
 0x21f   :  { %v1250_v61 = vpop.f32.mrb[139].mxu0  ;;  %1846 = vst.msk [vmem:[%s3602_s3 + $0xb8] sm:$0xff] %vm1822_vm2, %v1802_v28  ;;  %v1710_v40 = vmax.f32 %v3709_v48, %v1667_v60  ;;  %v1668_v19 = vmax.f32 %v1248_v5, %v1568_v56  ;;  %v1570_v13 = vpop.f32.mrb[139].mxu1 }
 0x220   :  { %v3726_v13 = vld [vmem:[#allocation17_spill] sm:$0xff] }
 0x221   :  { %v1760_v35 = vadd.f32 %v3253_v38, %v1710_v40  ;;  %v1711_v51 = vmax.f32 %v3712_v45, %v1668_v19  ;;  %v3725_v19 = vld [vmem:[#allocation16_spill] sm:$0xff] }
 0x223   :  { %v1803_v27 = vmax.f32 %v1760_v35, 0.0  ;;  %v1761_v46 = vadd.f32 %v3253_v38, %v1711_v51  ;;  %v3727_v35 = vmax.f32 %v3725_v19, %v3726_v13 }
 0x224   :  { %v1253_v37 = vpop.f32.mrb[140].mxu0  ;;  %v1573_v18 = vpop.f32.mrb[140].mxu1 }
 0x225   :  { %v1255_v43 = vpop.f32.mrb[141].mxu0  ;;  %1847 = vst.msk [vmem:[%s3602_s3 + $0xc0] sm:$0xff] %vm1822_vm2, %v1803_v27  ;;  %v1804_v30 = vmax.f32 %v1761_v46, 0.0  ;;  %v1669_v50 = vmax.f32 %v1253_v37, %v1573_v18  ;;  %v1575_v24 = vpop.f32.mrb[141].mxu1  ;;  %v3728_v27 = vld [vmem:[#allocation18_spill] sm:$0xff]  ;;  %v3729_v46 = vld [vmem:[#allocation19_spill] sm:$0xff] }
 0x226   :  { %v1256_v49 = vpop.f32.mrb[142].mxu0  ;;  %v1576_v62 = vpop.f32.mrb[142].mxu1  ;;  %v3730_v37 = vmax.f32 %v3728_v27, %v3729_v46 }
 0x227   :  { %v1258_v63 = vpop.f32.mrb[143].mxu0  ;;  %1848 = vst.msk [vmem:[%s3602_s3 + $0xc8] sm:$0xff] %vm1822_vm2, %v1804_v30  ;;  %v1712_v2 = vmax.f32 %v3715_v21, %v1669_v50  ;;  %v1670_v12 = vmax.f32 %v1256_v49, %v1576_v62  ;;  %v1578_v9 = vpop.f32.mrb[143].mxu1 }
 0x228   :  { %v3732_v9 = vld [vmem:[#allocation21_spill] sm:$0xff] }
 0x229   :  { %v1762_v14 = vadd.f32 %v3253_v38, %v1712_v2  ;;  %v1713_v4 = vmax.f32 %v3718_v42, %v1670_v12  ;;  %v3731_v12 = vld [vmem:[#allocation20_spill] sm:$0xff] }
 0x22b   :  { %v1805_v7 = vmax.f32 %v1762_v14, 0.0  ;;  %v1763_v1 = vadd.f32 %v3253_v38, %v1713_v4  ;;  %v3733_v14 = vmax.f32 %v3731_v12, %v3732_v9 }
 0x22c   :  { %v1261_v3 = vpop.f32.mrb[144].mxu0  ;;  %v1581_v36 = vpop.f32.mrb[144].mxu1 }
 0x22d   :  { %v1263_v33 = vpop.f32.mrb[145].mxu0  ;;  %1849 = vst.msk [vmem:[%s3602_s3 + $0xd0] sm:$0xff] %vm1822_vm2, %v1805_v7  ;;  %v1806_v26 = vmax.f32 %v1763_v1, 0.0  ;;  %v1671_v8 = vmax.f32 %v1261_v3, %v1581_v36  ;;  %v1583_v20 = vpop.f32.mrb[145].mxu1  ;;  %v3734_v7 = vld [vmem:[#allocation22_spill] sm:$0xff]  ;;  %v3735_v1 = vld [vmem:[#allocation23_spill] sm:$0xff] }
 0x22e   :  { %v1264_v0 = vpop.f32.mrb[146].mxu0  ;;  %v1584_v52 = vpop.f32.mrb[146].mxu1  ;;  %v3736_v3 = vmax.f32 %v3734_v7, %v3735_v1 }
 0x22f   :  { %v1266_v53 = vpop.f32.mrb[147].mxu0  ;;  %1850 = vst.msk [vmem:[%s3602_s3 + $0xd8] sm:$0xff] %vm1822_vm2, %v1806_v26  ;;  %v1714_v59 = vmax.f32 %v3721_v16, %v1671_v8  ;;  %v1672_v17 = vmax.f32 %v1264_v0, %v1584_v52  ;;  %v1586_v32 = vpop.f32.mrb[147].mxu1 }
 0x230   :  { %v3738_v32 = vld [vmem:[#allocation25_spill] sm:$0xff] }
 0x231   :  { %v1764_v57 = vadd.f32 %v3253_v38, %v1714_v59  ;;  %v1715_v6 = vmax.f32 %v3724_v11, %v1672_v17  ;;  %v3737_v17 = vld [vmem:[#allocation24_spill] sm:$0xff] }
 0x233   :  { %v1807_v10 = vmax.f32 %v1764_v57, 0.0  ;;  %v1765_v23 = vadd.f32 %v3253_v38, %v1715_v6  ;;  %v3739_v57 = vmax.f32 %v3737_v17, %v3738_v32 }
 0x234   :  { %v1269_v29 = vpop.f32.mrb[148].mxu0  ;;  %v1589_v28 = vpop.f32.mrb[148].mxu1 }
 0x235   :  { %v1271_v60 = vpop.f32.mrb[149].mxu0  ;;  %1851 = vst.msk [vmem:[%s3602_s3 + $0xe0] sm:$0xff] %vm1822_vm2, %v1807_v10  ;;  %v1808_v22 = vmax.f32 %v1765_v23, 0.0  ;;  %v1673_v5 = vmax.f32 %v1269_v29, %v1589_v28  ;;  %v1591_v56 = vpop.f32.mrb[149].mxu1  ;;  %v3740_v10 = vld [vmem:[#allocation26_spill] sm:$0xff]  ;;  %v3741_v23 = vld [vmem:[#allocation27_spill] sm:$0xff] }
 0x236   :  { %v1272_v61 = vpop.f32.mrb[150].mxu0  ;;  %v1592_v48 = vpop.f32.mrb[150].mxu1  ;;  %v3742_v29 = vmax.f32 %v3740_v10, %v3741_v23 }
 0x237   :  { %v1274_v40 = vpop.f32.mrb[151].mxu0  ;;  %1852 = vst.msk [vmem:[%s3602_s3 + $0xe8] sm:$0xff] %vm1822_vm2, %v1808_v22  ;;  %v1716_v39 = vmax.f32 %v3727_v35, %v1673_v5  ;;  %v1674_v44 = vmax.f32 %v1272_v61, %v1592_v48  ;;  %v1594_v45 = vpop.f32.mrb[151].mxu1 }
 0x238   :  { %v3744_v45 = vld [vmem:[#allocation29_spill] sm:$0xff] }
 0x239   :  { %v1766_v51 = vadd.f32 %v3253_v38, %v1716_v39  ;;  %v1717_v18 = vmax.f32 %v3730_v37, %v1674_v44  ;;  %v3743_v44 = vld [vmem:[#allocation28_spill] sm:$0xff] }
 0x23b   :  { %v1809_v43 = vmax.f32 %v1766_v51, 0.0  ;;  %v1767_v30 = vadd.f32 %v3253_v38, %v1717_v18  ;;  %v3745_v51 = vmax.f32 %v3743_v44, %v3744_v45 }
 0x23c   :  { %v1277_v50 = vpop.f32.mrb[152].mxu0  ;;  %v1597_v24 = vpop.f32.mrb[152].mxu1 }
 0x23d   :  { %v1279_v49 = vpop.f32.mrb[153].mxu0  ;;  %1853 = vst.msk [vmem:[%s3602_s3 + $0xf0] sm:$0xff] %vm1822_vm2, %v1809_v43  ;;  %v1810_v62 = vmax.f32 %v1767_v30, 0.0  ;;  %v1675_v63 = vmax.f32 %v1277_v50, %v1597_v24  ;;  %v1599_v41 = vpop.f32.mrb[153].mxu1  ;;  %v3746_v43 = vld [vmem:[#allocation30_spill] sm:$0xff]  ;;  %v3747_v30 = vld [vmem:[#allocation31_spill] sm:$0xff] }
 0x23e   :  { %v1280_v31 = vpop.f32.mrb[154].mxu0  ;;  %v1600_v21 = vpop.f32.mrb[154].mxu1  ;;  %v3748_v50 = vmax.f32 %v3746_v43, %v3747_v30 }
 0x23f   :  { %v1282_v2 = vpop.f32.mrb[155].mxu0  ;;  %1854 = vst.msk [vmem:[%s3602_s3 + $0xf8] sm:$0xff] %vm1822_vm2, %v1810_v62  ;;  %v1718_v54 = vmax.f32 %v3733_v14, %v1675_v63  ;;  %v1676_v47 = vmax.f32 %v1280_v31, %v1600_v21  ;;  %v1602_v42 = vpop.f32.mrb[155].mxu1 }
 0x240   :  { %v3750_v42 = vld [vmem:[#allocation33_spill] sm:$0xff] }
 0x241   :  { %v1768_v4 = vadd.f32 %v3253_v38, %v1718_v54  ;;  %v1719_v36 = vmax.f32 %v3736_v3, %v1676_v47  ;;  %v3749_v47 = vld [vmem:[#allocation32_spill] sm:$0xff] }
 0x243   :  { %v1811_v33 = vmax.f32 %v1768_v4, 0.0  ;;  %v1769_v26 = vadd.f32 %v3253_v38, %v1719_v36  ;;  %v3751_v4 = vmax.f32 %v3749_v47, %v3750_v42 }
 0x244   :  { %v1285_v8 = vpop.f32.mrb[156].mxu0  ;;  %v1605_v20 = vpop.f32.mrb[156].mxu1 }
 0x245   :  { %v1287_v0 = vpop.f32.mrb[157].mxu0  ;;  %1855 = vst.msk [vmem:[%s3602_s3 + $0x100] sm:$0xff] %vm1822_vm2, %v1811_v33  ;;  %v1812_v52 = vmax.f32 %v1769_v26, 0.0  ;;  %v1677_v53 = vmax.f32 %v1285_v8, %v1605_v20  ;;  %v1607_v25 = vpop.f32.mrb[157].mxu1  ;;  %v3752_v33 = vld [vmem:[#allocation34_spill] sm:$0xff]  ;;  %v3753_v26 = vld [vmem:[#allocation35_spill] sm:$0xff] }
 0x246   :  { %v1288_v34 = vpop.f32.mrb[158].mxu0  ;;  %v1608_v16 = vpop.f32.mrb[158].mxu1  ;;  %v3754_v8 = vmax.f32 %v3752_v33, %v3753_v26 }
 0x247   :  { %v1290_v59 = vpop.f32.mrb[159].mxu0  ;;  %1856 = vst.msk [vmem:[%s3602_s3 + $0x108] sm:$0xff] %vm1822_vm2, %v1812_v52  ;;  %v1720_v58 = vmax.f32 %v3739_v57, %v1677_v53  ;;  %v1678_v15 = vmax.f32 %v1288_v34, %v1608_v16  ;;  %v1610_v11 = vpop.f32.mrb[159].mxu1 }
 0x248   :  { %v3756_v11 = vld [vmem:[#allocation37_spill] sm:$0xff] }
 0x249   :  { %v1770_v6 = vadd.f32 %v3253_v38, %v1720_v58  ;;  %v1721_v28 = vmax.f32 %v3742_v29, %v1678_v15  ;;  %v3755_v15 = vld [vmem:[#allocation36_spill] sm:$0xff] }
 0x24b   :  { %v1813_v60 = vmax.f32 %v1770_v6, 0.0  ;;  %v1771_v22 = vadd.f32 %v3253_v38, %v1721_v28  ;;  %v3757_v6 = vmax.f32 %v3755_v15, %v3756_v11 }
 0x24c   :  { %v1293_v5 = vpop.f32.mrb[160].mxu0  ;;  %v1613_v56 = vpop.f32.mrb[160].mxu1 }
 0x24d   :  { %v1295_v61 = vpop.f32.mrb[161].mxu0  ;;  %1857 = vst.msk [vmem:[%s3602_s3 + $0x110] sm:$0xff] %vm1822_vm2, %v1813_v60  ;;  %v1814_v48 = vmax.f32 %v1771_v22, 0.0  ;;  %v1679_v40 = vmax.f32 %v1293_v5, %v1613_v56  ;;  %v1615_v19 = vpop.f32.mrb[161].mxu1  ;;  %v3758_v60 = vld [vmem:[#allocation38_spill] sm:$0xff] }
 0x24e   :  { %v1296_v13 = vpop.f32.mrb[162].mxu0  ;;  %v1616_v35 = vpop.f32.mrb[162].mxu1  ;;  %v3759_v22 = vmax.f32 %v3238_v55, %v3758_v60  ;;  %v3760_v55 = vld [vmem:[#allocation39_spill] sm:$0xff] }
 0x24f   :  { %v1298_v39 = vpop.f32.mrb[163].mxu0  ;;  %1858 = vst.msk [vmem:[%s3602_s3 + $0x118] sm:$0xff] %vm1822_vm2, %v1814_v48  ;;  %v1722_v27 = vmax.f32 %v3745_v51, %v1679_v40  ;;  %v1680_v46 = vmax.f32 %v1296_v13, %v1616_v35  ;;  %v1618_v37 = vpop.f32.mrb[163].mxu1 }
 0x251   :  { %v1772_v18 = vadd.f32 %v3253_v38, %v1722_v27  ;;  %v1723_v24 = vmax.f32 %v3748_v50, %v1680_v46  ;;  %v3761_v27 = vld [vmem:[#allocation40_spill] sm:$0xff] }
 0x252   :  { %v3762_v46 = vmax.f32 %v3760_v55, %v3761_v27 }
 0x253   :  { %v1815_v49 = vmax.f32 %v1772_v18, 0.0  ;;  %v1773_v62 = vadd.f32 %v3253_v38, %v1723_v24 }
 0x254   :  { %v1301_v63 = vpop.f32.mrb[164].mxu0  ;;  %v1621_v41 = vpop.f32.mrb[164].mxu1 }
 0x255   :  { %v1303_v31 = vpop.f32.mrb[165].mxu0  ;;  %1859 = vst.msk [vmem:[%s3602_s3 + $0x120] sm:$0xff] %vm1822_vm2, %v1815_v49  ;;  %v1816_v21 = vmax.f32 %v1773_v62, 0.0  ;;  %v1681_v2 = vmax.f32 %v1301_v63, %v1621_v41  ;;  %v1623_v12 = vpop.f32.mrb[165].mxu1 }
 0x256   :  { %v1304_v9 = vpop.f32.mrb[166].mxu0  ;;  %v1624_v14 = vpop.f32.mrb[166].mxu1 }
 0x257   :  { %v1306_v54 = vpop.f32.mrb[167].mxu0  ;;  %1860 = vst.msk [vmem:[%s3602_s3 + $0x128] sm:$0xff] %vm1822_vm2, %v1816_v21  ;;  %v1724_v7 = vmax.f32 %v3751_v4, %v1681_v2  ;;  %v1682_v1 = vmax.f32 %v1304_v9, %v1624_v14  ;;  %v1626_v3 = vpop.f32.mrb[167].mxu1 }
 0x259   :  { %v1774_v36 = vadd.f32 %v3253_v38, %v1724_v7  ;;  %v1725_v20 = vmax.f32 %v3754_v8, %v1682_v1 }
 0x25b   :  { %v1817_v0 = vmax.f32 %v1774_v36, 0.0  ;;  %v1775_v52 = vadd.f32 %v3253_v38, %v1725_v20 }
 0x25c   :  { %v1309_v53 = vpop.f32.mrb[168].mxu0  ;;  %v1629_v25 = vpop.f32.mrb[168].mxu1 }
 0x25d   :  { %v1311_v34 = vpop.f32.mrb[169].mxu0  ;;  %1861 = vst.msk [vmem:[%s3602_s3 + $0x130] sm:$0xff] %vm1822_vm2, %v1817_v0  ;;  %v1818_v16 = vmax.f32 %v1775_v52, 0.0  ;;  %v1683_v59 = vmax.f32 %v1309_v53, %v1629_v25  ;;  %v1631_v17 = vpop.f32.mrb[169].mxu1 }
 0x25e   :  { %v1312_v32 = vpop.f32.mrb[170].mxu0  ;;  %v1632_v57 = vpop.f32.mrb[170].mxu1 }
 0x25f   :  { %v1314_v58 = vpop.f32.mrb[171].mxu0  ;;  %1862 = vst.msk [vmem:[%s3602_s3 + $0x138] sm:$0xff] %vm1822_vm2, %v1818_v16  ;;  %v1726_v10 = vmax.f32 %v3757_v6, %v1683_v59  ;;  %v1684_v23 = vmax.f32 %v1312_v32, %v1632_v57  ;;  %v1634_v29 = vpop.f32.mrb[171].mxu1 }
 0x261   :  { %v1776_v28 = vadd.f32 %v3253_v38, %v1726_v10  ;;  %v1727_v5 = vmax.f32 %v3759_v22, %v1684_v23 }
 0x263   :  { %v1819_v56 = vmax.f32 %v1776_v28, 0.0  ;;  %v1777_v61 = vadd.f32 %v3253_v38, %v1727_v5 }
 0x264   :  { %v1317_v48 = vpop.f32.mrb[172].mxu0  ;;  %v1637_v40 = vpop.f32.mrb[172].mxu1 }
 0x265   :  { %v1319_v19 = vpop.f32.mrb[173].mxu0  ;;  %1863 = vst.msk [vmem:[%s3602_s3 + $0x140] sm:$0xff] %vm1822_vm2, %v1819_v56  ;;  %v1820_v13 = vmax.f32 %v1777_v61, 0.0  ;;  %v1685_v35 = vmax.f32 %v1317_v48, %v1637_v40  ;;  %v1639_v39 = vpop.f32.mrb[173].mxu1 }
 0x266   :  { %v1320_v44 = vpop.f32.mrb[174].mxu0  ;;  %v1640_v45 = vpop.f32.mrb[174].mxu1 }
 0x267   :  { %v1321_v51 = vpop.f32.mrb[175].mxu0  ;;  %1864 = vst.msk [vmem:[%s3602_s3 + $0x148] sm:$0xff] %vm1822_vm2, %v1820_v13  ;;  %v1728_v37 = vmax.f32 %v3762_v46, %v1685_v35  ;;  %v1641_v18 = vpop.f32.mrb[175].mxu1 }
 0x269   :  { %v1778_v43 = vadd.f32 %v3253_v38, %v1728_v37 }
 0x26b   :  { %v1821_v30 = vmax.f32 %v1778_v43, 0.0 }
 0x26d   :  { %1865 = vst.msk [vmem:[%s3602_s3 + $0x150] sm:$0xff] %vm1822_vm2, %v1821_v30 }

// kernel: net_forward.5
= control target key start
LH: loop header
LB: loop body
LE: loop exit
PB: predicated region body
PF: predicated region fallthrough
CT: control target
= control target key end

     0   :  { %v383_v27 = vlaneseq  ;;  %v2928_v35 = vmov 1966171168   ;;  %vm1559_vm0 = vcmask 130048   ;;  %s3608_s0 = inlined_call_operand.vmem [shape: bf16[2,2704], index: 0, kind: input, shape index: {}]   ;;  %s3609_s1 = inlined_call_operand.vmem [shape: bf16[2704,128], index: 1, kind: input, shape index: {}]   ;;  %s3610_s2 = inlined_call_operand.vmem [shape: f32[1,128], index: 2, kind: input, shape index: {}]   ;;  %s3611_s3 = inlined_call_operand.vmem [shape: bf16[128,128], index: 3, kind: input, shape index: {}]   ;;  %s3612_s4 = inlined_call_operand.vmem [shape: f32[1,128], index: 4, kind: input, shape index: {}]   ;;  %s3613_s5 = inlined_call_operand.vmem [shape: bf16[128,128], index: 5, kind: input, shape index: {}]   ;;  %s3614_s6 = inlined_call_operand.vmem [shape: f32[1,128], index: 6, kind: input, shape index: {}]   ;;  %s3615_s7 = inlined_call_operand.hbm [shape: f32[2,128], index: 7, kind: output, shape index: {}]  }
   0x1   :  { %v2716_v0 = vld [vmem:[%s3609_s1 + $0x40] sm:$0xff]   ;;  %v2720_v4 = vld [vmem:[%s3609_s1 + $0x48] sm:$0xff]   ;;  %v2724_v8 = vld [vmem:[%s3609_s1 + $0x50] sm:$0xff]   ;;  %v381_v36 = vunpack.c.l.s4 %v2928_v35 }
   0x2   :  { %v2717_v1 = vld [vmem:[%s3609_s1] sm:$0xff]   ;;  %2433 = vmatprep.subr.bf16.mxu0 %v2716_v0  ;;  %v2721_v5 = vld [vmem:[%s3609_s1 + $0x8] sm:$0xff]   ;;  %v2725_v9 = vld [vmem:[%s3609_s1 + $0x10] sm:$0xff]   ;;  %v384_v32 = vshrl.u32 %v383_v27, 7 }
   0x3   :  { %v2718_v2 = vld [vmem:[%s3609_s1 + $0xc0] sm:$0xff]   ;;  %2434 = vmatpush3.bf16.msra.mxu0 %v2717_v1  ;;  %v2722_v6 = vld [vmem:[%s3609_s1 + $0xc8] sm:$0xff]   ;;  %v2726_v10 = vld [vmem:[%s3609_s1 + $0xd0] sm:$0xff]   ;;  %v382_v39 = vunpack.c.0.s8 %v381_v36 }
   0x4   :  { %v2719_v3 = vld [vmem:[%s3609_s1 + $0x80] sm:$0xff]   ;;  %2455 = vmatprep.subr.bf16.mxu1 %v2718_v2  ;;  %2435 = vmatprep.subr.bf16.mxu0 %v2720_v4  ;;  %v2723_v7 = vld [vmem:[%s3609_s1 + $0x88] sm:$0xff]   ;;  %v2727_v11 = vld [vmem:[%s3609_s1 + $0x90] sm:$0xff]  }
   0x5   :  { %2456 = vmatpush3.bf16.msra.mxu1 %v2719_v3  ;;  %v2728_v12 = vld [vmem:[%s3609_s1 + $0x58] sm:$0xff]   ;;  %v2732_v16 = vld [vmem:[%s3609_s1 + $0x60] sm:$0xff]   ;;  %v2736_v20 = vld [vmem:[%s3609_s1 + $0x68] sm:$0xff]   ;;  %v3078_v41 = vsub.s32 %v382_v39, %v384_v32 }
   0x6   :  { %2457 = vmatprep.subr.bf16.mxu1 %v2722_v6  ;;  %v2729_v13 = vld [vmem:[%s3609_s1 + $0x18] sm:$0xff]   ;;  %v2733_v17 = vld [vmem:[%s3609_s1 + $0x20] sm:$0xff]   ;;  %v2737_v21 = vld [vmem:[%s3609_s1 + $0x28] sm:$0xff]  }
   0x7   :  { %2436 = vmatpush3.bf16.msra.mxu0 %v2721_v5  ;;  %v2730_v14 = vld [vmem:[%s3609_s1 + $0xd8] sm:$0xff]   ;;  %v2734_v18 = vld [vmem:[%s3609_s1 + $0xe0] sm:$0xff]   ;;  %v2738_v22 = vld [vmem:[%s3609_s1 + $0xe8] sm:$0xff]  }
   0x8   :  { %2437 = vmatprep.subr.bf16.mxu0 %v2724_v8  ;;  %v2731_v15 = vld [vmem:[%s3609_s1 + $0x98] sm:$0xff]   ;;  %v2735_v19 = vld [vmem:[%s3609_s1 + $0xa0] sm:$0xff]   ;;  %v2739_v23 = vld [vmem:[%s3609_s1 + $0xa8] sm:$0xff]  }
   0x9   :  { %2458 = vmatpush3.bf16.msra.mxu1 %v2723_v7  ;;  %v2740_v24 = vld [vmem:[%s3609_s1 + $0x70] sm:$0xff]   ;;  %v2744_v29 = vld [vmem:[%s3609_s1 + $0x78] sm:$0xff]   ;;  %v28_v33 = vld [vmem:[%s3608_s0] sm:$0xff] }
   0xa   :  { %2459 = vmatprep.subr.bf16.mxu1 %v2726_v10  ;;  %v2741_v25 = vld [vmem:[%s3609_s1 + $0x30] sm:$0xff]   ;;  %v2745_v30 = vld [vmem:[%s3609_s1 + $0x38] sm:$0xff]   ;;  %v2749_v37 = vld [vmem:[%s3609_s1 + $0x140] sm:$0xff]   ;;  %v379_v38 = vcombine.high %v28_v33, %v28_v33  ;;  %v386_v42 = vrot.slane %v28_v33, %v3078_v41 }
   0xb   :  { %2438 = vmatpush3.bf16.msra.mxu0 %v2725_v9  ;;  %v2742_v26 = vld [vmem:[%s3609_s1 + $0xf0] sm:$0xff]   ;;  %v2746_v31 = vld [vmem:[%s3609_s1 + $0xf8] sm:$0xff]   ;;  %v2751_v40 = vld [vmem:[%s3609_s1 + $0x1c0] sm:$0xff]  }
   0xc   :  { %2439 = vmatprep.subr.bf16.mxu0 %v2728_v12  ;;  %v2743_v28 = vld [vmem:[%s3609_s1 + $0xb0] sm:$0xff]   ;;  %v2748_v34 = vld [vmem:[%s3609_s1 + $0xb8] sm:$0xff]   ;;  %v3082_v43 = vrot.slane %v379_v38, %v3078_v41  ;;  %v394_v44 = vcombine.high %v386_v42, %v386_v42  ;;  %v402_v45 = vrot.slane %v386_v42, %v3078_v41  ;;  %v2750_v48 = vld [vmem:[%s3609_s1 + $0x100] sm:$0xff]  }
   0xd   :  { %2460 = vmatpush3.bf16.msra.mxu1 %v2727_v11  ;;  %v2753_v51 = vld [vmem:[%s3609_s1 + $0x148] sm:$0xff]   ;;  %v2752_v53 = vld [vmem:[%s3609_s1 + $0x180] sm:$0xff]   ;;  %v2757_v57 = vld [vmem:[%s3609_s1 + $0x150] sm:$0xff]  }
   0xe   :  { %2461 = vmatprep.subr.bf16.mxu1 %v2730_v14  ;;  %v395_v46 = vcombine.high %v3082_v43, %v3082_v43  ;;  %v416_v47 = vrot.slane %v394_v44, %v3078_v41  ;;  %v424_v50 = vcombine.high %v402_v45, %v402_v45  ;;  %v2755_v54 = vld [vmem:[%s3609_s1 + $0x1c8] sm:$0xff]   ;;  %v2759_v59 = vld [vmem:[%s3609_s1 + $0x1d0] sm:$0xff]   ;;  %v2761_v61 = vld [vmem:[%s3609_s1 + $0x158] sm:$0xff]  }
   0xf   :  { %2440 = vmatpush3.bf16.msra.mxu0 %v2729_v13  ;;  %v2754_v56 = vld [vmem:[%s3609_s1 + $0x108] sm:$0xff]   ;;  %v2758_v60 = vld [vmem:[%s3609_s1 + $0x110] sm:$0xff]   ;;  %v2763_v63 = vld [vmem:[%s3609_s1 + $0x1d8] sm:$0xff]  }
  0x10   :  { %2441 = vmatprep.subr.bf16.mxu0 %v2732_v16  ;;  %v423_v49 = vrot.slane %v395_v46, %v3078_v41  ;;  %1595 = vmatprep.mubr.bf16.mxu0 %v416_v47  ;;  %v426_v52 = vcombine.high %v416_v47, %v416_v47  ;;  %v2756_v58 = vld [vmem:[%s3609_s1 + $0x188] sm:$0xff]   ;;  %v2760_v62 = vld [vmem:[%s3609_s1 + $0x190] sm:$0xff]   ;;  %v2762_v0 = vld [vmem:[%s3609_s1 + $0x118] sm:$0xff]  }
  0x11   :  { %2462 = vmatpush3.bf16.msra.mxu1 %v2731_v15  ;;  %v2765_v1 = vld [vmem:[%s3609_s1 + $0x160] sm:$0xff]   ;;  %v2764_v2 = vld [vmem:[%s3609_s1 + $0x198] sm:$0xff]   ;;  %v2769_v5 = vld [vmem:[%s3609_s1 + $0x168] sm:$0xff]  }
  0x12   :  { %2463 = vmatprep.subr.bf16.mxu1 %v2734_v18  ;;  %v427_v55 = vcombine.high %v423_v49, %v423_v49  ;;  %1635 = vmatprep.mubr.bf16.mxu1 %v426_v52  ;;  %v2767_v3 = vld [vmem:[%s3609_s1 + $0x1e0] sm:$0xff]   ;;  %v2771_v7 = vld [vmem:[%s3609_s1 + $0x1e8] sm:$0xff]   ;;  %v2773_v9 = vld [vmem:[%s3609_s1 + $0x170] sm:$0xff]  }
  0x13   :  { %2442 = vmatpush3.bf16.msra.mxu0 %v2733_v17  ;;  %v2766_v4 = vld [vmem:[%s3609_s1 + $0x120] sm:$0xff]   ;;  %v2770_v8 = vld [vmem:[%s3609_s1 + $0x128] sm:$0xff]   ;;  %v2775_v11 = vld [vmem:[%s3609_s1 + $0x1f0] sm:$0xff]   ;;  %v409_v17 = vrot.slane %v3082_v43, %v3078_v41 }
  0x14   :  { %2443 = vmatprep.subr.bf16.mxu0 %v2736_v20  ;;  %v2768_v6 = vld [vmem:[%s3609_s1 + $0x1a0] sm:$0xff]   ;;  %v2772_v10 = vld [vmem:[%s3609_s1 + $0x1a8] sm:$0xff]   ;;  %v2774_v12 = vld [vmem:[%s3609_s1 + $0x130] sm:$0xff]  }
  0x15   :  { %2464 = vmatpush3.bf16.msra.mxu1 %v2735_v19  ;;  %v2777_v13 = vld [vmem:[%s3609_s1 + $0x178] sm:$0xff]   ;;  %v2776_v14 = vld [vmem:[%s3609_s1 + $0x1b0] sm:$0xff]   ;;  %v2781_v18 = vld [vmem:[%s3609_s1 + $0x240] sm:$0xff]  }
  0x16   :  { %2465 = vmatprep.subr.bf16.mxu1 %v2738_v22  ;;  %v2779_v15 = vld [vmem:[%s3609_s1 + $0x1f8] sm:$0xff]   ;;  %v2783_v20 = vld [vmem:[%s3609_s1 + $0x2c0] sm:$0xff]   ;;  %v425_v22 = vcombine.high %v409_v17, %v409_v17  ;;  %v2789_v27 = vld [vmem:[%s3609_s1 + $0x250] sm:$0xff]  }
  0x17   :  { %2444 = vmatpush3.bf16.msra.mxu0 %v2737_v21  ;;  %v2778_v16 = vld [vmem:[%s3609_s1 + $0x138] sm:$0xff]   ;;  %v2782_v21 = vld [vmem:[%s3609_s1 + $0x200] sm:$0xff]   ;;  %v2792_v32 = vld [vmem:[%s3609_s1 + $0x290] sm:$0xff]  }
  0x18   :  { %2445 = vmatprep.subr.bf16.mxu0 %v2740_v24  ;;  %v2780_v19 = vld [vmem:[%s3609_s1 + $0x1b8] sm:$0xff]   ;;  %v2784_v24 = vld [vmem:[%s3609_s1 + $0x280] sm:$0xff]   ;;  %v2801_v39 = vld [vmem:[%s3609_s1 + $0x268] sm:$0xff]  }
  0x19   :  { %2466 = vmatpush3.bf16.msra.mxu1 %v2739_v23  ;;  %v2785_v23 = vld [vmem:[%s3609_s1 + $0x248] sm:$0xff]   ;;  %v2795_v33 = vld [vmem:[%s3609_s1 + $0x2d8] sm:$0xff]   ;;  %v2797_v35 = vld [vmem:[%s3609_s1 + $0x260] sm:$0xff]  }
  0x1a   :  { %2467 = vmatprep.subr.bf16.mxu1 %v2742_v26  ;;  %v2786_v26 = vld [vmem:[%s3609_s1 + $0x208] sm:$0xff]   ;;  %v2796_v36 = vld [vmem:[%s3609_s1 + $0x298] sm:$0xff]   ;;  %v2798_v38 = vld [vmem:[%s3609_s1 + $0x220] sm:$0xff]  }
  0x1b   :  { %2446 = vmatpush3.bf16.msra.mxu0 %v2741_v25  ;;  %v2787_v25 = vld [vmem:[%s3609_s1 + $0x2c8] sm:$0xff]   ;;  %v2805_v44 = vld [vmem:[%s3609_s1 + $0x270] sm:$0xff]  }
  0x1c   :  { %2447 = vmatprep.subr.bf16.mxu0 %v2744_v29  ;;  %v2791_v29 = vld [vmem:[%s3609_s1 + $0x2d0] sm:$0xff]   ;;  %v2803_v42 = vld [vmem:[%s3609_s1 + $0x2e8] sm:$0xff]  }
  0x1d   :  { %2468 = vmatpush3.bf16.msra.mxu1 %v2743_v28  ;;  %v2788_v28 = vld [vmem:[%s3609_s1 + $0x288] sm:$0xff]  }
  0x1e   :  { %2469 = vmatprep.subr.bf16.mxu1 %v2746_v31  ;;  %v2793_v31 = vld [vmem:[%s3609_s1 + $0x258] sm:$0xff]   ;;  %v2802_v43 = vld [vmem:[%s3609_s1 + $0x228] sm:$0xff]  }
  0x1f   :  { %2448 = vmatpush3.bf16.msra.mxu0 %v2745_v30  ;;  %v2790_v30 = vld [vmem:[%s3609_s1 + $0x210] sm:$0xff]   ;;  %v2804_v46 = vld [vmem:[%s3609_s1 + $0x2a8] sm:$0xff]  }
  0x20   :  { %2477 = vmatprep.subr.bf16.mxu0 %v2749_v37  ;;  %v2799_v37 = vld [vmem:[%s3609_s1 + $0x2e0] sm:$0xff]  }
  0x21   :  { %2470 = vmatpush3.bf16.msra.mxu1 %v2748_v34  ;;  %v2794_v34 = vld [vmem:[%s3609_s1 + $0x218] sm:$0xff]  }
  0x22   :  { %2499 = vmatprep.subr.bf16.mxu1 %v2751_v40  ;;  %1596 = vmatmul.mubr.bf16.vlgmr.msra.gmra.mrb[0].mxu0 %v402_v45  ;;  %v2800_v40 = vld [vmem:[%s3609_s1 + $0x2a0] sm:$0xff]   ;;  %v29_v45 = vld [vmem:[%s3608_s0 + $0x8] sm:$0xff] }
  0x23   :  { %2478 = vmatpush3.bf16.msra.mxu0 %v2750_v48  ;;  %1675 = vmatprep.mubr.bf16.mxu0 %v423_v49  ;;  %v435_v47 = vrot.slane %v29_v45, %v3078_v41  ;;  %v428_v48 = vcombine.high %v29_v45, %v29_v45  ;;  %v2807_v49 = vld [vmem:[%s3609_s1 + $0x2f0] sm:$0xff]  }
  0x24   :  { %1636 = vmatmul.mubr.bf16.vlgmr.msra.gmra.mrb[0].mxu1 %v424_v50  ;;  %2479 = vmatprep.subr.bf16.mxu0 %v2753_v51  ;;  %v2806_v50 = vld [vmem:[%s3609_s1 + $0x230] sm:$0xff]  }
  0x25   :  { %2500 = vmatpush3.bf16.msra.mxu1 %v2752_v53  ;;  %1715 = vmatprep.mubr.bf16.mxu1 %v427_v55  ;;  %v443_v51 = vcombine.high %v435_v47, %v435_v47  ;;  %v3267_v52 = vrot.slane %v428_v48, %v3078_v41  ;;  %v2809_v53 = vld [vmem:[%s3609_s1 + $0x278] sm:$0xff]   ;;  %v2856_v45 = vld [vmem:[%s3609_s1 + $0x4d0] sm:$0xff]  }
  0x26   :  { %2501 = vmatprep.subr.bf16.mxu1 %v2755_v54  ;;  %v2808_v54 = vld [vmem:[%s3609_s1 + $0x2b0] sm:$0xff]  }
  0x27   :  { %2480 = vmatpush3.bf16.msra.mxu0 %v2754_v56  ;;  %v465_v55 = vrot.slane %v443_v51, %v3078_v41  ;;  %v444_v56 = vcombine.high %v3267_v52, %v3267_v52  ;;  %v2857_v48 = vld [vmem:[%s3609_s1 + $0x490] sm:$0xff]   ;;  %v2862_v51 = vld [vmem:[%s3609_s1 + $0x460] sm:$0xff]  }
  0x28   :  { %2481 = vmatprep.subr.bf16.mxu0 %v2757_v57  ;;  %v2811_v57 = vld [vmem:[%s3609_s1 + $0x2f8] sm:$0xff]  }
  0x29   :  { %2502 = vmatpush3.bf16.msra.mxu1 %v2756_v58  ;;  %v2810_v58 = vld [vmem:[%s3609_s1 + $0x238] sm:$0xff]  }
  0x2a   :  { %2503 = vmatprep.subr.bf16.mxu1 %v2759_v59  ;;  %v475_v59 = vcombine.high %v465_v55, %v465_v55 }
  0x2b   :  { %2482 = vmatpush3.bf16.msra.mxu0 %v2758_v60  ;;  %v451_v60 = vrot.slane %v435_v47, %v3078_v41  ;;  %v2858_v47 = vld [vmem:[%s3609_s1 + $0x458] sm:$0xff]  }
  0x2c   :  { %2483 = vmatprep.subr.bf16.mxu0 %v2761_v61  ;;  %v2813_v61 = vld [vmem:[%s3609_s1 + $0x340] sm:$0xff]  }
  0x2d   :  { %2504 = vmatpush3.bf16.msra.mxu1 %v2760_v62  ;;  %v2812_v62 = vld [vmem:[%s3609_s1 + $0x2b8] sm:$0xff]  }
  0x2e   :  { %2505 = vmatprep.subr.bf16.mxu1 %v2763_v63  ;;  %v472_v63 = vrot.slane %v444_v56, %v3078_v41  ;;  %v2865_v56 = vld [vmem:[%s3609_s1 + $0x4a0] sm:$0xff]  }
  0x2f   :  { %2484 = vmatpush3.bf16.msra.mxu0 %v2762_v0  ;;  %v2815_v0 = vld [vmem:[%s3609_s1 + $0x3c0] sm:$0xff]  }
  0x30   :  { %2485 = vmatprep.subr.bf16.mxu0 %v2765_v1  ;;  %v2814_v1 = vld [vmem:[%s3609_s1 + $0x300] sm:$0xff]  }
  0x31   :  { %2506 = vmatpush3.bf16.msra.mxu1 %v2764_v2  ;;  %v473_v2 = vcombine.high %v451_v60, %v451_v60 }
  0x32   :  { %2507 = vmatprep.subr.bf16.mxu1 %v2767_v3  ;;  %v2817_v3 = vld [vmem:[%s3609_s1 + $0x348] sm:$0xff]  }
  0x33   :  { %2486 = vmatpush3.bf16.msra.mxu0 %v2766_v4  ;;  %v2816_v4 = vld [vmem:[%s3609_s1 + $0x380] sm:$0xff]  }
  0x34   :  { %2487 = vmatprep.subr.bf16.mxu0 %v2769_v5  ;;  %v476_v5 = vcombine.high %v472_v63, %v472_v63 }
  0x35   :  { %2508 = vmatpush3.bf16.msra.mxu1 %v2768_v6  ;;  %v2819_v6 = vld [vmem:[%s3609_s1 + $0x3c8] sm:$0xff]  }
  0x36   :  { %2509 = vmatprep.subr.bf16.mxu1 %v2771_v7  ;;  %v2818_v7 = vld [vmem:[%s3609_s1 + $0x308] sm:$0xff]  }
  0x37   :  { %2488 = vmatpush3.bf16.msra.mxu0 %v2770_v8  ;;  %v2821_v8 = vld [vmem:[%s3609_s1 + $0x350] sm:$0xff]  }
  0x38   :  { %2489 = vmatprep.subr.bf16.mxu0 %v2773_v9  ;;  %v2820_v9 = vld [vmem:[%s3609_s1 + $0x388] sm:$0xff]  }
  0x39   :  { %2510 = vmatpush3.bf16.msra.mxu1 %v2772_v10  ;;  %v2823_v10 = vld [vmem:[%s3609_s1 + $0x3d0] sm:$0xff]  }
  0x3a   :  { %2511 = vmatprep.subr.bf16.mxu1 %v2775_v11  ;;  %v2822_v11 = vld [vmem:[%s3609_s1 + $0x310] sm:$0xff]  }
  0x3b   :  { %2490 = vmatpush3.bf16.msra.mxu0 %v2774_v12  ;;  %v2825_v12 = vld [vmem:[%s3609_s1 + $0x358] sm:$0xff]  }
  0x3c   :  { %2491 = vmatprep.subr.bf16.mxu0 %v2777_v13  ;;  %v2824_v13 = vld [vmem:[%s3609_s1 + $0x390] sm:$0xff]  }
  0x3d   :  { %2512 = vmatpush3.bf16.msra.mxu1 %v2776_v14  ;;  %v2827_v14 = vld [vmem:[%s3609_s1 + $0x3d8] sm:$0xff]  }
  0x3e   :  { %2513 = vmatprep.subr.bf16.mxu1 %v2779_v15  ;;  %v2826_v15 = vld [vmem:[%s3609_s1 + $0x318] sm:$0xff]  }
  0x3f   :  { %2492 = vmatpush3.bf16.msra.mxu0 %v2778_v16  ;;  %v2829_v16 = vld [vmem:[%s3609_s1 + $0x360] sm:$0xff]  }
  0x40   :  { %2521 = vmatprep.subr.bf16.mxu0 %v2781_v18  ;;  %v2831_v18 = vld [vmem:[%s3609_s1 + $0x3e0] sm:$0xff]  }
  0x41   :  { %2514 = vmatpush3.bf16.msra.mxu1 %v2780_v19  ;;  %v2830_v19 = vld [vmem:[%s3609_s1 + $0x320] sm:$0xff]  }
  0x42   :  { %1676 = vmatmul.mubr.bf16.vlgmr.msra.gmra.mrb[4].mxu0 %v409_v17  ;;  %2543 = vmatprep.subr.bf16.mxu1 %v2783_v20  ;;  %v2828_v17 = vld [vmem:[%s3609_s1 + $0x398] sm:$0xff]   ;;  %v2833_v20 = vld [vmem:[%s3609_s1 + $0x368] sm:$0xff]  }
  0x43   :  { %2522 = vmatpush3.bf16.msra.mxu0 %v2782_v21  ;;  %1755 = vmatprep.mubr.bf16.mxu0 %v465_v55  ;;  %v2832_v21 = vld [vmem:[%s3609_s1 + $0x3a0] sm:$0xff]   ;;  %v2866_v55 = vld [vmem:[%s3609_s1 + $0x468] sm:$0xff]  }
  0x44   :  { %1716 = vmatmul.mubr.bf16.vlgmr.msra.gmra.mrb[4].mxu1 %v425_v22  ;;  %2523 = vmatprep.subr.bf16.mxu0 %v2785_v23  ;;  %v2835_v22 = vld [vmem:[%s3609_s1 + $0x3e8] sm:$0xff]  }
  0x45   :  { %2544 = vmatpush3.bf16.msra.mxu1 %v2784_v24  ;;  %1795 = vmatprep.mubr.bf16.mxu1 %v475_v59  ;;  %v2834_v23 = vld [vmem:[%s3609_s1 + $0x328] sm:$0xff]   ;;  %v2837_v24 = vld [vmem:[%s3609_s1 + $0x370] sm:$0xff]  }
  0x46   :  { %2545 = vmatprep.subr.bf16.mxu1 %v2787_v25  ;;  %v2836_v25 = vld [vmem:[%s3609_s1 + $0x3a8] sm:$0xff]   ;;  %v2870_v59 = vld [vmem:[%s3609_s1 + $0x470] sm:$0xff]  }
  0x47   :  { %2524 = vmatpush3.bf16.msra.mxu0 %v2786_v26  ;;  %v2839_v26 = vld [vmem:[%s3609_s1 + $0x3f0] sm:$0xff]  }
  0x48   :  { %2525 = vmatprep.subr.bf16.mxu0 %v2789_v27  ;;  %v2838_v27 = vld [vmem:[%s3609_s1 + $0x330] sm:$0xff]  }
  0x49   :  { %2546 = vmatpush3.bf16.msra.mxu1 %v2788_v28  ;;  %v2841_v28 = vld [vmem:[%s3609_s1 + $0x378] sm:$0xff]  }
  0x4a   :  { %2547 = vmatprep.subr.bf16.mxu1 %v2791_v29  ;;  %v2840_v29 = vld [vmem:[%s3609_s1 + $0x3b0] sm:$0xff]  }
  0x4b   :  { %2526 = vmatpush3.bf16.msra.mxu0 %v2790_v30  ;;  %v2843_v30 = vld [vmem:[%s3609_s1 + $0x3f8] sm:$0xff]  }
  0x4c   :  { %2527 = vmatprep.subr.bf16.mxu0 %v2793_v31  ;;  %v2842_v31 = vld [vmem:[%s3609_s1 + $0x338] sm:$0xff]  }
  0x4d   :  { %2548 = vmatpush3.bf16.msra.mxu1 %v2792_v32  ;;  %v458_v32 = vrot.slane %v3267_v52, %v3078_v41  ;;  %v2861_v52 = vld [vmem:[%s3609_s1 + $0x498] sm:$0xff]  }
  0x4e   :  { %2549 = vmatprep.subr.bf16.mxu1 %v2795_v33  ;;  %v2846_v33 = vld [vmem:[%s3609_s1 + $0x440] sm:$0xff]  }
  0x4f   :  { %2528 = vmatpush3.bf16.msra.mxu0 %v2794_v34  ;;  %v2845_v34 = vld [vmem:[%s3609_s1 + $0x3b8] sm:$0xff]  }
  0x50   :  { %2529 = vmatprep.subr.bf16.mxu0 %v2797_v35  ;;  %v2848_v35 = vld [vmem:[%s3609_s1 + $0x4c0] sm:$0xff]  }
  0x51   :  { %2550 = vmatpush3.bf16.msra.mxu1 %v2796_v36  ;;  %v2847_v36 = vld [vmem:[%s3609_s1 + $0x400] sm:$0xff]  }
  0x52   :  { %2551 = vmatprep.subr.bf16.mxu1 %v2799_v37  ;;  %v474_v37 = vcombine.high %v458_v32, %v458_v32 }
  0x53   :  { %2530 = vmatpush3.bf16.msra.mxu0 %v2798_v38  ;;  %v2850_v38 = vld [vmem:[%s3609_s1 + $0x448] sm:$0xff]  }
  0x54   :  { %2531 = vmatprep.subr.bf16.mxu0 %v2801_v39  ;;  %v2849_v39 = vld [vmem:[%s3609_s1 + $0x480] sm:$0xff]  }
  0x55   :  { %2552 = vmatpush3.bf16.msra.mxu1 %v2800_v40  ;;  %v2852_v40 = vld [vmem:[%s3609_s1 + $0x4c8] sm:$0xff]  }
  0x56   :  { %2553 = vmatprep.subr.bf16.mxu1 %v2803_v42  ;;  %v2851_v42 = vld [vmem:[%s3609_s1 + $0x408] sm:$0xff]  }
  0x57   :  { %2532 = vmatpush3.bf16.msra.mxu0 %v2802_v43  ;;  %v2854_v43 = vld [vmem:[%s3609_s1 + $0x450] sm:$0xff]  }
  0x58   :  { %2533 = vmatprep.subr.bf16.mxu0 %v2805_v44  ;;  %v2853_v44 = vld [vmem:[%s3609_s1 + $0x488] sm:$0xff]  }
  0x59   :  { %2554 = vmatpush3.bf16.msra.mxu1 %v2804_v46  ;;  %v2855_v46 = vld [vmem:[%s3609_s1 + $0x410] sm:$0xff]  }
  0x5a   :  { %2555 = vmatprep.subr.bf16.mxu1 %v2807_v49  ;;  %v2860_v49 = vld [vmem:[%s3609_s1 + $0x4d8] sm:$0xff]  }
  0x5b   :  { %2534 = vmatpush3.bf16.msra.mxu0 %v2806_v50  ;;  %v2859_v50 = vld [vmem:[%s3609_s1 + $0x418] sm:$0xff]  }
  0x5c   :  { %2535 = vmatprep.subr.bf16.mxu0 %v2809_v53  ;;  %v2864_v53 = vld [vmem:[%s3609_s1 + $0x4e0] sm:$0xff]  }
  0x5d   :  { %2556 = vmatpush3.bf16.msra.mxu1 %v2808_v54  ;;  %v2863_v54 = vld [vmem:[%s3609_s1 + $0x420] sm:$0xff]  }
  0x5e   :  { %2557 = vmatprep.subr.bf16.mxu1 %v2811_v57  ;;  %v2868_v57 = vld [vmem:[%s3609_s1 + $0x4e8] sm:$0xff]  }
  0x5f   :  { %2536 = vmatpush3.bf16.msra.mxu0 %v2810_v58  ;;  %v2867_v58 = vld [vmem:[%s3609_s1 + $0x428] sm:$0xff]  }
  0x60   :  { %2565 = vmatprep.subr.bf16.mxu0 %v2813_v61  ;;  %v2869_v61 = vld [vmem:[%s3609_s1 + $0x4a8] sm:$0xff]  }
  0x61   :  { %2558 = vmatpush3.bf16.msra.mxu1 %v2812_v62 }
  0x62   :  { %1756 = vmatmul.mubr.bf16.vlgmr.msra.gmra.mrb[8].mxu0 %v451_v60  ;;  %2587 = vmatprep.subr.bf16.mxu1 %v2815_v0  ;;  %v30_v60 = vld [vmem:[%s3608_s0 + $0x10] sm:$0x3f] }
  0x63   :  { %2566 = vmatpush3.bf16.msra.mxu0 %v2814_v1  ;;  %1835 = vmatprep.mubr.bf16.mxu0 %v472_v63  ;;  %v477_v62 = vcombine.high %v30_v60, %v30_v60  ;;  %v484_v63 = vrot.slane %v30_v60, %v3078_v41  ;;  %v2872_v0 = vld [vmem:[%s3609_s1 + $0x4f0] sm:$0xff]  }
  0x64   :  { %1796 = vmatmul.mubr.bf16.vlgmr.msra.gmra.mrb[8].mxu1 %v473_v2  ;;  %2567 = vmatprep.subr.bf16.mxu0 %v2817_v3  ;;  %v2871_v1 = vld [vmem:[%s3609_s1 + $0x430] sm:$0xff]  }
  0x65   :  { %2588 = vmatpush3.bf16.msra.mxu1 %v2816_v4  ;;  %1875 = vmatprep.mubr.bf16.mxu1 %v476_v5  ;;  %v492_v2 = vcombine.high %v484_v63, %v484_v63  ;;  %v491_v3 = vrot.slane %v477_v62, %v3078_v41  ;;  %v2874_v4 = vld [vmem:[%s3609_s1 + $0x478] sm:$0xff]   ;;  %v2873_v5 = vld [vmem:[%s3609_s1 + $0x4b0] sm:$0xff]  }
  0x66   :  { %2589 = vmatprep.subr.bf16.mxu1 %v2819_v6 }
  0x67   :  { %2568 = vmatpush3.bf16.msra.mxu0 %v2818_v7  ;;  %v514_v6 = vrot.slane %v492_v2, %v3078_v41  ;;  %v2876_v7 = vld [vmem:[%s3609_s1 + $0x4f8] sm:$0xff]  }
  0x68   :  { %2569 = vmatprep.subr.bf16.mxu0 %v2821_v8  ;;  %v2875_v8 = vld [vmem:[%s3609_s1 + $0x438] sm:$0xff]  }
  0x69   :  { %2590 = vmatpush3.bf16.msra.mxu1 %v2820_v9  ;;  %v523_v9 = vcombine.high %v514_v6, %v514_v6 }
  0x6a   :  { %2591 = vmatprep.subr.bf16.mxu1 %v2823_v10  ;;  %v493_v10 = vcombine.high %v491_v3, %v491_v3 }
  0x6b   :  { %2570 = vmatpush3.bf16.msra.mxu0 %v2822_v11  ;;  %v500_v11 = vrot.slane %v484_v63, %v3078_v41 }
  0x6c   :  { %2571 = vmatprep.subr.bf16.mxu0 %v2825_v12  ;;  %v2878_v12 = vld [vmem:[%s3609_s1 + $0x4b8] sm:$0xff]  }
  0x6d   :  { %2592 = vmatpush3.bf16.msra.mxu1 %v2824_v13  ;;  %v2879_v13 = vld [vmem:[%s3609_s1 + $0x500] sm:$0xff]  }
  0x6e   :  { %2593 = vmatprep.subr.bf16.mxu1 %v2827_v14  ;;  %v521_v14 = vrot.slane %v493_v10, %v3078_v41 }
  0x6f   :  { %2572 = vmatpush3.bf16.msra.mxu0 %v2826_v15  ;;  %v2929_v15 = vmov 0  }
  0x70   :  { %2573 = vmatprep.subr.bf16.mxu0 %v2829_v16  ;;  %v522_v16 = vcombine.high %v500_v11, %v500_v11 }
  0x71   :  { %2594 = vmatpush3.bf16.msra.mxu1 %v2828_v17  ;;  %v2880_v17 = vld [vmem:[%s3609_s1 + $0x508] sm:$0xff]  }
  0x72   :  { %2595 = vmatprep.subr.bf16.mxu1 %v2831_v18  ;;  %v2881_v18 = vld [vmem:[%s3609_s1 + $0x510] sm:$0xff]  }
  0x73   :  { %2574 = vmatpush3.bf16.msra.mxu0 %v2830_v19 }
  0x74   :  { %2575 = vmatprep.subr.bf16.mxu0 %v2833_v20 }
  0x75   :  { %2596 = vmatpush3.bf16.msra.mxu1 %v2832_v21 }
  0x76   :  { %2597 = vmatprep.subr.bf16.mxu1 %v2835_v22 }
  0x77   :  { %2576 = vmatpush3.bf16.msra.mxu0 %v2834_v23 }
  0x78   :  { %2577 = vmatprep.subr.bf16.mxu0 %v2837_v24 }
  0x79   :  { %2598 = vmatpush3.bf16.msra.mxu1 %v2836_v25 }
  0x7a   :  { %2599 = vmatprep.subr.bf16.mxu1 %v2839_v26 }
  0x7b   :  { %2578 = vmatpush3.bf16.msra.mxu0 %v2838_v27 }
  0x7c   :  { %2579 = vmatprep.subr.bf16.mxu0 %v2841_v28 }
  0x7d   :  { %2600 = vmatpush3.bf16.msra.mxu1 %v2840_v29 }
  0x7e   :  { %2601 = vmatprep.subr.bf16.mxu1 %v2843_v30 }
  0x7f   :  { %2580 = vmatpush3.bf16.msra.mxu0 %v2842_v31 }
  0x80   :  { %2609 = vmatprep.subr.bf16.mxu0 %v2846_v33 }
  0x81   :  { %2602 = vmatpush3.bf16.msra.mxu1 %v2845_v34 }
  0x82   :  { %1836 = vmatmul.mubr.bf16.vlgmr.msra.gmra.mrb[12].mxu0 %v458_v32  ;;  %2631 = vmatprep.subr.bf16.mxu1 %v2848_v35 }
  0x83   :  { %2610 = vmatpush3.bf16.msra.mxu0 %v2847_v36  ;;  %1915 = vmatprep.mubr.bf16.mxu0 %v514_v6 }
  0x84   :  { %1876 = vmatmul.mubr.bf16.vlgmr.msra.gmra.mrb[12].mxu1 %v474_v37  ;;  %2611 = vmatprep.subr.bf16.mxu0 %v2850_v38 }
  0x85   :  { %2632 = vmatpush3.bf16.msra.mxu1 %v2849_v39  ;;  %1955 = vmatprep.mubr.bf16.mxu1 %v523_v9 }
  0x86   :  { %2633 = vmatprep.subr.bf16.mxu1 %v2852_v40 }
  0x87   :  { %2612 = vmatpush3.bf16.msra.mxu0 %v2851_v42 }
  0x88   :  { %2613 = vmatprep.subr.bf16.mxu0 %v2854_v43 }
  0x89   :  { %2634 = vmatpush3.bf16.msra.mxu1 %v2853_v44 }
  0x8a   :  { %2635 = vmatprep.subr.bf16.mxu1 %v2856_v45 }
  0x8b   :  { %2614 = vmatpush3.bf16.msra.mxu0 %v2855_v46 }
  0x8c   :  { %2615 = vmatprep.subr.bf16.mxu0 %v2858_v47 }
  0x8d   :  { %2636 = vmatpush3.bf16.msra.mxu1 %v2857_v48 }
  0x8e   :  { %2637 = vmatprep.subr.bf16.mxu1 %v2860_v49 }
  0x8f   :  { %2616 = vmatpush3.bf16.msra.mxu0 %v2859_v50 }
  0x90   :  { %2617 = vmatprep.subr.bf16.mxu0 %v2862_v51 }
  0x91   :  { %2638 = vmatpush3.bf16.msra.mxu1 %v2861_v52 }
  0x92   :  { %2639 = vmatprep.subr.bf16.mxu1 %v2864_v53 }
  0x93   :  { %2618 = vmatpush3.bf16.msra.mxu0 %v2863_v54 }
  0x94   :  { %2619 = vmatprep.subr.bf16.mxu0 %v2866_v55 }
  0x95   :  { %2640 = vmatpush3.bf16.msra.mxu1 %v2865_v56 }
  0x96   :  { %2641 = vmatprep.subr.bf16.mxu1 %v2868_v57 }
  0x97   :  { %2620 = vmatpush3.bf16.msra.mxu0 %v2867_v58 }
  0x98   :  { %2621 = vmatprep.subr.bf16.mxu0 %v2870_v59 }
  0x99   :  { %2642 = vmatpush3.bf16.msra.mxu1 %v2869_v61 }
  0x9a   :  { %2643 = vmatprep.subr.bf16.mxu1 %v2872_v0 }
  0x9b   :  { %2622 = vmatpush3.bf16.msra.mxu0 %v2871_v1 }
  0x9c   :  { %2623 = vmatprep.subr.bf16.mxu0 %v2874_v4 }
  0x9d   :  { %2644 = vmatpush3.bf16.msra.mxu1 %v2873_v5 }
  0x9e   :  { %2645 = vmatprep.subr.bf16.mxu1 %v2876_v7 }
  0x9f   :  { %2624 = vmatpush3.bf16.msra.mxu0 %v2875_v8 }
  0xa0   :  { %1963 = vmatprep.subr.bf16.mxu0 %v2929_v15 }
  0xa1   :  { %2646 = vmatpush3.bf16.msra.mxu1 %v2878_v12 }
  0xa2   :  { %1916 = vmatmul.mubr.bf16.vlgmr.msra.gmra.mrb[16].mxu0 %v500_v11 }
  0xa3   :  { %1964 = vmatpush1.bf16.msra.mxu0 %v2879_v13  ;;  %2414 = vmatprep.mubr.msk.bf16.mxu0 %vm1559_vm0, %v521_v14 }
  0xa4   :  { %1956 = vmatmul.mubr.bf16.vlgmr.msra.gmra.mrb[16].mxu1 %v522_v16  ;;  %1965 = vmatprep.subr.bf16.mxu0 %v2929_v15 }
  0xa7   :  { %1966 = vmatpush1.bf16.msra.mxu0 %v2880_v17 }
  0xa8   :  { %1967 = vmatprep.subr.bf16.mxu0 %v2929_v15 }
  0xa9   :  { %12 = vsyncpa [#allocation3], 0  ;;  %v2882_v19 = vld [vmem:[%s3609_s1 + $0x518] sm:$0xff]   ;;  %v2883_v20 = vld [vmem:[%s3609_s1 + $0x520] sm:$0xff]   ;;  %v507_v25 = vrot.slane %v491_v3, %v3078_v41  ;;  %v2930_v38 = vmov 0.0   ;;  %vm2931_vm1 = vmmov 0  }
  0xaa   :  { %v2884_v21 = vld [vmem:[%s3609_s1 + $0x528] sm:$0xff]   ;;  %v2885_v22 = vld [vmem:[%s3609_s1 + $0x530] sm:$0xff]   ;;  %v2886_v23 = vld [vmem:[%s3609_s1 + $0x538] sm:$0xff]   ;;  %2671 = vmatprep.subr.bf16.mxu1 %v2930_v38  ;;  %2687 = vmatprep.mubr.msk.bf16.mxu1 %vm2931_vm1, %v2930_v38  ;;  %s2932_s30 = smov [#allocation2]  }
  0xab   :  { %1968 = vmatpush1.bf16.msra.mxu0 %v2881_v18  ;;  %v2887_v24 = vld [vmem:[%s3609_s1 + $0x540] sm:$0xff]   ;;  %v2889_v40 = vld [vmem:[%s3611_s3 + $0x8] sm:$0xff]   ;;  %v2890_v42 = vld [vmem:[%s3611_s3 + $0x10] sm:$0xff]   ;;  %s2236_s8 = sshll.u32 %s2932_s30, 4  ;;  %s2237_s8 = int_to_ptr.vmem [resolvable:$true] %s2236_s8 }
  0xac   :  { %1969 = vmatprep.subr.bf16.mxu0 %v2929_v15  ;;  %v2244_v27 = vld [vmem:[%s3610_s2] ss:$0 sm:$0xff]  ;;  %v2891_v43 = vld [vmem:[%s3611_s3 + $0x18] sm:$0xff]   ;;  %v2893_v45 = vld [vmem:[%s3611_s3 + $0x28] sm:$0xff]   ;;  %p2909_p1 = scmp.lt.s32.totalorder %s2237_s8, %s2237_s8 }
  0xad   :  { %v2888_v41 = vld [vmem:[%s3611_s3] sm:$0xff]   ;;  %v2894_v51 = vld [vmem:[%s3611_s3 + $0x30] sm:$0xff]   ;;  %v2895_v59 = vld [vmem:[%s3611_s3 + $0x38] sm:$0xff]  }
  0xae   :  { %2672 = vmatpush3.bf16.msra.mxu1 %v2888_v41  ;;  %v2892_v44 = vld [vmem:[%s3611_s3 + $0x20] sm:$0xff]  }
  0xaf   :  { %1970 = vmatpush1.bf16.msra.mxu0 %v2882_v19  ;;  %2673 = vmatprep.subr.bf16.mxu1 %v2930_v38 }
  0xb0   :  { %1971 = vmatprep.subr.bf16.mxu0 %v2929_v15 }
  0xb2   :  { %2674 = vmatpush3.bf16.msra.mxu1 %v2889_v40  ;;  %v2897_v40 = vld [vmem:[%s3613_s5 + $0x8] sm:$0xff]  }
  0xb3   :  { %1972 = vmatpush1.bf16.msra.mxu0 %v2883_v20  ;;  %2675 = vmatprep.subr.bf16.mxu1 %v2930_v38 }
  0xb4   :  { %1973 = vmatprep.subr.bf16.mxu0 %v2929_v15 }
  0xb6   :  { %2676 = vmatpush3.bf16.msra.mxu1 %v2890_v42  ;;  %v2898_v42 = vld [vmem:[%s3613_s5 + $0x10] sm:$0xff]  }
  0xb7   :  { %1974 = vmatpush1.bf16.msra.mxu0 %v2884_v21  ;;  %2677 = vmatprep.subr.bf16.mxu1 %v2930_v38 }
  0xb8   :  { %1975 = vmatprep.subr.bf16.mxu0 %v2929_v15 }
  0xba   :  { %2678 = vmatpush3.bf16.msra.mxu1 %v2891_v43  ;;  %v2899_v43 = vld [vmem:[%s3613_s5 + $0x18] sm:$0xff]  }
  0xbb   :  { %1976 = vmatpush1.bf16.msra.mxu0 %v2885_v22  ;;  %2679 = vmatprep.subr.bf16.mxu1 %v2930_v38 }
  0xbc   :  { %1977 = vmatprep.subr.bf16.mxu0 %v2929_v15 }
  0xbe   :  { %2680 = vmatpush3.bf16.msra.mxu1 %v2892_v44  ;;  %v2900_v44 = vld [vmem:[%s3613_s5 + $0x20] sm:$0xff]  }
  0xbf   :  { %1978 = vmatpush1.bf16.msra.mxu0 %v2886_v23  ;;  %2681 = vmatprep.subr.bf16.mxu1 %v2930_v38 }
  0xc0   :  { %1979 = vmatprep.subr.bf16.mxu0 %v2929_v15 }
  0xc2   :  { %2682 = vmatpush3.bf16.msra.mxu1 %v2893_v45  ;;  %v2901_v45 = vld [vmem:[%s3613_s5 + $0x28] sm:$0xff]  }
  0xc3   :  { %1980 = vmatpush1.bf16.msra.mxu0 %v2887_v24  ;;  %2683 = vmatprep.subr.bf16.mxu1 %v2930_v38 }
  0xc6   :  { %1996 = vmatmul.mubr.bf16.vlgmr.msra.gmra.mrb[20].mxu0 %v507_v25  ;;  %2684 = vmatpush3.bf16.msra.mxu1 %v2894_v51 }
  0xc7   :  { %2685 = vmatprep.subr.bf16.mxu1 %v2930_v38 }
  0xca   :  { %2686 = vmatpush3.bf16.msra.mxu1 %v2895_v59 }
  0xcb   :  { %2691 = vmatprep.subr.bf16.mxu1 %v2930_v38 }
  0xf5   :  { %v2449_v26 = vpop.f32.mrb[0].mxu0 }
  0xf6   :  { %v2450_v28 = vpop.f32.mrb[1].mxu0 }
  0xf7   :  { %v2451_v29 = vadd.f32 %v2450_v28, %v2449_v26  ;;  %v2452_v30 = vpop.f32.mrb[2].mxu0  ;;  %v2471_v31 = vpop.f32.mrb[0].mxu1 }
  0xf8   :  { %v2453_v32 = vpop.f32.mrb[3].mxu0  ;;  %v2472_v33 = vpop.f32.mrb[1].mxu1 }
  0xf9   :  { %v1598_v34 = vadd.f32 %v2451_v29, %v2244_v27  ;;  %v2473_v35 = vadd.f32 %v2472_v33, %v2471_v31  ;;  %v2474_v36 = vpop.f32.mrb[2].mxu1 }
  0xfa   :  { %v2475_v37 = vpop.f32.mrb[3].mxu1 }
  0xfb   :  { %v1638_v39 = vadd.f32 %v2473_v35, %v1598_v34  ;;  %v2896_v37 = vld [vmem:[%s3613_s5] sm:$0xff]  }
 0x115   :  { %v2493_v46 = vpop.f32.mrb[4].mxu0 }
 0x116   :  { %v2494_v47 = vpop.f32.mrb[5].mxu0 }
 0x117   :  { %v2495_v48 = vadd.f32 %v2494_v47, %v2493_v46  ;;  %v2496_v49 = vpop.f32.mrb[6].mxu0  ;;  %v2515_v50 = vpop.f32.mrb[4].mxu1  ;;  %v2902_v46 = vld [vmem:[%s3613_s5 + $0x30] sm:$0xff]   ;;  %v2903_v47 = vld [vmem:[%s3613_s5 + $0x38] sm:$0xff]  }
 0x118   :  { %v2497_v52 = vpop.f32.mrb[7].mxu0  ;;  %v2516_v53 = vpop.f32.mrb[5].mxu1 }
 0x119   :  { %v1678_v54 = vadd.f32 %v2495_v48, %v1638_v39  ;;  %v2517_v55 = vadd.f32 %v2516_v53, %v2515_v50  ;;  %v2518_v56 = vpop.f32.mrb[6].mxu1  ;;  %v2415_v48 = vld [vmem:[%s3612_s4] ss:$0 sm:$0xff]  ;;  %s2904_s4 = scalar_lea.vmem %s2237_s8, 32 }
 0x11a   :  { %v2519_v57 = vpop.f32.mrb[7].mxu1  ;;  %p2905_p0 = scmp.ne.s32.totalorder %s2237_s8, %s2904_s4  ;;  %p2910_p2 = scmp.lt.s32.totalorder %s2904_s4, %s2904_s4 }
 0x11b   :  { %v1718_v58 = vadd.f32 %v2517_v55, %v1678_v54 }
 0x11c   :  { %p2911_p3 = por %p2910_p2, %p2909_p1 }
 0x11e   :  { %p2912_p4 = pnand %p2911_p3, %p2905_p0 }
 0x135   :  { %v2537_v60 = vpop.f32.mrb[8].mxu0 }
 0x136   :  { %v2538_v61 = vpop.f32.mrb[9].mxu0 }
 0x137   :  { %v2539_v62 = vadd.f32 %v2538_v61, %v2537_v60  ;;  %v2540_v63 = vpop.f32.mrb[10].mxu0  ;;  %v2559_v0 = vpop.f32.mrb[8].mxu1 }
 0x138   :  { %v2541_v1 = vpop.f32.mrb[11].mxu0  ;;  %v2560_v2 = vpop.f32.mrb[9].mxu1 }
 0x139   :  { %v1758_v3 = vadd.f32 %v2539_v62, %v1718_v58  ;;  %v2561_v4 = vadd.f32 %v2560_v2, %v2559_v0  ;;  %v2562_v5 = vpop.f32.mrb[10].mxu1 }
 0x13a   :  { %v2563_v6 = vpop.f32.mrb[11].mxu1 }
 0x13b   :  { %v1798_v7 = vadd.f32 %v2561_v4, %v1758_v3 }
 0x155   :  { %v2581_v8 = vpop.f32.mrb[12].mxu0 }
 0x156   :  { %v2582_v9 = vpop.f32.mrb[13].mxu0 }
 0x157   :  { %v2583_v10 = vadd.f32 %v2582_v9, %v2581_v8  ;;  %v2584_v11 = vpop.f32.mrb[14].mxu0  ;;  %v2603_v12 = vpop.f32.mrb[12].mxu1 }
 0x158   :  { %v2585_v13 = vpop.f32.mrb[15].mxu0  ;;  %v2604_v14 = vpop.f32.mrb[13].mxu1 }
 0x159   :  { %v1838_v15 = vadd.f32 %v2583_v10, %v1798_v7  ;;  %v2605_v16 = vadd.f32 %v2604_v14, %v2603_v12  ;;  %v2606_v17 = vpop.f32.mrb[14].mxu1 }
 0x15a   :  { %v2607_v18 = vpop.f32.mrb[15].mxu1 }
 0x15b   :  { %v1878_v19 = vadd.f32 %v2605_v16, %v1838_v15 }
 0x175   :  { %v2625_v20 = vpop.f32.mrb[16].mxu0 }
 0x176   :  { %v2626_v21 = vpop.f32.mrb[17].mxu0 }
 0x177   :  { %v2627_v22 = vadd.f32 %v2626_v21, %v2625_v20  ;;  %v2628_v23 = vpop.f32.mrb[18].mxu0  ;;  %v2647_v24 = vpop.f32.mrb[16].mxu1 }
 0x178   :  { %v2629_v25 = vpop.f32.mrb[19].mxu0  ;;  %v2648_v26 = vpop.f32.mrb[17].mxu1 }
 0x179   :  { %v1918_v27 = vadd.f32 %v2627_v22, %v1878_v19  ;;  %v2649_v28 = vadd.f32 %v2648_v26, %v2647_v24  ;;  %v2650_v29 = vpop.f32.mrb[18].mxu1 }
 0x17a   :  { %v2651_v30 = vpop.f32.mrb[19].mxu1 }
 0x17b   :  { %v1958_v31 = vadd.f32 %v2649_v28, %v1918_v27 }
 0x199   :  { %v1997_v32 = vpop.f32.mrb[20].mxu0 }
 0x19a   :  { %v1998_v33 = vadd.f32 %v1997_v32, %v1958_v31  ;;  %v1999_v34 = vpop.f32.mrb[21].mxu0 }
 0x19b   :  { %v2000_v35 = vpop.f32.mrb[22].mxu0 }
 0x19c   :  { %v2003_v36 = vmax.f32 %v1998_v33, 0.0  ;;  %v2001_v41 = vpop.f32.mrb[23].mxu0 }
 0x19e   :  { %v2004_v39 = vpack.c.bf16 %v2003_v36, %v2003_v36 }
 0x1a0   :  { %2688 = vmatmul.mubr.bf16.vlgmr.msra.gmra.mrb[20].mxu1 %v2004_v39 }
 0x1a1   :  { %2692 = vmatpush3.bf16.msra.mxu1 %v2896_v37  ;;  %2707 = vmatprep.mubr.msk.bf16.mxu1 %vm2931_vm1, %v2930_v38 }
 0x1a2   :  { %2693 = vmatprep.subr.bf16.mxu1 %v2930_v38 }
 0x1a5   :  { %2694 = vmatpush3.bf16.msra.mxu1 %v2897_v40 }
 0x1a6   :  { %2695 = vmatprep.subr.bf16.mxu1 %v2930_v38 }
 0x1a9   :  { %2696 = vmatpush3.bf16.msra.mxu1 %v2898_v42 }
 0x1aa   :  { %2697 = vmatprep.subr.bf16.mxu1 %v2930_v38 }
 0x1ad   :  { %2698 = vmatpush3.bf16.msra.mxu1 %v2899_v43 }
 0x1ae   :  { %2699 = vmatprep.subr.bf16.mxu1 %v2930_v38 }
 0x1b1   :  { %2700 = vmatpush3.bf16.msra.mxu1 %v2900_v44 }
 0x1b2   :  { %2701 = vmatprep.subr.bf16.mxu1 %v2930_v38 }
 0x1b5   :  { %2702 = vmatpush3.bf16.msra.mxu1 %v2901_v45 }
 0x1b6   :  { %2703 = vmatprep.subr.bf16.mxu1 %v2930_v38 }
 0x1b9   :  { %2704 = vmatpush3.bf16.msra.mxu1 %v2902_v46 }
 0x1ba   :  { %2705 = vmatprep.subr.bf16.mxu1 %v2930_v38  ;;  %v2424_v38 = vld [vmem:[%s3614_s6] ss:$0 sm:$0xff] }
 0x1bd   :  { %2706 = vmatpush3.bf16.msra.mxu1 %v2903_v47 }
 0x273   :  { %v2110_v49 = vpop.f32.mrb[20].mxu1 }
 0x274   :  { %v2111_v50 = vadd.f32 %v2415_v48, %v2110_v49  ;;  %v2689_v51 = vpop.f32.mrb[21].mxu1 }
 0x275   :  { %v2113_v52 = vpop.f32.mrb[22].mxu1 }
 0x276   :  { %v2116_v53 = vmax.f32 %v2111_v50, 0.0  ;;  %v2690_v54 = vpop.f32.mrb[23].mxu1 }
 0x278   :  { %v2117_v55 = vpack.c.bf16 %v2116_v53, %v2116_v53 }
 0x27a   :  { %2708 = vmatmul.mubr.bf16.vlgmr.msra.gmra.mrb[24].mxu1 %v2117_v55 }
 0x34d   :  { %v2223_v56 = vpop.f32.mrb[24].mxu1 }
 0x34e   :  { %v2224_v57 = vadd.f32 %v2424_v38, %v2223_v56  ;;  %v2709_v58 = vpop.f32.mrb[25].mxu1 }
 0x34f   :  { %v2226_v59 = vpop.f32.mrb[26].mxu1 }
 0x350   :  { %2229 = vst [vmem:[#allocation2] sm:$0x3] %v2224_v57  ;;  %v2710_v60 = vpop.f32.mrb[27].mxu1 }
 0x351   :  { %2915 = shalt.err (!%p2912_p4)
}
 0x352   :  { %s2916_s6 = scalar_lea.hbm %s3615_s7, 32 }
 0x353   :  { %p2917_p5 = scmp.ne.s32.totalorder %s3615_s7, %s2916_s6  ;;  %p2920_p6 = scmp.lt.u32.totalorder %s2916_s6, %s3615_s7 }
 0x355   :  { %p2922_p7 = pnand %p2920_p6, %p2917_p5 }
 0x357   :  { %2925 = shalt.err (!%p2922_p7)
}
 0x358   :  { %2239 = dma.vmem_to_hbm [thread:$0]  %s2237_s8, 32, %s3615_s7, [#allocation3]  }
 0x359   :  { %2926 = dma.done.wait [#allocation3], 32  }
 0x35a   :  { %2927 = vsyncadd [#allocation3], 4294967264 }
 0x35b   :  { %2243 = vsyncpa [#allocation3], 1 }

</bundles_post_ra>
